<compile_context>
chip_gen: v6e
topology: v6e:2x2x1
jax: 0.10.0
libtpu: 0.0.40
codegen_flags: <defaults>
</compile_context>

<pallas_src>
import functools

import jax
import jax.numpy as jnp
from jax.experimental import pallas as pl
from jax.experimental.pallas import tpu as pltpu


def mha_kernel(x_ref, wqkv_ref, wp_ref, bp_ref, o_ref, qkv_scr, ohead_scr, *,
               num_heads, q_tile):
    # x_ref    : (T, C)    bf16  full-sequence activations for this batch
    # wqkv_ref : (C, 3C)   bf16  fused [Wq*scale | Wk | Wv], head blocks inside each third
    # wp_ref   : (C, C)    bf16  proj.weight.T
    # bp_ref   : (1, C)    f32   proj.bias
    # o_ref    : (TQ, C)   output tile
    # qkv_scr  : (T, 3C)   bf16  persistent fused QKV projection (per batch)
    # ohead_scr: (TQ, C)   bf16  concatenated head outputs
    T, C = x_ref.shape
    TQ = q_tile
    H = num_heads
    HS = C // H
    qi = pl.program_id(1)

    # Fused QKV projection for the whole sequence, computed once per batch.
    # (qi is the innermost "arbitrary" grid axis, so qi == 0 marks a new batch.)
    @pl.when(qi == 0)
    def _():
        qkv_scr[...] = jnp.dot(
            x_ref[...], wqkv_ref[...],
            preferred_element_type=jnp.float32).astype(jnp.bfloat16)

    q_start = pl.multiple_of(qi * TQ, TQ)
    q_all = qkv_scr[pl.ds(q_start, TQ), :C]        # (TQ, C) bf16 (scale pre-folded)
    k_all = qkv_scr[:, C:2 * C]                    # (T,  C) bf16
    v_all = qkv_scr[:, 2 * C:]                     # (T,  C) bf16

    # Causal mask for this q-tile, built once and shared across heads.
    row = q_start + jax.lax.broadcasted_iota(jnp.int32, (TQ, T), 0)
    col = jax.lax.broadcasted_iota(jnp.int32, (TQ, T), 1)
    causal = col <= row

    # Per-head attention on q-tile-bounded (TQ, T) score tiles.
    for h in range(H):
        qh = q_all[:, h * HS:(h + 1) * HS]         # (TQ, HS) bf16
        kh = k_all[:, h * HS:(h + 1) * HS]         # (T,  HS) bf16
        vh = v_all[:, h * HS:(h + 1) * HS]         # (T,  HS) bf16

        # Contract the HS axis of both operands directly (no explicit .T).
        s = jax.lax.dot_general(
            qh, kh, (((1,), (1,)), ((), ())),
            preferred_element_type=jnp.float32)    # (TQ, T) f32
        s = jnp.where(causal, s, -jnp.inf)
        # Softmax in f32; the diagonal is never masked so every row max is finite.
        m = jnp.max(s, axis=-1, keepdims=True)
        p = jnp.exp(s - m)
        denom = jnp.sum(p, axis=-1, keepdims=True)
        p = p * pl.reciprocal(denom, approx=True)

        oh = jnp.dot(p.astype(jnp.bfloat16), vh,
                     preferred_element_type=jnp.float32)   # (TQ, HS) f32
        ohead_scr[:, h * HS:(h + 1) * HS] = oh.astype(jnp.bfloat16)

    # Output projection on the lane-dense (TQ, C) slab of concatenated heads.
    out = jnp.dot(ohead_scr[...], wp_ref[...],
                  preferred_element_type=jnp.float32) + bp_ref[...]
    o_ref[...] = out.astype(o_ref.dtype)


def multi_head_attention(x, wq, wk, wv, proj_w, proj_b, *, num_heads, q_tile=128):
    """x: (B, T, C); wq/wk/wv: (H, C, hs) (already W.T per head); proj_w: (C, C); proj_b: (C,)."""
    B, T, C = x.shape
    H = num_heads
    hs = C // H
    assert wq.shape == (H, C, hs)
    TQ = min(q_tile, T)
    assert T % TQ == 0

    out_dtype = x.dtype
    scale = C ** (-0.5)   # PyTorch module scales by n_embed (= C), not head_size

    # Fuse per-head weights: columns grouped as [head0 | head1 | ...] inside each
    # of the Q / K / V thirds; fold the score scale into Wq.
    wq_f = jnp.transpose(wq, (1, 0, 2)).reshape(C, C) * scale
    wk_f = jnp.transpose(wk, (1, 0, 2)).reshape(C, C)
    wv_f = jnp.transpose(wv, (1, 0, 2)).reshape(C, C)
    wqkv = jnp.concatenate([wq_f, wk_f, wv_f], axis=-1).astype(jnp.bfloat16)   # (C, 3C)
    wp_f = proj_w.T.astype(jnp.bfloat16)                                       # (C, C): y = o @ W.T + b
    bp2 = proj_b.reshape(1, C).astype(jnp.float32)

    x_bf = x.astype(jnp.bfloat16)   # half the activation DMA bytes (AMP-style)

    # VMEM budget from the actual working set (double-buffered I/O + scratch),
    # with generous headroom; capped at 32 MiB (safe on v7x's 64 MiB/TC).
    itemsize_out = jnp.dtype(out_dtype).itemsize
    est = (2 * T * C * 2             # x block, double-buffered, bf16
           + 3 * C * C * 2           # fused W_qkv
           + C * C * 2               # proj.weight.T
           + C * 4                   # proj bias
           + 2 * TQ * C * itemsize_out   # output tile, double-buffered
           + T * 3 * C * 2           # qkv scratch
           + TQ * C * 2)             # head-output scratch
    vmem_limit = int(min(32 * 1024 * 1024, max(4 * 1024 * 1024, 8 * est)))

    kernel = functools.partial(mha_kernel, num_heads=H, q_tile=TQ)

    return pl.pallas_call(
        kernel,
        out_shape=jax.ShapeDtypeStruct((B, T, C), out_dtype),
        grid_spec=pltpu.PrefetchScalarGridSpec(
            num_scalar_prefetch=0,
            grid=(B, T // TQ),
            in_specs=[
                pl.BlockSpec((None, T, C), lambda b, qi: (b, 0, 0)),    # x (full seq per batch)
                pl.BlockSpec((C, 3 * C), lambda b, qi: (0, 0)),         # fused [Wq*s | Wk | Wv]
                pl.BlockSpec((C, C), lambda b, qi: (0, 0)),             # proj.weight.T
                pl.BlockSpec((1, C), lambda b, qi: (0, 0)),             # proj.bias
            ],
            out_specs=pl.BlockSpec((None, TQ, C), lambda b, qi: (b, qi, 0)),
            scratch_shapes=[
                pltpu.VMEM((T, 3 * C), jnp.bfloat16),   # persistent fused QKV (per batch)
                pltpu.VMEM((TQ, C), jnp.bfloat16),      # concatenated head outputs
            ],
        ),
        compiler_params=pltpu.CompilerParams(
            # qi must run sequentially within a batch so the QKV scratch persists;
            # the batch axis stays "parallel" for megacore / 2-TC sharding.
            dimension_semantics=("parallel", "arbitrary"),
            vmem_limit_bytes=vmem_limit,
        ),
    )(x_bf, wqkv, wp_f, bp2)


def reference(x, wq, wk, wv, proj_w, proj_b):
    """Pure-JAX f32 reference mirroring the PyTorch forward (dropout = identity)."""
    B, T, C = x.shape
    H = wq.shape[0]
    mask = jnp.tril(jnp.ones((T, T), dtype=bool))
    outs = []
    for h in range(H):
        q = x @ wq[h]
        k = x @ wk[h]
        v = x @ wv[h]
        w = (q @ jnp.swapaxes(k, -2, -1)) * (C ** -0.5)
        w = jnp.where(mask, w, -jnp.inf)
        w = jax.nn.softmax(w, axis=-1)
        outs.append(w @ v)
    o = jnp.concatenate(outs, axis=-1)           # (B, T, C)
    return o @ proj_w.T + proj_b


if __name__ == "__main__":
    # Small shapes consistent with the module (n_embed = num_heads * head_size,
    # T <= BLOCK_SIZE = 256).  T = 256 with q_tile = 128 exercises both the
    # once-per-batch QKV caching path and the dynamic q-row slice.
    B, T = 2, 256
    n_embed, num_heads, head_size = 128, 4, 32
    assert num_heads * head_size == n_embed

    key = jax.random.PRNGKey(0)
    kx, kq, kk, kv, kp, kb = jax.random.split(key, 6)

    x = jax.random.normal(kx, (B, T, n_embed), dtype=jnp.float32)

    # nn.Linear(n_embed, head_size, bias=False): weight (hs, C); y = x @ W.T.
    # Store W.T per head -> (H, C, hs).
    wq = jax.random.normal(kq, (num_heads, n_embed, head_size), jnp.float32) * 0.1
    wk = jax.random.normal(kk, (num_heads, n_embed, head_size), jnp.float32) * 0.1
    wv = jax.random.normal(kv, (num_heads, n_embed, head_size), jnp.float32) * 0.1

    # nn.Linear(n_embed, n_embed): weight (C_out, C_in), bias (C,).
    proj_w = jax.random.normal(kp, (n_embed, n_embed), jnp.float32) * 0.1
    proj_b = jax.random.normal(kb, (n_embed,), jnp.float32) * 0.1

    out = multi_head_attention(x, wq, wk, wv, proj_w, proj_b,
                               num_heads=num_heads, q_tile=128)
    out = jax.block_until_ready(out)

    ref = reference(x, wq, wk, wv, proj_w, proj_b)
    assert out.shape == (B, T, n_embed)
    rel_err = jnp.linalg.norm((out - ref).astype(jnp.float32)) / jnp.linalg.norm(ref)
    assert float(rel_err) < 3e-2, f"relative error too large: {float(rel_err)}"

    print("KERNEL_OK")
</pallas_src>

<mosaic_0001>
module attributes {stable_mosaic.version = 11 : i64} {
  func.func @mha_kernel(%arg0: i32, %arg1: i32, %arg2: memref<1x256x128xbf16, #tpu.memory_space<vmem>>, %arg3: memref<128x384xbf16, #tpu.memory_space<vmem>>, %arg4: memref<128x128xbf16, #tpu.memory_space<vmem>>, %arg5: memref<1x128xf32, #tpu.memory_space<vmem>>, %arg6: memref<1x128x128xf32, #tpu.memory_space<vmem>>, %arg7: memref<256x384xbf16, #tpu.memory_space<vmem>>, %arg8: memref<128x128xbf16, #tpu.memory_space<vmem>>) attributes {dimension_semantics = [#tpu.dimension_semantics<parallel>, #tpu.dimension_semantics<arbitrary>], iteration_bounds = array<i64: 2, 2>, scalar_prefetch = 0 : i64, scratch_operands = 2 : i64, tpu.core_type = #tpu.core_type<tc>, window_params = [{transform_indices = @transform_0, window_bounds = array<i64: 1, 256, 128>}, {pipeline_mode = #tpu.pipeline_mode<synchronous>, transform_indices = @transform_1, window_bounds = array<i64: 128, 384>}, {pipeline_mode = #tpu.pipeline_mode<synchronous>, transform_indices = @transform_2, window_bounds = array<i64: 128, 128>}, {pipeline_mode = #tpu.pipeline_mode<synchronous>, transform_indices = @transform_3, window_bounds = array<i64: 1, 128>}, {transform_indices = @transform_4, window_bounds = array<i64: 1, 128, 128>}]} {
    %c0_i32 = arith.constant 0 : i32
    %0 = arith.cmpi eq, %arg1, %c0_i32 : i32
    %1 = arith.extui %0 : i1 to i32
    %c0_i32_0 = arith.constant 0 : i32
    %2 = arith.cmpi ne, %1, %c0_i32_0 : i32
    scf.if %2 {
      %c0_37 = arith.constant 0 : index
      %c0_38 = arith.constant 0 : index
      %c0_39 = arith.constant 0 : index
      %103 = vector.load %arg2[%c0_37, %c0_38, %c0_39] : memref<1x256x128xbf16, #tpu.memory_space<vmem>>, vector<1x256x128xbf16>
      %104 = vector.shape_cast %103 : vector<1x256x128xbf16> to vector<256x128xbf16>
      %c0_40 = arith.constant 0 : index
      %c0_41 = arith.constant 0 : index
      %105 = vector.load %arg3[%c0_40, %c0_41] : memref<128x384xbf16, #tpu.memory_space<vmem>>, vector<128x384xbf16>
      %cst_42 = arith.constant dense<0.000000e+00> : vector<256x384xf32>
      %106 = tpu.matmul %104, %105, %cst_42 {dimension_numbers = #tpu.dot_dimension_numbers<[1], [0], [0], [1], [0, 0, 1, 1], [], []>} : vector<256x128xbf16>, vector<128x384xbf16>, vector<256x384xf32> -> vector<256x384xf32>
      %107 = arith.truncf %106 : vector<256x384xf32> to vector<256x384xbf16>
      %c0_43 = arith.constant 0 : index
      %c0_44 = arith.constant 0 : index
      %108 = vector.load %arg7[%c0_43, %c0_44] : memref<256x384xbf16, #tpu.memory_space<vmem>>, vector<256x384xbf16>
      tpu.vector_store %arg7[%c0_43, %c0_44], %107 {strides = array<i32>} : memref<256x384xbf16, #tpu.memory_space<vmem>>, vector<256x384xbf16>,
    } else {
    }
    %c128_i32 = arith.constant 128 : i32
    %3 = arith.muli %arg1, %c128_i32 : i32
    %4 = tpu.assume_multiple %3, 128 : i32
    %5 = arith.index_cast %4 : i32 to index
    %c0 = arith.constant 0 : index
    %6 = vector.load %arg7[%5, %c0] : memref<256x384xbf16, #tpu.memory_space<vmem>>, vector<128x128xbf16>
    %c0_1 = arith.constant 0 : index
    %c128 = arith.constant 128 : index
    %7 = vector.load %arg7[%c0_1, %c128] : memref<256x384xbf16, #tpu.memory_space<vmem>>, vector<256x128xbf16>
    %c0_2 = arith.constant 0 : index
    %c256 = arith.constant 256 : index
    %8 = vector.load %arg7[%c0_2, %c256] : memref<256x384xbf16, #tpu.memory_space<vmem>>, vector<256x128xbf16>
    %9 = tpu.iota {dimensions = array<i32: 0>} : vector<128x256xi32>
    %10 = vector.broadcast %4 : i32 to vector<128x256xi32>
    %11 = arith.addi %10, %9 : vector<128x256xi32>
    %12 = tpu.iota {dimensions = array<i32: 1>} : vector<128x256xi32>
    %13 = arith.cmpi sle, %12, %11 : vector<128x256xi32>
    %14 = vector.extract_strided_slice %6 {offsets = [0, 0], sizes = [128, 32], strides = [1, 1]} : vector<128x128xbf16> to vector<128x32xbf16>
    %15 = vector.extract_strided_slice %7 {offsets = [0, 0], sizes = [256, 32], strides = [1, 1]} : vector<256x128xbf16> to vector<256x32xbf16>
    %16 = vector.extract_strided_slice %8 {offsets = [0, 0], sizes = [256, 32], strides = [1, 1]} : vector<256x128xbf16> to vector<256x32xbf16>
    %cst = arith.constant dense<0.000000e+00> : vector<128x256xf32>
    %17 = tpu.matmul %14, %15, %cst {dimension_numbers = #tpu.dot_dimension_numbers<[1], [1], [0], [0], [0, 0, 1, 0], [], []>} : vector<128x32xbf16>, vector<256x32xbf16>, vector<128x256xf32> -> vector<128x256xf32>
    %cst_3 = arith.constant 0xFF800000 : f32
    %18 = vector.broadcast %cst_3 : f32 to vector<128x256xf32>
    %19 = arith.select %13, %17, %18 : vector<128x256xi1>, vector<128x256xf32>
    %cst_4 = arith.constant dense<0xFF800000> : vector<128xf32>
    %20 = vector.multi_reduction <maximumf>, %19, %cst_4 [1] : vector<128x256xf32> to vector<128xf32>
    %21 = vector.shape_cast %20 : vector<128xf32> to vector<128x1xf32>
    %22 = vector.broadcast %21 : vector<128x1xf32> to vector<128x256xf32>
    %23 = arith.subf %19, %22 : vector<128x256xf32>
    %24 = math.exp %23 : vector<128x256xf32>
    %cst_5 = arith.constant dense<0.000000e+00> : vector<128xf32>
    %25 = vector.multi_reduction <add>, %24, %cst_5 [1] : vector<128x256xf32> to vector<128xf32>
    %26 = vector.shape_cast %25 : vector<128xf32> to vector<128x1xf32>
    %27 = tpu.reciprocal %26 {approx = true} : vector<128x1xf32> -> vector<128x1xf32>
    %28 = vector.broadcast %27 : vector<128x1xf32> to vector<128x256xf32>
    %29 = arith.mulf %24, %28 : vector<128x256xf32>
    %30 = arith.truncf %29 : vector<128x256xf32> to vector<128x256xbf16>
    %cst_6 = arith.constant dense<0.000000e+00> : vector<128x32xf32>
    %31 = tpu.matmul %30, %16, %cst_6 {dimension_numbers = #tpu.dot_dimension_numbers<[1], [0], [0], [1], [0, 0, 1, 1], [], []>} : vector<128x256xbf16>, vector<256x32xbf16>, vector<128x32xf32> -> vector<128x32xf32>
    %32 = arith.truncf %31 : vector<128x32xf32> to vector<128x32xbf16>
    %c0_7 = arith.constant 0 : index
    %c0_8 = arith.constant 0 : index
    %33 = vector.load %arg8[%c0_7, %c0_8] : memref<128x128xbf16, #tpu.memory_space<vmem>>, vector<128x32xbf16>
    tpu.vector_store %arg8[%c0_7, %c0_8], %32 {strides = array<i32>} : memref<128x128xbf16, #tpu.memory_space<vmem>>, vector<128x32xbf16>,
    %34 = vector.extract_strided_slice %6 {offsets = [0, 32], sizes = [128, 32], strides = [1, 1]} : vector<128x128xbf16> to vector<128x32xbf16>
    %35 = vector.extract_strided_slice %7 {offsets = [0, 32], sizes = [256, 32], strides = [1, 1]} : vector<256x128xbf16> to vector<256x32xbf16>
    %36 = vector.extract_strided_slice %8 {offsets = [0, 32], sizes = [256, 32], strides = [1, 1]} : vector<256x128xbf16> to vector<256x32xbf16>
    %cst_9 = arith.constant dense<0.000000e+00> : vector<128x256xf32>
    %37 = tpu.matmul %34, %35, %cst_9 {dimension_numbers = #tpu.dot_dimension_numbers<[1], [1], [0], [0], [0, 0, 1, 0], [], []>} : vector<128x32xbf16>, vector<256x32xbf16>, vector<128x256xf32> -> vector<128x256xf32>
    %cst_10 = arith.constant 0xFF800000 : f32
    %38 = vector.broadcast %cst_10 : f32 to vector<128x256xf32>
    %39 = arith.select %13, %37, %38 : vector<128x256xi1>, vector<128x256xf32>
    %cst_11 = arith.constant dense<0xFF800000> : vector<128xf32>
    %40 = vector.multi_reduction <maximumf>, %39, %cst_11 [1] : vector<128x256xf32> to vector<128xf32>
    %41 = vector.shape_cast %40 : vector<128xf32> to vector<128x1xf32>
    %42 = vector.broadcast %41 : vector<128x1xf32> to vector<128x256xf32>
    %43 = arith.subf %39, %42 : vector<128x256xf32>
    %44 = math.exp %43 : vector<128x256xf32>
    %cst_12 = arith.constant dense<0.000000e+00> : vector<128xf32>
    %45 = vector.multi_reduction <add>, %44, %cst_12 [1] : vector<128x256xf32> to vector<128xf32>
    %46 = vector.shape_cast %45 : vector<128xf32> to vector<128x1xf32>
    %47 = tpu.reciprocal %46 {approx = true} : vector<128x1xf32> -> vector<128x1xf32>
    %48 = vector.broadcast %47 : vector<128x1xf32> to vector<128x256xf32>
    %49 = arith.mulf %44, %48 : vector<128x256xf32>
    %50 = arith.truncf %49 : vector<128x256xf32> to vector<128x256xbf16>
    %cst_13 = arith.constant dense<0.000000e+00> : vector<128x32xf32>
    %51 = tpu.matmul %50, %36, %cst_13 {dimension_numbers = #tpu.dot_dimension_numbers<[1], [0], [0], [1], [0, 0, 1, 1], [], []>} : vector<128x256xbf16>, vector<256x32xbf16>, vector<128x32xf32> -> vector<128x32xf32>
    %52 = arith.truncf %51 : vector<128x32xf32> to vector<128x32xbf16>
    %c0_14 = arith.constant 0 : index
    %c32 = arith.constant 32 : index
    %53 = vector.load %arg8[%c0_14, %c32] : memref<128x128xbf16, #tpu.memory_space<vmem>>, vector<128x32xbf16>
    tpu.vector_store %arg8[%c0_14, %c32], %52 {strides = array<i32>} : memref<128x128xbf16, #tpu.memory_space<vmem>>, vector<128x32xbf16>,
    %54 = vector.extract_strided_slice %6 {offsets = [0, 64], sizes = [128, 32], strides = [1, 1]} : vector<128x128xbf16> to vector<128x32xbf16>
    %55 = vector.extract_strided_slice %7 {offsets = [0, 64], sizes = [256, 32], strides = [1, 1]} : vector<256x128xbf16> to vector<256x32xbf16>
    %56 = vector.extract_strided_slice %8 {offsets = [0, 64], sizes = [256, 32], strides = [1, 1]} : vector<256x128xbf16> to vector<256x32xbf16>
    %cst_15 = arith.constant dense<0.000000e+00> : vector<128x256xf32>
    %57 = tpu.matmul %54, %55, %cst_15 {dimension_numbers = #tpu.dot_dimension_numbers<[1], [1], [0], [0], [0, 0, 1, 0], [], []>} : vector<128x32xbf16>, vector<256x32xbf16>, vector<128x256xf32> -> vector<128x256xf32>
    %cst_16 = arith.constant 0xFF800000 : f32
    %58 = vector.broadcast %cst_16 : f32 to vector<128x256xf32>
    %59 = arith.select %13, %57, %58 : vector<128x256xi1>, vector<128x256xf32>
    %cst_17 = arith.constant dense<0xFF800000> : vector<128xf32>
    %60 = vector.multi_reduction <maximumf>, %59, %cst_17 [1] : vector<128x256xf32> to vector<128xf32>
    %61 = vector.shape_cast %60 : vector<128xf32> to vector<128x1xf32>
    %62 = vector.broadcast %61 : vector<128x1xf32> to vector<128x256xf32>
    %63 = arith.subf %59, %62 : vector<128x256xf32>
    %64 = math.exp %63 : vector<128x256xf32>
    %cst_18 = arith.constant dense<0.000000e+00> : vector<128xf32>
    %65 = vector.multi_reduction <add>, %64, %cst_18 [1] : vector<128x256xf32> to vector<128xf32>
    %66 = vector.shape_cast %65 : vector<128xf32> to vector<128x1xf32>
    %67 = tpu.reciprocal %66 {approx = true} : vector<128x1xf32> -> vector<128x1xf32>
    %68 = vector.broadcast %67 : vector<128x1xf32> to vector<128x256xf32>
    %69 = arith.mulf %64, %68 : vector<128x256xf32>
    %70 = arith.truncf %69 : vector<128x256xf32> to vector<128x256xbf16>
    %cst_19 = arith.constant dense<0.000000e+00> : vector<128x32xf32>
    %71 = tpu.matmul %70, %56, %cst_19 {dimension_numbers = #tpu.dot_dimension_numbers<[1], [0], [0], [1], [0, 0, 1, 1], [], []>} : vector<128x256xbf16>, vector<256x32xbf16>, vector<128x32xf32> -> vector<128x32xf32>
    %72 = arith.truncf %71 : vector<128x32xf32> to vector<128x32xbf16>
    %c0_20 = arith.constant 0 : index
    %c64 = arith.constant 64 : index
    %73 = vector.load %arg8[%c0_20, %c64] : memref<128x128xbf16, #tpu.memory_space<vmem>>, vector<128x32xbf16>
    tpu.vector_store %arg8[%c0_20, %c64], %72 {strides = array<i32>} : memref<128x128xbf16, #tpu.memory_space<vmem>>, vector<128x32xbf16>,
    %74 = vector.extract_strided_slice %6 {offsets = [0, 96], sizes = [128, 32], strides = [1, 1]} : vector<128x128xbf16> to vector<128x32xbf16>
    %75 = vector.extract_strided_slice %7 {offsets = [0, 96], sizes = [256, 32], strides = [1, 1]} : vector<256x128xbf16> to vector<256x32xbf16>
    %76 = vector.extract_strided_slice %8 {offsets = [0, 96], sizes = [256, 32], strides = [1, 1]} : vector<256x128xbf16> to vector<256x32xbf16>
    %cst_21 = arith.constant dense<0.000000e+00> : vector<128x256xf32>
    %77 = tpu.matmul %74, %75, %cst_21 {dimension_numbers = #tpu.dot_dimension_numbers<[1], [1], [0], [0], [0, 0, 1, 0], [], []>} : vector<128x32xbf16>, vector<256x32xbf16>, vector<128x256xf32> -> vector<128x256xf32>
    %cst_22 = arith.constant 0xFF800000 : f32
    %78 = vector.broadcast %cst_22 : f32 to vector<128x256xf32>
    %79 = arith.select %13, %77, %78 : vector<128x256xi1>, vector<128x256xf32>
    %cst_23 = arith.constant dense<0xFF800000> : vector<128xf32>
    %80 = vector.multi_reduction <maximumf>, %79, %cst_23 [1] : vector<128x256xf32> to vector<128xf32>
    %81 = vector.shape_cast %80 : vector<128xf32> to vector<128x1xf32>
    %82 = vector.broadcast %81 : vector<128x1xf32> to vector<128x256xf32>
    %83 = arith.subf %79, %82 : vector<128x256xf32>
    %84 = math.exp %83 : vector<128x256xf32>
    %cst_24 = arith.constant dense<0.000000e+00> : vector<128xf32>
    %85 = vector.multi_reduction <add>, %84, %cst_24 [1] : vector<128x256xf32> to vector<128xf32>
    %86 = vector.shape_cast %85 : vector<128xf32> to vector<128x1xf32>
    %87 = tpu.reciprocal %86 {approx = true} : vector<128x1xf32> -> vector<128x1xf32>
    %88 = vector.broadcast %87 : vector<128x1xf32> to vector<128x256xf32>
    %89 = arith.mulf %84, %88 : vector<128x256xf32>
    %90 = arith.truncf %89 : vector<128x256xf32> to vector<128x256xbf16>
    %cst_25 = arith.constant dense<0.000000e+00> : vector<128x32xf32>
    %91 = tpu.matmul %90, %76, %cst_25 {dimension_numbers = #tpu.dot_dimension_numbers<[1], [0], [0], [1], [0, 0, 1, 1], [], []>} : vector<128x256xbf16>, vector<256x32xbf16>, vector<128x32xf32> -> vector<128x32xf32>
    %92 = arith.truncf %91 : vector<128x32xf32> to vector<128x32xbf16>
    %c0_26 = arith.constant 0 : index
    %c96 = arith.constant 96 : index
    %93 = vector.load %arg8[%c0_26, %c96] : memref<128x128xbf16, #tpu.memory_space<vmem>>, vector<128x32xbf16>
    tpu.vector_store %arg8[%c0_26, %c96], %92 {strides = array<i32>} : memref<128x128xbf16, #tpu.memory_space<vmem>>, vector<128x32xbf16>,
    %c0_27 = arith.constant 0 : index
    %c0_28 = arith.constant 0 : index
    %94 = vector.load %arg8[%c0_27, %c0_28] : memref<128x128xbf16, #tpu.memory_space<vmem>>, vector<128x128xbf16>
    %c0_29 = arith.constant 0 : index
    %c0_30 = arith.constant 0 : index
    %95 = vector.load %arg4[%c0_29, %c0_30] : memref<128x128xbf16, #tpu.memory_space<vmem>>, vector<128x128xbf16>
    %cst_31 = arith.constant dense<0.000000e+00> : vector<128x128xf32>
    %96 = tpu.matmul %94, %95, %cst_31 {dimension_numbers = #tpu.dot_dimension_numbers<[1], [0], [0], [1], [0, 0, 1, 1], [], []>} : vector<128x128xbf16>, vector<128x128xbf16>, vector<128x128xf32> -> vector<128x128xf32>
    %c0_32 = arith.constant 0 : index
    %c0_33 = arith.constant 0 : index
    %97 = vector.load %arg5[%c0_32, %c0_33] : memref<1x128xf32, #tpu.memory_space<vmem>>, vector<1x128xf32>
    %98 = vector.broadcast %97 : vector<1x128xf32> to vector<128x128xf32>
    %99 = arith.addf %96, %98 : vector<128x128xf32>
    %c0_34 = arith.constant 0 : index
    %c0_35 = arith.constant 0 : index
    %c0_36 = arith.constant 0 : index
    %100 = vector.load %arg6[%c0_34, %c0_35, %c0_36] : memref<1x128x128xf32, #tpu.memory_space<vmem>>, vector<1x128x128xf32>
    %101 = vector.shape_cast %100 : vector<1x128x128xf32> to vector<128x128xf32>
    %102 = vector.shape_cast %99 : vector<128x128xf32> to vector<1x128x128xf32>
    tpu.vector_store %arg6[%c0_34, %c0_35, %c0_36], %102 {strides = array<i32>} : memref<1x128x128xf32, #tpu.memory_space<vmem>>, vector<1x128x128xf32>,
    return
  }
  func.func @transform_0(%arg0: i32, %arg1: i32) -> (i32, i32, i32) {
    %c0_i32 = arith.constant 0 : i32
    %c0_i32_0 = arith.constant 0 : i32
    %c0_i32_1 = arith.constant 0 : i32
    return %arg0, %c0_i32, %c0_i32_0 : i32, i32, i32
  }
  func.func @transform_1(%arg0: i32, %arg1: i32) -> (i32, i32) {
    %c0_i32 = arith.constant 0 : i32
    %c0_i32_0 = arith.constant 0 : i32
    %c0_i32_1 = arith.constant 0 : i32
    return %c0_i32, %c0_i32_0 : i32, i32
  }
  func.func @transform_2(%arg0: i32, %arg1: i32) -> (i32, i32) {
    %c0_i32 = arith.constant 0 : i32
    %c0_i32_0 = arith.constant 0 : i32
    %c0_i32_1 = arith.constant 0 : i32
    return %c0_i32, %c0_i32_0 : i32, i32
  }
  func.func @transform_3(%arg0: i32, %arg1: i32) -> (i32, i32) {
    %c0_i32 = arith.constant 0 : i32
    %c0_i32_0 = arith.constant 0 : i32
    %c0_i32_1 = arith.constant 0 : i32
    return %c0_i32, %c0_i32_0 : i32, i32
  }
  func.func @transform_4(%arg0: i32, %arg1: i32) -> (i32, i32, i32) {
    %c0_i32 = arith.constant 0 : i32
    %c0_i32_0 = arith.constant 0 : i32
    return %arg0, %arg1, %c0_i32 : i32, i32, i32
  }
}

</mosaic_0001>

<bundles_post_ra>
// kernel: tpu_custom_call.1
= control target key start
LH: loop header
LB: loop body
LE: loop exit
PB: predicated region body
PF: predicated region fallthrough
CT: control target
= control target key end

     0   :  { %s9546_s0 = inlined_call_operand.hbm [shape: bf16[2,256,128], index: 0, kind: input, shape index: {}]   ;;  %s9547_s1 = inlined_call_operand.hbm [shape: bf16[128,384], index: 1, kind: input, shape index: {}]   ;;  %s9548_s2 = inlined_call_operand.hbm [shape: bf16[128,128], index: 2, kind: input, shape index: {}]   ;;  %s9549_s3 = inlined_call_operand.vmem [shape: f32[1,128], index: 3, kind: input, shape index: {}]   ;;  %s9550_s4 = inlined_call_operand.hbm [shape: f32[2,256,128], index: 4, kind: output, shape index: {}]  }
   0x1   :  { %9710 = sst [smem:[#allocation95_spill]] %s9547_s1 }
   0x2   :  { %9711 = sst [smem:[#allocation96_spill]] %s9548_s2 }
   0x3   :  { %9712 = sst [smem:[#allocation97_spill]] %s9550_s4 }
   0x4   :  { %9 = vsyncpa [#allocation5], 0 }
   0x5   :  { %11 = vsyncpa [#allocation5 + $0x1], 0 }
   0x6   :  { %12 = vsyncpa [#allocation8], 0 }
   0x7   :  { %13 = vsyncpa [#allocation6], 0 }
   0x8   :  { %15 = vsyncpa [#allocation6 + $0x1], 0  ;;  %s6898_s15 = smov 0   ;;  %s6900_s16 = smov 0  }
   0x9   :  { %s6902_s17 = smov 0   ;;  %s6904_s18 = smov 0  }
   0xa   :  { %s6906_s19 = smov 0   ;;  %s6908_s20 = smov 0  }
   0xb   :  { %s6910_s21 = smov 0   ;;  %s6912_s22 = smov 0  }
   0xc   :  { %s6914_s23 = smov 0   ;;  %s6916_s24 = smov 0  }
   0xd   :  { %s6918_s25 = smov 0  }
   0xe LB: > { %9713 = sst [smem:[#allocation14_spill]] %s6817_s15  ;;  %s5023_s26 = sadd.s32 4294967295, %s6857_s25   ;;  %s6857_s25 = sphi %s6918_s25, %s21_s25   ;;  %s6853_s24 = sphi %s6916_s24, %s10073_s24   ;;  %s6849_s23 = sphi %s6914_s23, %s10072_s23   ;;  %s6845_s22 = sphi %s6912_s22, %s10071_s22   ;;  %s6841_s21 = sphi %s6910_s21, %s10063_s21   ;;  %s6837_s20 = sphi %s6908_s20, %s10070_s20   ;;  %s6833_s19 = sphi %s6906_s19, %s10069_s19   ;;  %s6829_s18 = sphi %s6904_s18, %s10068_s18   ;;  %s6825_s17 = sphi %s6902_s17, %s10067_s17   ;;  %s6821_s16 = sphi %s6900_s16, %s10066_s16   ;;  %s6817_s15 = sphi %s6898_s15, %s10065_s15  }
   0xf   : > { %9714 = sst [smem:[#allocation15_spill]] %s6849_s23  ;;  %s5024_s27 = sadd.s32 4294967294, %s6857_s25  }
  0x10   : > { %p53_p0 = scmp.ne.s32.totalorder %s6833_s19, %s6829_s18  ;;  %p6954_p1 = scmp.eq.s32.totalorder %s5023_s26, 0 }
  0x11   : > { %p141_p2 = scmp.ne.s32.totalorder %s6825_s17, %s6821_s16  ;;  %p142_p4 = scmp.eq.s32.totalorder %s5023_s26, 3 }
  0x12   : > { %s9715_s28 = scalar_select %p6954_p1, 1, 0 }
  0x13   : > { %p6963_p3 = por %p6954_p1, %p53_p0  ;;  %p147_p5 = scmp.ne.s32.totalorder %s6821_s16, %s6817_s15 }
  0x14   : > { %p148_p6 = scmp.eq.s32.totalorder %s5024_s27, 3  ;;  %p6969_p7 = por %p142_p4, %p141_p2 }
  0x15   : > { %p5025_p8 = scmp.ge.s32.totalorder %s6857_s25, 1  ;;  %p155_p10 = scmp.lt.s32.totalorder %s6857_s25, 5 }
  0x16   : > { %s9717_s5 = scalar_select %p6969_p7, 1, 0 }
  0x17   : > { %p6974_p9 = por %p148_p6, %p147_p5  ;;  %p6979_p11 = pnand %p5025_p8, %p155_p10 }
  0x18   : > { %9718 = sst [smem:[#allocation16_spill]] %s9717_s5  ;;  %s6859_s8 = smov [#allocation7]  }
  0x19   : > { %s9719_s6 = scalar_select %p6974_p9, 1, 0 }
  0x1a   : > { %s167_s9 = sshll.u32 %s6859_s8, 4  ;;  %p5997_p12 = pneg %p6979_p11  ;;  %s168_s9 = int_to_ptr.vmem [resolvable:$true] %s167_s9 }
  0x1b   : > { %9720 = sst [smem:[#allocation17_spill]] %s9719_s6  ;;  %s6860_s11 = smov [#allocation9]  }
  0x1c   : > { %p6987_p13 = pnand %p5997_p12, %p6954_p1  ;;  %s180_s12 = sshll.u32 %s6860_s11, 4  ;;  %s181_s12 = int_to_ptr.vmem [resolvable:$true] %s180_s12 }
  0x1d   : > { %s6664_s13 = scalar_lea.vmem %s168_s9, 3072  ;;  %p6672_p6 = scmp.lt.s32.totalorder %s168_s9, %s168_s9 }
  0x1e   : > { %p6655_p0 = pneg %p6987_p13  ;;  %p6665_p2 = scmp.ne.s32.totalorder %s168_s9, %s6664_s13 }
  0x1f   : > { %p6673_p8 = scmp.lt.s32.totalorder %s6664_s13, %s6664_s13 }
  0x20   : > { %p6667_p4 = pnand %p6665_p2, %p6655_p0 }
  0x21   : > { %p6674_p10 = por %p6673_p8, %p6672_p6 }
  0x22   : > { %p6668_p5 = pneg %p6667_p4 }
  0x24   : > { %p6675_p12 = pnand %p6674_p10, %p6668_p5 }
  0x26   : > { %6678 = shalt.err (!%p6675_p12)
}
  0x27   : > { %s6861_s14 = smov 192   ;;  %s6862_s18 = smov 12  }
  0x28   : > { %s9723_s1 = sld [smem:[#allocation95_spill]]  ;;  %s6690_s8 = scalar_lea.vmem %s181_s12, 1024 }
  0x29   : > { %p6691_p9 = scmp.ne.s32.totalorder %s181_s12, %s6690_s8  ;;  %p6698_p7 = scmp.lt.s32.totalorder %s181_s12, %s181_s12 }
  0x2a   : > { %p6699_p1 = scmp.lt.s32.totalorder %s6690_s8, %s6690_s8 }
  0x2b   : > { %p6693_p2 = pnand %p6691_p9, %p6655_p0 }
  0x2c   : > { %p6700_p6 = por %p6699_p1, %p6698_p7 }
  0x2d   : > { %p6694_p4 = pneg %p6693_p2 }
  0x2e   : > { %6000 = dma.hbm_to_vmem [thread:$0]  (!%p6987_p13), %s9723_s1, 3072, %s168_s9, [#allocation8], %s6861_s14, %s6861_s14, %s6862_s18  }
  0x2f   : > { %p6701_p5 = pnand %p6700_p6, %p6694_p4 }
  0x31   : > { %6704 = shalt.err (!%p6701_p5)
}
  0x32   : > { %s9554_s11 = smov 64   ;;  %s9555_s9 = smov 4  }
  0x33   : > { %s9724_s2 = sld [smem:[#allocation96_spill]]  ;;  %s30_s18 = sadd.s32 1, %s6849_s23 }
  0x34   : > { %s33_s26 = sadd.s32 1, %s6853_s24  ;;  %p31_p1 = scmp.ge.s32.totalorder %s30_s18, 2 }
  0x35   : > { %s40_s27 = sadd.s32 1, %s6837_s20  ;;  %p47_p7 = scmp.ne.s32.totalorder %s6837_s20, %s6833_s19 }
  0x36   : > { %p48_p9 = scmp.eq.s32.totalorder %s6857_s25, 0  ;;  %s10075_s18 = smov (%p31_p1, %s30_s18), 0 }
  0x37   : > { %9725 = sst [smem:[#allocation18_spill]] %s10075_s18  ;;  %s10077_s26 = smov (!%p31_p1, %s33_s26), %s6853_s24 }
  0x38   : > { %p7021_p0 = por %p48_p9, %p47_p7  ;;  %s127_s8 = ssub.s32 %s6849_s23, %s10075_s18 }
  0x39   : > { %6003 = dma.hbm_to_vmem [thread:$0]  (!%p6987_p13), %s9724_s2, 1024, %s181_s12, [#allocation8], %s9554_s11, %s9554_s11, %s9555_s9  }
  0x3a   : > { %p35_p13 = scmp.ge.s32.totalorder %s10077_s26, 2  ;;  %p6014_p8 = scmp.lt.s32.totalorder %s6857_s25, 4 }
  0x3b   : > { %s197_s12 = sand.u32 1, %s6837_s20   ;;  %s5303_s13 = sshll.u32 %s6853_s24, 11 }
  0x3c   : > { %s10079_s26 = smov (%p35_p13, %s10077_s26), 0  ;;  %s5029_s14 = sshll.u32 %s197_s12, 7 }
  0x3d   : > { %s37_s11 = ssub.s32 %s6853_s24, %s10079_s26  ;;  %s207_s2 = scalar_lea.hbm %s9546_s0, %s5303_s13 }
  0x3e   : > { %p38_p10 = scmp.eq.s32.totalorder %s37_s11, 0  ;;  %s128_s9 = sor.u32 %s127_s8, %s37_s11 }
  0x3f   : > { %p129_p12 = scmp.eq.s32.totalorder %s128_s9, 0  ;;  %s9727_s18 = sadd.s32 1, %s6825_s17 }
  0x40   : > { %s7038_s6 = scalar_select %p38_p10, %s6837_s20, %s40_s27  }
  0x41   : > { %s7043_s23 = scalar_select %p129_p12, %s6825_s17, %s9727_s18  }
  0x42   : > { %s201_s15 = scalar_lea.vmem [#allocation4], %s5029_s14  ;;  %p7049_p2 = pnand %p6014_p8, %p7021_p0 }
  0x43   : > { %s208_s4 = sshll.u32 %s201_s15, 4  ;;  %s198_s11 = scalar_lea.sflag [#allocation5], %s197_s12  ;;  %s209_s4 = int_to_ptr.vmem [resolvable:$true] %s208_s4 }
  0x44   : > { %p6707_p4 = pneg %p7049_p2  ;;  %s6718_s1 = scalar_lea.vmem %s209_s4, 2048 }
  0x45   : > { %p6719_p6 = scmp.ne.s32.totalorder %s209_s4, %s6718_s1  ;;  %s6865_s29 = smov [#allocation4]  }
  0x46   : > { %s6723_s9 = sshll.u32 %s6865_s29, 4  ;;  %s6724_s9 = int_to_ptr.vmem [resolvable:$false] %s6723_s9 }
  0x47   : > { %p6721_p5 = pnand %p6719_p6, %p6707_p4  ;;  %s6725_s18 = scalar_lea.vmem %s6724_s9, 4096 }
  0x48   : > { %p6726_p7 = scmp.lt.s32.totalorder %s209_s4, %s6724_s9  ;;  %p6727_p9 = scmp.lt.s32.totalorder %s6725_s18, %s6718_s1 }
  0x49   : > { %p6722_p1 = pneg %p6721_p5 }
  0x4a   : > { %p6728_p13 = por %p6727_p9, %p6726_p7 }
  0x4c   : > { %p6729_p0 = pnand %p6728_p13, %p6722_p1 }
  0x4e   : > { %6732 = shalt.err (!%p6729_p0)
}
  0x4f   : > { %s9729_s15 = smov 4   ;;  %s9730_s27 = smov 64  }
  0x50   : > { %6007 = dma.hbm_to_vmem [thread:$0]  (!%p7049_p2), %s207_s2, 2048, %s209_s4, %s198_s11, %s9730_s27, %s9730_s27, %s9729_s15  }
  0x51   : > { %220 = sbr.rel (%p6979_p11) target bundleno = 2459 (0x99b), region = 36 }
  0x56   : > { %s222_s10 = sand.u32 1, %s6833_s19  }
  0x57   : > { %s5033_s8 = sshll.u32 %s222_s10, 7  ;;  %s223_s12 = scalar_lea.sflag [#allocation5], %s222_s10 }
  0x58   : > { %s7063_s13 = scalar_lea.vmem [#allocation4], %s5033_s8 }
  0x59   : > { %6804 = dma.done.wait (%p6963_p3), %s223_s12, 2048  }
  0x5a   : > { %6806 = vsyncadd (%p6963_p3), %s223_s12, 4294965248  ;;  %p9731_p8 = scmp.ne.s32.totalorder %s9715_s28, 0 }
  0x5c   : > { %6808 = dma.done.wait (%p9731_p8), [#allocation8], 4096  }
  0x5d   : > { %6810 = vsyncadd (%p9731_p8), [#allocation8], 4294963200  ;;  %s256_s2 = sand.u32 1, %s6821_s16   ;;  %p5037_p11 = scmp.ne.s32.totalorder %s6841_s21, 0 }
  0x5e   : > { %s5036_s4 = sshll.u32 %s256_s2, 7 }
  0x5f   : > { %s7076_s5 = scalar_lea.vmem [#allocation10], %s5036_s4  ;;  %264 = sbr.rel (%p5037_p11) target bundleno = 424 (0x1a8), region = 52 }
  0x64   : > { %v6118_v0 = vld [vmem:[#allocation7 + $0xac] ss:$12 sps:$4 sm:$0xff]   ;;  %v6120_v1 = vld [vmem:[#allocation7 + $0xa8] ss:$12 sps:$4 sm:$0xff]   ;;  %v6866_v2 = vmov 0   ;;  %v6142_v18 = vld [vmem:[%s7063_s13] sm:$0xff]  }
  0x65   : > { %585 = vmatprep.mubr.bf16.mxu0 %v6866_v2  ;;  %705 = vmatprep.mubr.bf16.mxu1 %v6866_v2  ;;  %v6121_v3 = vld [vmem:[#allocation7 + $0x94] ss:$12 sps:$4 sm:$0xff]   ;;  %v6123_v4 = vld [vmem:[#allocation7 + $0x90] ss:$12 sps:$4 sm:$0xff]   ;;  %v6126_v6 = vld [vmem:[#allocation7 + $0x78] ss:$12 sps:$4 sm:$0xff]  }
  0x66   : > { %553 = vmatprep.subr.bf16.mxu0 %v6118_v0  ;;  %5937 = vmatprep.subr.bf16.mxu1 %v6118_v0  ;;  %v6124_v5 = vld [vmem:[#allocation7 + $0x7c] ss:$12 sps:$4 sm:$0xff]   ;;  %v6127_v7 = vld [vmem:[#allocation7 + $0x64] ss:$12 sps:$4 sm:$0xff]   ;;  %v6129_v8 = vld [vmem:[#allocation7 + $0x60] ss:$12 sps:$4 sm:$0xff]  }
  0x67   : > { %554 = vmatpush1.bf16.msra.mxu0 %v6120_v1  ;;  %5945 = vmatpush1.bf16.msra.mxu1 %v6120_v1  ;;  %v6130_v9 = vld [vmem:[#allocation7 + $0x4c] ss:$12 sps:$4 sm:$0xff]   ;;  %v6132_v10 = vld [vmem:[#allocation7 + $0x48] ss:$12 sps:$4 sm:$0xff]   ;;  %v6135_v12 = vld [vmem:[#allocation7 + $0x30] ss:$12 sps:$4 sm:$0xff]  }
  0x68   : > { %555 = vmatprep.subr.bf16.mxu0 %v6121_v3  ;;  %5938 = vmatprep.subr.bf16.mxu1 %v6121_v3  ;;  %v6133_v11 = vld [vmem:[#allocation7 + $0x34] ss:$12 sps:$4 sm:$0xff]   ;;  %v6136_v13 = vld [vmem:[#allocation7 + $0x1c] ss:$12 sps:$4 sm:$0xff]   ;;  %v6138_v14 = vld [vmem:[#allocation7 + $0x18] ss:$12 sps:$4 sm:$0xff]  }
  0x69   : > { %v6139_v15 = vld [vmem:[#allocation7 + $0x4] ss:$12 sps:$4 sm:$0xff]   ;;  %v6141_v16 = vld [vmem:[#allocation7] ss:$12 sps:$4 sm:$0xff]   ;;  %v6149_v24 = vld [vmem:[#allocation7 + $0x68] ss:$12 sps:$4 sm:$0xff]  }
  0x6a   : > { %v6144_v17 = vld [vmem:[#allocation7 + $0xb0] ss:$12 sps:$4 sm:$0xff]   ;;  %v7083_v19 = vld [vmem:[%s7063_s13 + $0x60] sm:$0xff]   ;;  %v6146_v22 = vld [vmem:[%s7063_s13 + $0x8] sm:$0xff]  }
  0x6b   : > { %556 = vmatpush1.bf16.msra.mxu0 %v6123_v4  ;;  %5946 = vmatpush1.bf16.msra.mxu1 %v6123_v4  ;;  %v6145_v20 = vld [vmem:[#allocation7 + $0x98] ss:$12 sps:$4 sm:$0xff]   ;;  %v6148_v21 = vld [vmem:[#allocation7 + $0x80] ss:$12 sps:$4 sm:$0xff]   ;;  %v6152_v25 = vld [vmem:[#allocation7 + $0x50] ss:$12 sps:$4 sm:$0xff]  }
  0x6c   : > { %557 = vmatprep.subr.bf16.mxu0 %v6124_v5  ;;  %5939 = vmatprep.subr.bf16.mxu1 %v6124_v5  ;;  %v7090_v23 = vld [vmem:[%s7063_s13 + $0x68] sm:$0xff]   ;;  %v6150_v26 = vld [vmem:[%s7063_s13 + $0x10] sm:$0xff]   ;;  %v6153_v28 = vld [vmem:[#allocation7 + $0x38] ss:$12 sps:$4 sm:$0xff]  }
  0x6d   : > { %v6151_v27 = vld [vmem:[%s7063_s13 + $0x70] sm:$0xff]   ;;  %v6156_v29 = vld [vmem:[#allocation7 + $0x20] ss:$12 sps:$4 sm:$0xff]   ;;  %v6154_v30 = vld [vmem:[%s7063_s13 + $0x18] sm:$0xff]  }
  0x6e   : > { %v6155_v31 = vld [vmem:[%s7063_s13 + $0x78] sm:$0xff]   ;;  %v6157_v32 = vld [vmem:[#allocation7 + $0x8] ss:$12 sps:$4 sm:$0xff]   ;;  %v6158_v33 = vld [vmem:[%s7063_s13 + $0x20] sm:$0xff]  }
  0x6f   : > { %558 = vmatpush1.bf16.msra.mxu0 %v6126_v6  ;;  %5947 = vmatpush1.bf16.msra.mxu1 %v6126_v6  ;;  %v6159_v34 = vld [vmem:[%s7063_s13 + $0x28] sm:$0xff]   ;;  %v6160_v35 = vld [vmem:[%s7063_s13 + $0x30] sm:$0xff]   ;;  %v6161_v36 = vld [vmem:[%s7063_s13 + $0x38] sm:$0xff]  }
  0x70   : > { %559 = vmatprep.subr.bf16.mxu0 %v6127_v7  ;;  %5940 = vmatprep.subr.bf16.mxu1 %v6127_v7  ;;  %v6162_v37 = vld [vmem:[%s7063_s13 + $0x40] sm:$0xff]   ;;  %v6163_v38 = vld [vmem:[%s7063_s13 + $0x48] sm:$0xff]   ;;  %v6164_v39 = vld [vmem:[%s7063_s13 + $0x50] sm:$0xff]  }
  0x71   : > { %v6165_v40 = vld [vmem:[%s7063_s13 + $0x58] sm:$0xff]  }
  0x73   : > { %560 = vmatpush1.bf16.msra.mxu0 %v6129_v8  ;;  %5948 = vmatpush1.bf16.msra.mxu1 %v6129_v8 }
  0x74   : > { %561 = vmatprep.subr.bf16.mxu0 %v6130_v9  ;;  %5941 = vmatprep.subr.bf16.mxu1 %v6130_v9 }
  0x77   : > { %562 = vmatpush1.bf16.msra.mxu0 %v6132_v10  ;;  %5949 = vmatpush1.bf16.msra.mxu1 %v6132_v10 }
  0x78   : > { %563 = vmatprep.subr.bf16.mxu0 %v6133_v11  ;;  %5942 = vmatprep.subr.bf16.mxu1 %v6133_v11 }
  0x7b   : > { %564 = vmatpush1.bf16.msra.mxu0 %v6135_v12  ;;  %5950 = vmatpush1.bf16.msra.mxu1 %v6135_v12 }
  0x7c   : > { %565 = vmatprep.subr.bf16.mxu0 %v6136_v13  ;;  %5943 = vmatprep.subr.bf16.mxu1 %v6136_v13 }
  0x7f   : > { %566 = vmatpush1.bf16.msra.mxu0 %v6138_v14  ;;  %5951 = vmatpush1.bf16.msra.mxu1 %v6138_v14 }
  0x80   : > { %567 = vmatprep.subr.bf16.mxu0 %v6139_v15  ;;  %5944 = vmatprep.subr.bf16.mxu1 %v6139_v15 }
  0x83   : > { %568 = vmatpush1.bf16.msra.mxu0 %v6141_v16  ;;  %5952 = vmatpush1.bf16.msra.mxu1 %v6141_v16 }
  0x84   : > { %5857 = vmatprep.subr.bf16.mxu1 %v6144_v17 }
  0x86   : > { %586 = vmatmul.mubr.bf16.vlgmr.msra.gmra.mxu0 %v6142_v18  ;;  %706 = vmatmul.mubr.bf16.vlgmr.msra.gmra.mxu1 %v7083_v19 }
  0x87   : > { %5858 = vmatpush3.bf16.msra.mxu1 %v6144_v17  ;;  %595 = vmatprep.mubr.bf16.mxu0 %v6866_v2 }
  0x88   : > { %5859 = vmatprep.subr.bf16.mxu1 %v6145_v20  ;;  %715 = vmatprep.mubr.bf16.mxu1 %v6866_v2 }
  0x8b   : > { %5860 = vmatpush3.bf16.msra.mxu1 %v6145_v20 }
  0x8c   : > { %5861 = vmatprep.subr.bf16.mxu1 %v6148_v21 }
  0x8e   : > { %596 = vmatmul.mubr.bf16.gmra.mxu0 %v6146_v22  ;;  %716 = vmatmul.mubr.bf16.gmra.mxu1 %v7090_v23 }
  0x8f   : > { %5862 = vmatpush3.bf16.msra.mxu1 %v6148_v21  ;;  %605 = vmatprep.mubr.bf16.mxu0 %v6866_v2 }
  0x90   : > { %5863 = vmatprep.subr.bf16.mxu1 %v6149_v24  ;;  %725 = vmatprep.mubr.bf16.mxu1 %v6866_v2 }
  0x93   : > { %5864 = vmatpush3.bf16.msra.mxu1 %v6149_v24 }
  0x94   : > { %5865 = vmatprep.subr.bf16.mxu1 %v6152_v25 }
  0x96   : > { %606 = vmatmul.mubr.bf16.gmra.mxu0 %v6150_v26  ;;  %726 = vmatmul.mubr.bf16.gmra.mxu1 %v6151_v27 }
  0x97   : > { %5866 = vmatpush3.bf16.msra.mxu1 %v6152_v25  ;;  %615 = vmatprep.mubr.bf16.mxu0 %v6866_v2 }
  0x98   : > { %5867 = vmatprep.subr.bf16.mxu1 %v6153_v28  ;;  %735 = vmatprep.mubr.bf16.mxu1 %v6866_v2 }
  0x9b   : > { %5868 = vmatpush3.bf16.msra.mxu1 %v6153_v28 }
  0x9c   : > { %5869 = vmatprep.subr.bf16.mxu1 %v6156_v29 }
  0x9e   : > { %616 = vmatmul.mubr.bf16.gmra.mxu0 %v6154_v30  ;;  %736 = vmatmul.mubr.bf16.gmra.mxu1 %v6155_v31 }
  0x9f   : > { %5870 = vmatpush3.bf16.msra.mxu1 %v6156_v29  ;;  %625 = vmatprep.mubr.bf16.mxu0 %v6866_v2 }
  0xa0   : > { %5871 = vmatprep.subr.bf16.mxu1 %v6157_v32  ;;  %5873 = vmatprep.mubr.bf16.mxu1 %v6142_v18 }
  0xa3   : > { %5872 = vmatpush3.bf16.msra.mxu1 %v6157_v32 }
  0xa6   : > { %626 = vmatmul.mubr.bf16.gmra.mxu0 %v6158_v33  ;;  %5874 = vmatmul.mubr.bf16.vlgmr.msra.gmra.mxu1 %v6146_v22 }
  0xa7   : > { %635 = vmatprep.mubr.bf16.mxu0 %v6866_v2  ;;  %5877 = vmatprep.mubr.bf16.mxu1 %v6150_v26 }
  0xae   : > { %636 = vmatmul.mubr.bf16.gmra.mxu0 %v6159_v34  ;;  %5878 = vmatmul.mubr.bf16.gmra.mxu1 %v6154_v30 }
  0xaf   : > { %645 = vmatprep.mubr.bf16.mxu0 %v6866_v2  ;;  %5881 = vmatprep.mubr.bf16.mxu1 %v6158_v33 }
  0xb6   : > { %646 = vmatmul.mubr.bf16.gmra.mxu0 %v6160_v35  ;;  %5882 = vmatmul.mubr.bf16.gmra.mxu1 %v6159_v34 }
  0xb7   : > { %655 = vmatprep.mubr.bf16.mxu0 %v6866_v2  ;;  %5885 = vmatprep.mubr.bf16.mxu1 %v6160_v35 }
  0xbe   : > { %656 = vmatmul.mubr.bf16.gmra.mxu0 %v6161_v36  ;;  %5886 = vmatmul.mubr.bf16.gmra.mxu1 %v6161_v36 }
  0xbf   : > { %665 = vmatprep.mubr.bf16.mxu0 %v6866_v2  ;;  %5889 = vmatprep.mubr.bf16.mxu1 %v6162_v37 }
  0xc6   : > { %666 = vmatmul.mubr.bf16.gmra.mxu0 %v6162_v37  ;;  %5890 = vmatmul.mubr.bf16.gmra.mxu1 %v6163_v38 }
  0xc7   : > { %675 = vmatprep.mubr.bf16.mxu0 %v6866_v2  ;;  %5893 = vmatprep.mubr.bf16.mxu1 %v6164_v39 }
  0xce   : > { %676 = vmatmul.mubr.bf16.gmra.mxu0 %v6163_v38  ;;  %5894 = vmatmul.mubr.bf16.gmra.mxu1 %v6165_v40 }
  0xcf   : > { %685 = vmatprep.mubr.bf16.mxu0 %v6866_v2  ;;  %5897 = vmatprep.mubr.bf16.mxu1 %v7083_v19 }
  0xd6   : > { %686 = vmatmul.mubr.bf16.gmra.mxu0 %v6164_v39  ;;  %5898 = vmatmul.mubr.bf16.gmra.mxu1 %v7090_v23 }
  0xd7   : > { %695 = vmatprep.mubr.bf16.mxu0 %v6866_v2  ;;  %5901 = vmatprep.mubr.bf16.mxu1 %v6151_v27 }
  0xde   : > { %696 = vmatmul.mubr.bf16.gmra.mxu0 %v6165_v40  ;;  %5902 = vmatmul.mubr.bf16.gmra.mxu1 %v6155_v31 }
 0x146   : > { %v587_v41 = vpop.f32.mrf.mxu0  ;;  %v707_v42 = vpop.f32.mrf.mxu1 }
 0x148   : > { %v589_v43 = vpop.f32.mrf.mxu0  ;;  %v709_v44 = vpop.f32.mrf.mxu1 }
 0x149   : > { %v5304_v45 = vpack.c.bf16 %v589_v43, %v587_v41  ;;  %v5352_v46 = vpack.c.bf16 %v709_v44, %v707_v42 }
 0x14a   : > { %v591_v47 = vpop.f32.mrf.mxu0  ;;  %v711_v48 = vpop.f32.mrf.mxu1 }
 0x14b   : > { %1227 = vst [vmem:[#allocation2] sm:$0xff] %v5304_v45  ;;  %1275 = vst [vmem:[#allocation2 + $0x120] sm:$0xff] %v5352_v46 }
 0x14c   : > { %v593_v49 = vpop.f32.mrf.mxu0  ;;  %v713_v50 = vpop.f32.mrf.mxu1 }
 0x14d   : > { %v5306_v51 = vpack.c.bf16 %v593_v49, %v591_v47  ;;  %v5354_v52 = vpack.c.bf16 %v713_v50, %v711_v48 }
 0x14e   : > { %v597_v53 = vpop.f32.mrf.mxu0  ;;  %v717_v54 = vpop.f32.mrf.mxu1 }
 0x14f   : > { %1229 = vst [vmem:[#allocation2 + $0xc] sm:$0xff] %v5306_v51  ;;  %1277 = vst [vmem:[#allocation2 + $0x12c] sm:$0xff] %v5354_v52 }
 0x150   : > { %v599_v55 = vpop.f32.mrf.mxu0  ;;  %v719_v56 = vpop.f32.mrf.mxu1 }
 0x151   : > { %v5308_v57 = vpack.c.bf16 %v599_v55, %v597_v53  ;;  %v5356_v58 = vpack.c.bf16 %v719_v56, %v717_v54 }
 0x152   : > { %v601_v59 = vpop.f32.mrf.mxu0  ;;  %v721_v60 = vpop.f32.mrf.mxu1 }
 0x153   : > { %1231 = vst [vmem:[#allocation2 + $0x18] sm:$0xff] %v5308_v57  ;;  %1279 = vst [vmem:[#allocation2 + $0x138] sm:$0xff] %v5356_v58 }
 0x154   : > { %v603_v61 = vpop.f32.mrf.mxu0  ;;  %v723_v62 = vpop.f32.mrf.mxu1 }
 0x155   : > { %v5310_v63 = vpack.c.bf16 %v603_v61, %v601_v59  ;;  %v5358_v0 = vpack.c.bf16 %v723_v62, %v721_v60 }
 0x156   : > { %v607_v1 = vpop.f32.mrf.mxu0  ;;  %v727_v2 = vpop.f32.mrf.mxu1 }
 0x157   : > { %1233 = vst [vmem:[#allocation2 + $0x24] sm:$0xff] %v5310_v63  ;;  %1281 = vst [vmem:[#allocation2 + $0x144] sm:$0xff] %v5358_v0 }
 0x158   : > { %v609_v3 = vpop.f32.mrf.mxu0  ;;  %v729_v4 = vpop.f32.mrf.mxu1 }
 0x159   : > { %v5312_v5 = vpack.c.bf16 %v609_v3, %v607_v1  ;;  %v5360_v6 = vpack.c.bf16 %v729_v4, %v727_v2 }
 0x15a   : > { %v611_v7 = vpop.f32.mrf.mxu0  ;;  %v731_v8 = vpop.f32.mrf.mxu1 }
 0x15b   : > { %1235 = vst [vmem:[#allocation2 + $0x30] sm:$0xff] %v5312_v5  ;;  %1283 = vst [vmem:[#allocation2 + $0x150] sm:$0xff] %v5360_v6 }
 0x15c   : > { %v613_v9 = vpop.f32.mrf.mxu0  ;;  %v733_v10 = vpop.f32.mrf.mxu1 }
 0x15d   : > { %v5314_v11 = vpack.c.bf16 %v613_v9, %v611_v7  ;;  %v5362_v12 = vpack.c.bf16 %v733_v10, %v731_v8 }
 0x15e   : > { %v617_v13 = vpop.f32.mrf.mxu0  ;;  %v737_v14 = vpop.f32.mrf.mxu1 }
 0x15f   : > { %1237 = vst [vmem:[#allocation2 + $0x3c] sm:$0xff] %v5314_v11  ;;  %1285 = vst [vmem:[#allocation2 + $0x15c] sm:$0xff] %v5362_v12 }
 0x160   : > { %v619_v15 = vpop.f32.mrf.mxu0  ;;  %v739_v16 = vpop.f32.mrf.mxu1 }
 0x161   : > { %v5316_v17 = vpack.c.bf16 %v619_v15, %v617_v13  ;;  %v5364_v18 = vpack.c.bf16 %v739_v16, %v737_v14 }
 0x162   : > { %v621_v19 = vpop.f32.mrf.mxu0  ;;  %v741_v20 = vpop.f32.mrf.mxu1 }
 0x163   : > { %1239 = vst [vmem:[#allocation2 + $0x48] sm:$0xff] %v5316_v17  ;;  %1287 = vst [vmem:[#allocation2 + $0x168] sm:$0xff] %v5364_v18 }
 0x164   : > { %v623_v21 = vpop.f32.mrf.mxu0  ;;  %v743_v22 = vpop.f32.mrf.mxu1 }
 0x165   : > { %v5318_v23 = vpack.c.bf16 %v623_v21, %v621_v19  ;;  %v5366_v24 = vpack.c.bf16 %v743_v22, %v741_v20 }
 0x166   : > { %v627_v25 = vpop.f32.mrf.mxu0  ;;  %v5875_v26 = vpop.f32.mrf.mxu1 }
 0x167   : > { %1241 = vst [vmem:[#allocation2 + $0x54] sm:$0xff] %v5318_v23  ;;  %1289 = vst [vmem:[#allocation2 + $0x174] sm:$0xff] %v5366_v24  ;;  %v5309_v27 = vpack.c.bf16 %v5875_v26, %v5875_v26 }
 0x168   : > { %v629_v28 = vpop.f32.mrf.mxu0  ;;  %v780_v29 = vpop.f32.mrf.mxu1 }
 0x169   : > { %1232 = vst [vmem:[#allocation2 + $0x20] sm:$0xf] %v5309_v27  ;;  %v5320_v30 = vpack.c.bf16 %v629_v28, %v627_v25  ;;  %v5305_v31 = vpack.c.bf16 %v780_v29, %v780_v29 }
 0x16a   : > { %v631_v32 = vpop.f32.mrf.mxu0  ;;  %v5876_v33 = vpop.f32.mrf.mxu1 }
 0x16b   : > { %1243 = vst [vmem:[#allocation2 + $0x60] sm:$0xff] %v5320_v30  ;;  %1228 = vst [vmem:[#allocation2 + $0x8] sm:$0xf] %v5305_v31  ;;  %v5311_v34 = vpack.c.bf16 %v5876_v33, %v5876_v33 }
 0x16c   : > { %v633_v35 = vpop.f32.mrf.mxu0  ;;  %v783_v36 = vpop.f32.mrf.mxu1 }
 0x16d   : > { %1234 = vst [vmem:[#allocation2 + $0x2c] sm:$0xf] %v5311_v34  ;;  %v5322_v37 = vpack.c.bf16 %v633_v35, %v631_v32  ;;  %v5307_v38 = vpack.c.bf16 %v783_v36, %v783_v36 }
 0x16e   : > { %v637_v39 = vpop.f32.mrf.mxu0  ;;  %v5879_v40 = vpop.f32.mrf.mxu1 }
 0x16f   : > { %1245 = vst [vmem:[#allocation2 + $0x6c] sm:$0xff] %v5322_v37  ;;  %1230 = vst [vmem:[#allocation2 + $0x14] sm:$0xf] %v5307_v38  ;;  %v5317_v41 = vpack.c.bf16 %v5879_v40, %v5879_v40 }
 0x170   : > { %v639_v42 = vpop.f32.mrf.mxu0  ;;  %v796_v43 = vpop.f32.mrf.mxu1 }
 0x171   : > { %1240 = vst [vmem:[#allocation2 + $0x50] sm:$0xf] %v5317_v41  ;;  %v5324_v44 = vpack.c.bf16 %v639_v42, %v637_v39  ;;  %v5313_v45 = vpack.c.bf16 %v796_v43, %v796_v43 }
 0x172   : > { %v641_v46 = vpop.f32.mrf.mxu0  ;;  %v5880_v47 = vpop.f32.mrf.mxu1 }
 0x173   : > { %1247 = vst [vmem:[#allocation2 + $0x78] sm:$0xff] %v5324_v44  ;;  %1236 = vst [vmem:[#allocation2 + $0x38] sm:$0xf] %v5313_v45  ;;  %v5319_v48 = vpack.c.bf16 %v5880_v47, %v5880_v47 }
 0x174   : > { %v643_v49 = vpop.f32.mrf.mxu0  ;;  %v799_v50 = vpop.f32.mrf.mxu1 }
 0x175   : > { %1242 = vst [vmem:[#allocation2 + $0x5c] sm:$0xf] %v5319_v48  ;;  %v5326_v51 = vpack.c.bf16 %v643_v49, %v641_v46  ;;  %v5315_v52 = vpack.c.bf16 %v799_v50, %v799_v50 }
 0x176   : > { %v647_v53 = vpop.f32.mrf.mxu0  ;;  %v5883_v54 = vpop.f32.mrf.mxu1 }
 0x177   : > { %1249 = vst [vmem:[#allocation2 + $0x84] sm:$0xff] %v5326_v51  ;;  %1238 = vst [vmem:[#allocation2 + $0x44] sm:$0xf] %v5315_v52  ;;  %v5325_v55 = vpack.c.bf16 %v5883_v54, %v5883_v54 }
 0x178   : > { %v649_v56 = vpop.f32.mrf.mxu0  ;;  %v812_v57 = vpop.f32.mrf.mxu1 }
 0x179   : > { %1248 = vst [vmem:[#allocation2 + $0x80] sm:$0xf] %v5325_v55  ;;  %v5328_v58 = vpack.c.bf16 %v649_v56, %v647_v53  ;;  %v5321_v59 = vpack.c.bf16 %v812_v57, %v812_v57 }
 0x17a   : > { %v651_v60 = vpop.f32.mrf.mxu0  ;;  %v5884_v61 = vpop.f32.mrf.mxu1 }
 0x17b   : > { %1251 = vst [vmem:[#allocation2 + $0x90] sm:$0xff] %v5328_v58  ;;  %1244 = vst [vmem:[#allocation2 + $0x68] sm:$0xf] %v5321_v59  ;;  %v5327_v62 = vpack.c.bf16 %v5884_v61, %v5884_v61 }
 0x17c   : > { %v653_v63 = vpop.f32.mrf.mxu0  ;;  %v815_v0 = vpop.f32.mrf.mxu1 }
 0x17d   : > { %1250 = vst [vmem:[#allocation2 + $0x8c] sm:$0xf] %v5327_v62  ;;  %v5330_v1 = vpack.c.bf16 %v653_v63, %v651_v60  ;;  %v5323_v2 = vpack.c.bf16 %v815_v0, %v815_v0 }
 0x17e   : > { %v657_v3 = vpop.f32.mrf.mxu0  ;;  %v5887_v4 = vpop.f32.mrf.mxu1 }
 0x17f   : > { %1253 = vst [vmem:[#allocation2 + $0x9c] sm:$0xff] %v5330_v1  ;;  %1246 = vst [vmem:[#allocation2 + $0x74] sm:$0xf] %v5323_v2  ;;  %v5333_v5 = vpack.c.bf16 %v5887_v4, %v5887_v4 }
 0x180   : > { %v659_v6 = vpop.f32.mrf.mxu0  ;;  %v828_v7 = vpop.f32.mrf.mxu1 }
 0x181   : > { %1256 = vst [vmem:[#allocation2 + $0xb0] sm:$0xf] %v5333_v5  ;;  %v5332_v8 = vpack.c.bf16 %v659_v6, %v657_v3  ;;  %v5329_v9 = vpack.c.bf16 %v828_v7, %v828_v7 }
 0x182   : > { %v661_v10 = vpop.f32.mrf.mxu0  ;;  %v5888_v11 = vpop.f32.mrf.mxu1 }
 0x183   : > { %1255 = vst [vmem:[#allocation2 + $0xa8] sm:$0xff] %v5332_v8  ;;  %1252 = vst [vmem:[#allocation2 + $0x98] sm:$0xf] %v5329_v9  ;;  %v5335_v12 = vpack.c.bf16 %v5888_v11, %v5888_v11 }
 0x184   : > { %v663_v13 = vpop.f32.mrf.mxu0  ;;  %v831_v14 = vpop.f32.mrf.mxu1 }
 0x185   : > { %1258 = vst [vmem:[#allocation2 + $0xbc] sm:$0xf] %v5335_v12  ;;  %v5334_v15 = vpack.c.bf16 %v663_v13, %v661_v10  ;;  %v5331_v16 = vpack.c.bf16 %v831_v14, %v831_v14 }
 0x186   : > { %v667_v17 = vpop.f32.mrf.mxu0  ;;  %v5891_v18 = vpop.f32.mrf.mxu1 }
 0x187   : > { %1257 = vst [vmem:[#allocation2 + $0xb4] sm:$0xff] %v5334_v15  ;;  %1254 = vst [vmem:[#allocation2 + $0xa4] sm:$0xf] %v5331_v16  ;;  %v5341_v19 = vpack.c.bf16 %v5891_v18, %v5891_v18 }
 0x188   : > { %v669_v20 = vpop.f32.mrf.mxu0  ;;  %v844_v21 = vpop.f32.mrf.mxu1 }
 0x189   : > { %1264 = vst [vmem:[#allocation2 + $0xe0] sm:$0xf] %v5341_v19  ;;  %v5336_v22 = vpack.c.bf16 %v669_v20, %v667_v17  ;;  %v5337_v23 = vpack.c.bf16 %v844_v21, %v844_v21 }
 0x18a   : > { %v671_v24 = vpop.f32.mrf.mxu0  ;;  %v5892_v25 = vpop.f32.mrf.mxu1 }
 0x18b   : > { %1259 = vst [vmem:[#allocation2 + $0xc0] sm:$0xff] %v5336_v22  ;;  %1260 = vst [vmem:[#allocation2 + $0xc8] sm:$0xf] %v5337_v23  ;;  %v5343_v26 = vpack.c.bf16 %v5892_v25, %v5892_v25 }
 0x18c   : > { %v673_v27 = vpop.f32.mrf.mxu0  ;;  %v847_v28 = vpop.f32.mrf.mxu1 }
 0x18d   : > { %1266 = vst [vmem:[#allocation2 + $0xec] sm:$0xf] %v5343_v26  ;;  %v5338_v29 = vpack.c.bf16 %v673_v27, %v671_v24  ;;  %v5339_v30 = vpack.c.bf16 %v847_v28, %v847_v28 }
 0x18e   : > { %v677_v31 = vpop.f32.mrf.mxu0  ;;  %v5895_v32 = vpop.f32.mrf.mxu1 }
 0x18f   : > { %1261 = vst [vmem:[#allocation2 + $0xcc] sm:$0xff] %v5338_v29  ;;  %1262 = vst [vmem:[#allocation2 + $0xd4] sm:$0xf] %v5339_v30  ;;  %v5349_v33 = vpack.c.bf16 %v5895_v32, %v5895_v32 }
 0x190   : > { %v679_v34 = vpop.f32.mrf.mxu0  ;;  %v860_v35 = vpop.f32.mrf.mxu1 }
 0x191   : > { %1272 = vst [vmem:[#allocation2 + $0x110] sm:$0xf] %v5349_v33  ;;  %v5340_v36 = vpack.c.bf16 %v679_v34, %v677_v31  ;;  %v5345_v37 = vpack.c.bf16 %v860_v35, %v860_v35 }
 0x192   : > { %v681_v38 = vpop.f32.mrf.mxu0  ;;  %v5896_v39 = vpop.f32.mrf.mxu1 }
 0x193   : > { %1263 = vst [vmem:[#allocation2 + $0xd8] sm:$0xff] %v5340_v36  ;;  %1268 = vst [vmem:[#allocation2 + $0xf8] sm:$0xf] %v5345_v37  ;;  %v5351_v40 = vpack.c.bf16 %v5896_v39, %v5896_v39 }
 0x194   : > { %v683_v41 = vpop.f32.mrf.mxu0  ;;  %v863_v42 = vpop.f32.mrf.mxu1 }
 0x195   : > { %1274 = vst [vmem:[#allocation2 + $0x11c] sm:$0xf] %v5351_v40  ;;  %v5342_v43 = vpack.c.bf16 %v683_v41, %v681_v38  ;;  %v5347_v44 = vpack.c.bf16 %v863_v42, %v863_v42 }
 0x196   : > { %v687_v45 = vpop.f32.mrf.mxu0  ;;  %v5899_v46 = vpop.f32.mrf.mxu1 }
 0x197   : > { %1265 = vst [vmem:[#allocation2 + $0xe4] sm:$0xff] %v5342_v43  ;;  %1270 = vst [vmem:[#allocation2 + $0x104] sm:$0xf] %v5347_v44  ;;  %v5357_v47 = vpack.c.bf16 %v5899_v46, %v5899_v46 }
 0x198   : > { %v689_v48 = vpop.f32.mrf.mxu0  ;;  %v876_v49 = vpop.f32.mrf.mxu1 }
 0x199   : > { %1280 = vst [vmem:[#allocation2 + $0x140] sm:$0xf] %v5357_v47  ;;  %v5344_v50 = vpack.c.bf16 %v689_v48, %v687_v45  ;;  %v5353_v51 = vpack.c.bf16 %v876_v49, %v876_v49 }
 0x19a   : > { %v691_v52 = vpop.f32.mrf.mxu0  ;;  %v5900_v53 = vpop.f32.mrf.mxu1 }
 0x19b   : > { %1267 = vst [vmem:[#allocation2 + $0xf0] sm:$0xff] %v5344_v50  ;;  %1276 = vst [vmem:[#allocation2 + $0x128] sm:$0xf] %v5353_v51  ;;  %v5359_v54 = vpack.c.bf16 %v5900_v53, %v5900_v53 }
 0x19c   : > { %v693_v55 = vpop.f32.mrf.mxu0  ;;  %v879_v56 = vpop.f32.mrf.mxu1 }
 0x19d   : > { %1282 = vst [vmem:[#allocation2 + $0x14c] sm:$0xf] %v5359_v54  ;;  %v5346_v57 = vpack.c.bf16 %v693_v55, %v691_v52  ;;  %v5355_v58 = vpack.c.bf16 %v879_v56, %v879_v56 }
 0x19e   : > { %v697_v59 = vpop.f32.mrf.mxu0  ;;  %v5903_v60 = vpop.f32.mrf.mxu1 }
 0x19f   : > { %1269 = vst [vmem:[#allocation2 + $0xfc] sm:$0xff] %v5346_v57  ;;  %1278 = vst [vmem:[#allocation2 + $0x134] sm:$0xf] %v5355_v58  ;;  %v5365_v61 = vpack.c.bf16 %v5903_v60, %v5903_v60 }
 0x1a0   : > { %v699_v62 = vpop.f32.mrf.mxu0  ;;  %v892_v63 = vpop.f32.mrf.mxu1 }
 0x1a1   : > { %1288 = vst [vmem:[#allocation2 + $0x170] sm:$0xf] %v5365_v61  ;;  %v5348_v0 = vpack.c.bf16 %v699_v62, %v697_v59  ;;  %v5361_v1 = vpack.c.bf16 %v892_v63, %v892_v63 }
 0x1a2   : > { %v701_v2 = vpop.f32.mrf.mxu0  ;;  %v5904_v3 = vpop.f32.mrf.mxu1 }
 0x1a3   : > { %1271 = vst [vmem:[#allocation2 + $0x108] sm:$0xff] %v5348_v0  ;;  %1284 = vst [vmem:[#allocation2 + $0x158] sm:$0xf] %v5361_v1  ;;  %v5367_v4 = vpack.c.bf16 %v5904_v3, %v5904_v3 }
 0x1a4   : > { %v703_v5 = vpop.f32.mrf.mxu0  ;;  %v895_v6 = vpop.f32.mrf.mxu1 }
 0x1a5   : > { %1290 = vst [vmem:[#allocation2 + $0x17c] sm:$0xf] %v5367_v4  ;;  %v5350_v7 = vpack.c.bf16 %v703_v5, %v701_v2  ;;  %v5363_v8 = vpack.c.bf16 %v895_v6, %v895_v6 }
 0x1a7   : > { %1273 = vst [vmem:[#allocation2 + $0x114] sm:$0xff] %v5350_v7  ;;  %1286 = vst [vmem:[#allocation2 + $0x164] sm:$0xf] %v5363_v8 }
 0x1a8 PF: > { %v6166_v9 = vld [vmem:[#allocation2 + $0x16c] ss:$12 sps:$4 sm:$0xff]   ;;  %vm1566_vm0 = vcmask 261120   ;;  %v6168_v11 = vld [vmem:[#allocation2 + $0x154] ss:$12 sps:$4 sm:$0xff]   ;;  %s5142_s28 = sshll.u32 %s6841_s21, 7  ;;  %v1377_v58 = vlaneseq }
 0x1a9   : > { %5953 = vmatprep.subr.msk.bf16.mxu0 %vm1566_vm0, %v6166_v9  ;;  %v6167_v10 = vld [vmem:[#allocation2 + $0xac] ss:$12 sps:$4 sm:$0xff]   ;;  %v6169_v13 = vld [vmem:[#allocation2 + $0x94] ss:$12 sps:$4 sm:$0xff]   ;;  %s1292_s30 = sshra.s32 %s5142_s28, 3  ;;  %s6867_s14 = smov 96   ;;  %v7231_v61 = vstv %s5142_s28 }
 0x1aa   : > { %v1613_v12 = vsel %vm1566_vm0, %v6167_v10, 0  ;;  %v6170_v14 = vld [vmem:[#allocation2 + $0x13c] ss:$12 sps:$4 sm:$0xff]   ;;  %v1610_v15 = vsel %vm1566_vm0, %v6169_v13, 0  ;;  %s5368_s7 = smul.u32 12, %s1292_s30  ;;  %2344 = vrot.lane.b32.xlu0 %v6167_v10, %s6867_s14  ;;  %2360 = vrot.lane.b32.xlu1 %v6166_v9, %s6867_s14  ;;  %v7225_v59 = vshrl.u32 %v1377_v58, 7 }
 0x1ab   : > { %5458 = vmatpush3.bf16.xpose.msra.mxu0 %v1613_v12  ;;  %v6171_v16 = vld [vmem:[#allocation2 + $0x7c] ss:$12 sps:$4 sm:$0xff]   ;;  %v6172_v18 = vld [vmem:[#allocation2 + $0x124] ss:$12 sps:$4 sm:$0xff]   ;;  %v7137_v21 = vld [vmem:[#allocation2 + $0x4c] ss:$12 sps:$4 sm:$0xff]  }
 0x1ac   : > { %5954 = vmatprep.subr.msk.bf16.mxu0 %vm1566_vm0, %v6168_v11  ;;  %v1607_v17 = vsel %vm1566_vm0, %v6171_v16, 0  ;;  %s7132_s11 = scalar_lea.vmem [#allocation2], %s5368_s7  ;;  %v6173_v20 = vld [vmem:[#allocation2 + $0x64] ss:$12 sps:$4 sm:$0xff]   ;;  %v7141_v22 = vld [vmem:[#allocation2 + $0x34] ss:$12 sps:$4 sm:$0xff]   ;;  %v7235_v62 = vadd.s32 %v7231_v61, %v7225_v59 }
 0x1ad   : > { %v1604_v24 = vsel %vm1566_vm0, %v6173_v20, 0  ;;  %v1601_v25 = vsel %vm1566_vm0, %v7137_v21, 0  ;;  %v1598_v26 = vsel %vm1566_vm0, %v7141_v22, 0  ;;  %v7154_v27 = vld [vmem:[#allocation2 + $0xf4] ss:$12 sps:$4 sm:$0xff]   ;;  %v7227_v60 = vand.u32 127, %v1377_v58 }
 0x1ae   : > { %2342 = vrot.lane.b32.xlu0 %v6169_v13, %s6867_s14  ;;  %2358 = vrot.lane.b32.xlu1 %v6168_v11, %s6867_s14  ;;  %v6182_v19 = vld [vmem:[%s7132_s11] ss:$12 sps:$4 sm:$0xff]   ;;  %v7158_v28 = vld [vmem:[#allocation2 + $0xdc] ss:$12 sps:$4 sm:$0xff]   ;;  %v7166_v31 = vld [vmem:[#allocation2 + $0xc4] ss:$12 sps:$4 sm:$0xff]  }
 0x1af   : > { %5473 = vmatprep.mubr.msk.bf16.mxu0 %vm1566_vm0, %v6182_v19  ;;  %v7143_v23 = vld [vmem:[#allocation2 + $0x10c] ss:$12 sps:$4 sm:$0xff]   ;;  %v7162_v29 = vld [vmem:[#allocation2 + $0x1c] ss:$12 sps:$4 sm:$0xff]   ;;  %v7170_v32 = vld [vmem:[#allocation2 + $0x4] ss:$12 sps:$4 sm:$0xff]   ;;  %vm1414_vm1 = vcmp.le.s32.totalorder %v7227_v60, %v7235_v62 }
 0x1b0   : > { %v1595_v30 = vsel %vm1566_vm0, %v7162_v29, 0  ;;  %v1592_v33 = vsel %vm1566_vm0, %v7170_v32, 0  ;;  %v7175_v34 = vld [vmem:[%s7132_s11 + $0x18] ss:$12 sps:$4 sm:$0xff]   ;;  %v7181_v35 = vld [vmem:[%s7132_s11 + $0x30] ss:$12 sps:$4 sm:$0xff]  }
 0x1b1   : > { %v7188_v36 = vld [vmem:[%s7132_s11 + $0x48] ss:$12 sps:$4 sm:$0xff]   ;;  %v7195_v37 = vld [vmem:[%s7132_s11 + $0x60] ss:$12 sps:$4 sm:$0xff]   ;;  %v7202_v38 = vld [vmem:[%s7132_s11 + $0x78] ss:$12 sps:$4 sm:$0xff]  }
 0x1b2   : > { %2340 = vrot.lane.b32.xlu0 %v6171_v16, %s6867_s14  ;;  %2356 = vrot.lane.b32.xlu1 %v6170_v14, %s6867_s14  ;;  %v7209_v39 = vld [vmem:[%s7132_s11 + $0x90] ss:$12 sps:$4 sm:$0xff]   ;;  %v7216_v40 = vld [vmem:[%s7132_s11 + $0xa8] ss:$12 sps:$4 sm:$0xff]   ;;  %v6192_v43 = vld [vmem:[#allocation2 + $0x158] ss:$12 sps:$4 sm:$0xff]  }
 0x1b3   : > { %5460 = vmatpush3.bf16.xpose.msra.mxu0 %v1610_v15  ;;  %v6190_v41 = vld [vmem:[#allocation2 + $0x170] ss:$12 sps:$4 sm:$0xff]   ;;  %v6193_v44 = vld [vmem:[#allocation2 + $0x98] ss:$12 sps:$4 sm:$0xff]   ;;  %v6194_v45 = vld [vmem:[#allocation2 + $0x140] ss:$12 sps:$4 sm:$0xff]  }
 0x1b4   : > { %5955 = vmatprep.subr.msk.bf16.mxu0 %vm1566_vm0, %v6170_v14  ;;  %v6191_v42 = vld [vmem:[#allocation2 + $0xb0] ss:$12 sps:$4 sm:$0xff]   ;;  %5489 = vmatprep.subr.bf16.mxu1 %v6190_v41  ;;  %v6195_v46 = vld [vmem:[#allocation2 + $0x80] ss:$12 sps:$4 sm:$0xff]   ;;  %v6196_v47 = vld [vmem:[#allocation2 + $0x128] ss:$12 sps:$4 sm:$0xff]  }
 0x1b5   : > { %5490 = vmatpush3.bf16.msra.mxu1 %v6191_v42  ;;  %v6197_v48 = vld [vmem:[#allocation2 + $0x68] ss:$12 sps:$4 sm:$0xff]   ;;  %v6198_v49 = vld [vmem:[#allocation2 + $0x110] ss:$12 sps:$4 sm:$0xff]   ;;  %v6200_v51 = vld [vmem:[#allocation2 + $0xf8] ss:$12 sps:$4 sm:$0xff]  }
 0x1b6   : > { %2338 = vrot.lane.b32.xlu0 %v6173_v20, %s6867_s14  ;;  %2354 = vrot.lane.b32.xlu1 %v6172_v18, %s6867_s14  ;;  %v6199_v50 = vld [vmem:[#allocation2 + $0x50] ss:$12 sps:$4 sm:$0xff]   ;;  %v6201_v52 = vld [vmem:[#allocation2 + $0x38] ss:$12 sps:$4 sm:$0xff]   ;;  %v6202_v53 = vld [vmem:[#allocation2 + $0xe0] ss:$12 sps:$4 sm:$0xff]  }
 0x1b7   : > { %5491 = vmatprep.subr.bf16.mxu1 %v6192_v43  ;;  %v6203_v54 = vld [vmem:[#allocation2 + $0x20] ss:$12 sps:$4 sm:$0xff]   ;;  %v6204_v55 = vld [vmem:[#allocation2 + $0xc8] ss:$12 sps:$4 sm:$0xff]   ;;  %9732 = vst [vmem:[#allocation19_spill] sm:$0xff] %v7227_v60  ;;  %9733 = vst [vmem:[#allocation20_spill] sm:$0xff] %v7235_v62 }
 0x1b8   : > { %v6205_v56 = vld [vmem:[#allocation2 + $0x8] ss:$12 sps:$4 sm:$0xff]   ;;  %v7238_v63 = vadd.s32 128, %v7227_v60  ;;  %v1379_v0 = vadd.s32 8, %v7225_v59  ;;  %v1380_v1 = vadd.s32 16, %v7225_v59  ;;  %v1381_v10 = vadd.s32 24, %v7225_v59 }
 0x1b9   : > { %5492 = vmatpush3.bf16.msra.mxu1 %v6193_v44  ;;  %s6868_s1 = smov 64   ;;  %s6869_s29 = smov 32  }
 0x1ba   : > { %5493 = vmatprep.subr.bf16.mxu1 %v6194_v45  ;;  %9734 = vst [vmem:[#allocation21_spill] sm:$0xff] %v7238_v63  ;;  %vm1415_vm2 = vcmp.le.s32.totalorder %v7238_v63, %v7235_v62  ;;  %v7247_v3 = vadd.s32 %v7231_v61, %v1379_v0  ;;  %v7260_v7 = vadd.s32 %v7231_v61, %v1380_v1  ;;  %s5298_s15 = sshll.u32 %s6841_s21, 4  ;;  %s5299_s27 = sshll.u32 %s6845_s22, 5 }
 0x1bb   : > { %5462 = vmatpush3.bf16.xpose.msra.mxu0 %v1607_v17  ;;  %v7286_v16 = vadd.s32 %v7231_v61, %v1381_v10  ;;  %v1382_v17 = vadd.s32 32, %v7225_v59  ;;  %s4912_s10 = sadd.s32 %s5299_s27, %s5298_s15  ;;  %s10056_s8 = sld [smem:[#allocation16_spill]] }
 0x1bc   : > { %5956 = vmatprep.subr.msk.bf16.mxu0 %vm1566_vm0, %v6172_v18  ;;  %9735 = vst [vmem:[#allocation22_spill] sm:$0xff] %v7247_v3  ;;  %9736 = vst [vmem:[#allocation23_spill] sm:$0xff] %v7260_v7  ;;  %vm1416_vm3 = vcmp.le.s32.totalorder %v7227_v60, %v7247_v3  ;;  %vm1417_vm4 = vcmp.le.s32.totalorder %v7238_v63, %v7247_v3  ;;  %vm1418_vm5 = vcmp.le.s32.totalorder %v7227_v60, %v7260_v7  ;;  %s5300_s12 = sshll.u32 %s4912_s10, 7  ;;  %s4915_s13 = sshll.u32 %s7076_s5, 4  ;;  %s9480_s13 = int_to_ptr.vmem [resolvable:$true] %s4915_s13 }
 0x1bd   : > { %5494 = vmatpush3.bf16.msra.mxu1 %v6195_v46  ;;  %vm1419_vm6 = vcmp.le.s32.totalorder %v7238_v63, %v7260_v7  ;;  %9737 = vst [vmem:[#allocation24_spill] sm:$0xff] %v7286_v16  ;;  %vm1420_vm7 = vcmp.le.s32.totalorder %v7227_v60, %v7286_v16  ;;  %vm1421_vm8 = vcmp.le.s32.totalorder %v7238_v63, %v7286_v16  ;;  %v1384_v46 = vadd.s32 48, %v7225_v59  ;;  %s10057_s21 = sld [smem:[#allocation97_spill]]  ;;  %s9486_s22 = scalar_lea.sflag [#allocation6], %s256_s2 }
 0x1be   : > { %5495 = vmatprep.subr.bf16.mxu1 %v6196_v47 }
 0x1c1   : > { %5496 = vmatpush3.bf16.msra.mxu1 %v6197_v48  ;;  %p10059_p10 = scmp.ne.s32.totalorder %s10056_s8, 0 }
 0x1c2   : > { %5497 = vmatprep.subr.bf16.mxu1 %v6198_v49 }
 0x1c3   : > { %5464 = vmatpush3.bf16.xpose.msra.mxu0 %v1604_v24  ;;  %v1383_v24 = vadd.s32 40, %v7225_v59  ;;  %s10058_s30 = smov %s10057_s21  ;;  %s9478_s7 = scalar_lea.hbm %s10057_s21, %s5300_s12 }
 0x1c4   : > { %5957 = vmatprep.subr.msk.bf16.mxu0 %vm1566_vm0, %v7143_v23 }
 0x1c5   : > { %5498 = vmatpush3.bf16.msra.mxu1 %v6199_v50  ;;  %v7320_v43 = vadd.s32 %v7231_v61, %v1383_v24 }
 0x1c6   : > { %5499 = vmatprep.subr.bf16.mxu1 %v6200_v51 }
 0x1c7   : > { %9739 = vst [vmem:[#allocation26_spill] sm:$0xff] %v7320_v43  ;;  %vm9624_vm11 = vcmp.le.s32.totalorder %v7227_v60, %v7320_v43  ;;  %vm9563_vm12 = vcmp.le.s32.totalorder %v7238_v63, %v7320_v43 }
 0x1c9   : > { %5500 = vmatpush3.bf16.msra.mxu1 %v6201_v52  ;;  %v7346_v52 = vadd.s32 %v7231_v61, %v1384_v46 }
 0x1ca   : > { %5501 = vmatprep.subr.bf16.mxu1 %v6202_v53  ;;  %v1385_v53 = vadd.s32 56, %v7225_v59 }
 0x1cb   : > { %5466 = vmatpush3.bf16.xpose.msra.mxu0 %v1601_v25  ;;  %9740 = vst [vmem:[#allocation27_spill] sm:$0xff] %v7346_v52  ;;  %vm9565_vm13 = vcmp.le.s32.totalorder %v7227_v60, %v7346_v52  ;;  %vm9564_vm14 = vcmp.le.s32.totalorder %v7238_v63, %v7346_v52 }
 0x1cc   : > { %5958 = vmatprep.subr.msk.bf16.mxu0 %vm1566_vm0, %v7154_v27  ;;  %v7367_v1 = vadd.s32 %v7231_v61, %v1385_v53 }
 0x1cd   : > { %5502 = vmatpush3.bf16.msra.mxu1 %v6203_v54 }
 0x1ce   : > { %5503 = vmatprep.subr.bf16.mxu1 %v6204_v55  ;;  %9741 = vst [vmem:[#allocation28_spill] sm:$0xff] %v7367_v1  ;;  %vm9567_vm15 = vcmp.le.s32.totalorder %v7227_v60, %v7367_v1 }
 0x1d1   : > { %5504 = vmatpush3.bf16.msra.mxu1 %v6205_v56 }
 0x1d3   : > { %5468 = vmatpush3.bf16.xpose.msra.mxu0 %v1598_v26 }
 0x1d4   : > { %5959 = vmatprep.subr.msk.bf16.mxu0 %vm1566_vm0, %v7158_v28 }
 0x1db   : > { %5470 = vmatpush3.bf16.xpose.msra.mxu0 %v1595_v30  ;;  %v7307_v30 = vadd.s32 %v7231_v61, %v1382_v17 }
 0x1dc   : > { %5960 = vmatprep.subr.msk.bf16.mxu0 %vm1566_vm0, %v7166_v31 }
 0x1dd   : > { %9738 = vst [vmem:[#allocation25_spill] sm:$0xff] %v7307_v30  ;;  %vm1422_vm9 = vcmp.le.s32.totalorder %v7227_v60, %v7307_v30  ;;  %vm1423_vm10 = vcmp.le.s32.totalorder %v7238_v63, %v7307_v30 }
 0x1e3   : > { %5472 = vmatpush3.bf16.xpose.msra.mxu0 %v1592_v33 }
 0x1ea   : > { %5474 = vmatmul.mubr.msk.bf16.vlgmr.msra.gmra.mxu0 %vm1566_vm0, %v6182_v19 }
 0x1eb   : > { %5475 = vmatprep.mubr.msk.bf16.mxu0 %vm1566_vm0, %v7175_v34 }
 0x1f2   : > { %5476 = vmatmul.mubr.msk.bf16.gmra.mxu0 %vm1566_vm0, %v7175_v34 }
 0x1f3   : > { %5477 = vmatprep.mubr.msk.bf16.mxu0 %vm1566_vm0, %v7181_v35 }
 0x1fa   : > { %5478 = vmatmul.mubr.msk.bf16.gmra.mxu0 %vm1566_vm0, %v7181_v35 }
 0x1fb   : > { %5479 = vmatprep.mubr.msk.bf16.mxu0 %vm1566_vm0, %v7188_v36 }
 0x202   : > { %5480 = vmatmul.mubr.msk.bf16.gmra.mxu0 %vm1566_vm0, %v7188_v36 }
 0x203   : > { %5481 = vmatprep.mubr.msk.bf16.mxu0 %vm1566_vm0, %v7195_v37 }
 0x20a   : > { %5482 = vmatmul.mubr.msk.bf16.gmra.mxu0 %vm1566_vm0, %v7195_v37 }
 0x20b   : > { %5483 = vmatprep.mubr.msk.bf16.mxu0 %vm1566_vm0, %v7202_v38 }
 0x212   : > { %5484 = vmatmul.mubr.msk.bf16.gmra.mxu0 %vm1566_vm0, %v7202_v38 }
 0x213   : > { %5485 = vmatprep.mubr.msk.bf16.mxu0 %vm1566_vm0, %v7209_v39 }
 0x21a   : > { %5486 = vmatmul.mubr.msk.bf16.gmra.mxu0 %vm1566_vm0, %v7209_v39 }
 0x21b   : > { %5487 = vmatprep.mubr.msk.bf16.mxu0 %vm1566_vm0, %v7216_v40 }
 0x21c   : > { %v2361_v57 = vpop.permute.xlu1 %2360 }
 0x21d   : > { %5961 = vmatprep.subr.msk.bf16.mxu1 %vm1566_vm0, %v2361_v57  ;;  %v1386_v57 = vadd.s32 64, %v7225_v59 }
 0x222   : > { %5488 = vmatmul.mubr.msk.bf16.gmra.mxu0 %vm1566_vm0, %v7216_v40 }
 0x2aa   : > { %v1673_v2 = vpop.f32.mrf.mxu0 }
 0x2ab   : > { %v7252_v5 = vsel %vm1414_vm1, %v1673_v2, -inf }
 0x2ac   : > { %v1675_v4 = vpop.f32.mrf.mxu0 }
 0x2ad   : > { %v7257_v6 = vsel %vm1415_vm2, %v1675_v4, -inf }
 0x2ae   : > { %v1677_v8 = vpop.f32.mrf.mxu0  ;;  %v1784_v9 = vmax.f32 %v7252_v5, %v7257_v6 }
 0x2af   : > { %v7272_v12 = vsel %vm1416_vm3, %v1677_v8, -inf }
 0x2b0   : > { %1785 = vmax.xlane.f32.xlu0 %v1784_v9  ;;  %v1679_v11 = vpop.f32.mrf.mxu0  ;;  %v7380_v9 = vadd.s32 %v7231_v61, %v1386_v57 }
 0x2b1   : > { %v7277_v13 = vsel %vm1417_vm4, %v1679_v11, -inf }
 0x2b2   : > { %v1683_v14 = vpop.f32.mrf.mxu0  ;;  %v1787_v15 = vmax.f32 %v7272_v12, %v7277_v13  ;;  %9742 = vst [vmem:[#allocation29_spill] sm:$0xff] %v7380_v9 }
 0x2b3   : > { %v7292_v19 = vsel %vm1418_vm5, %v1683_v14, -inf  ;;  %v1387_v14 = vadd.s32 72, %v7225_v59 }
 0x2b4   : > { %1788 = vmax.xlane.f32.xlu0 %v1787_v15  ;;  %v1685_v18 = vpop.f32.mrf.mxu0 }
 0x2b5   : > { %v7297_v20 = vsel %vm1419_vm6, %v1685_v18, -inf }
 0x2b6   : > { %v1687_v25 = vpop.f32.mrf.mxu0  ;;  %v1790_v26 = vmax.f32 %v7292_v19, %v7297_v20 }
 0x2b7   : > { %v7312_v41 = vsel %vm1420_vm7, %v1687_v25, -inf }
 0x2b8   : > { %1791 = vmax.xlane.f32.xlu1 %v1790_v26  ;;  %v1689_v33 = vpop.f32.mrf.mxu0  ;;  %v7406_v26 = vadd.s32 %v7231_v61, %v1387_v14 }
 0x2b9   : > { %v7317_v42 = vsel %vm1421_vm8, %v1689_v33, -inf  ;;  %v1388_v33 = vadd.s32 80, %v7225_v59 }
 0x2ba   : > { %v1693_v44 = vpop.f32.mrf.mxu0  ;;  %v1793_v45 = vmax.f32 %v7312_v41, %v7317_v42  ;;  %9743 = vst [vmem:[#allocation30_spill] sm:$0xff] %v7406_v26 }
 0x2bb   : > { %v7332_v48 = vsel %vm1422_vm9, %v1693_v44, -inf  ;;  %v7427_v53 = vadd.s32 %v7231_v61, %v1388_v33 }
 0x2bc   : > { %1794 = vmax.xlane.f32.xlu1 %v1793_v45  ;;  %v1695_v47 = vpop.f32.mrf.mxu0 }
 0x2bd   : > { %v7337_v49 = vsel %vm1423_vm10, %v1695_v47, -inf  ;;  %v1389_v47 = vadd.s32 88, %v7225_v59  ;;  %9744 = vst [vmem:[#allocation31_spill] sm:$0xff] %v7427_v53 }
 0x2be   : > { %v1697_v50 = vpop.f32.mrf.mxu0  ;;  %v1796_v51 = vmax.f32 %v7332_v48, %v7337_v49 }
 0x2bf   : > { %v7352_v55 = vsel %vm9624_vm11, %v1697_v50, -inf }
 0x2c0   : > { %1797 = vmax.xlane.f32.xlu0 %v1796_v51  ;;  %v1699_v54 = vpop.f32.mrf.mxu0 }
 0x2c1   : > { %v7357_v56 = vsel %vm9563_vm12, %v1699_v54, -inf  ;;  %vm9566_vm12 = vcmp.le.s32.totalorder %v7238_v63, %v7367_v1 }
 0x2c2   : > { %v1703_v58 = vpop.f32.mrf.mxu0  ;;  %v1799_v0 = vmax.f32 %v7352_v55, %v7357_v56 }
 0x2c3   : > { %v7372_v4 = vsel %vm9565_vm13, %v1703_v58, -inf  ;;  %vm9568_vm13 = vcmp.le.s32.totalorder %v7238_v63, %v7380_v9 }
 0x2c4   : > { %1800 = vmax.xlane.f32.xlu1 %v1799_v0  ;;  %v1705_v2 = vpop.f32.mrf.mxu0  ;;  %v7440_v0 = vadd.s32 %v7231_v61, %v1389_v47  ;;  %v1391_v47 = vadd.s32 104, %v7225_v59 }
 0x2c5   : > { %v7377_v8 = vsel %vm9564_vm14, %v1705_v2, -inf  ;;  %vm9569_vm14 = vcmp.le.s32.totalorder %v7227_v60, %v7380_v9 }
 0x2c6   : > { %v1707_v10 = vpop.f32.mrf.mxu0  ;;  %v1802_v11 = vmax.f32 %v7372_v4, %v7377_v8  ;;  %9745 = vst [vmem:[#allocation32_spill] sm:$0xff] %v7440_v0 }
 0x2c7   : > { %v7392_v17 = vsel %vm9567_vm15, %v1707_v10, -inf  ;;  %vm9570_vm15 = vcmp.le.s32.totalorder %v7238_v63, %v7406_v26 }
 0x2c8   : > { %1803 = vmax.xlane.f32.xlu0 %v1802_v11  ;;  %v1709_v15 = vpop.f32.mrf.mxu0  ;;  %v1390_v11 = vadd.s32 96, %v7225_v59 }
 0x2c9   : > { %v7397_v18 = vsel %vm9566_vm12, %v1709_v15, -inf  ;;  %vm9571_vm12 = vcmp.le.s32.totalorder %v7227_v60, %v7406_v26 }
 0x2ca   : > { %v1713_v24 = vpop.f32.mrf.mxu0  ;;  %v1805_v25 = vmax.f32 %v7392_v17, %v7397_v18 }
 0x2cb   : > { %v7412_v45 = vsel %vm9569_vm14, %v1713_v24, -inf  ;;  %vm9572_vm14 = vcmp.le.s32.totalorder %v7238_v63, %v7427_v53 }
 0x2cc   : > { %1806 = vmax.xlane.f32.xlu1 %v1805_v25  ;;  %v1715_v44 = vpop.f32.mrf.mxu0 }
 0x2cd   : > { %v7417_v46 = vsel %vm9568_vm13, %v1715_v44, -inf  ;;  %vm9573_vm13 = vcmp.le.s32.totalorder %v7227_v60, %v7427_v53  ;;  %v7466_v44 = vadd.s32 %v7231_v61, %v1390_v11 }
 0x2ce   : > { %v1717_v50 = vpop.f32.mrf.mxu0  ;;  %v1808_v51 = vmax.f32 %v7412_v45, %v7417_v46 }
 0x2cf   : > { %v7432_v57 = vsel %vm9571_vm12, %v1717_v50, -inf  ;;  %vm9576_vm12 = vcmp.le.s32.totalorder %v7238_v63, %v7440_v0  ;;  %9746 = vst [vmem:[#allocation33_spill] sm:$0xff] %v7466_v44 }
 0x2d0   : > { %1809 = vmax.xlane.f32.xlu0 %v1808_v51  ;;  %v1719_v54 = vpop.f32.mrf.mxu0  ;;  %v1392_v51 = vadd.s32 112, %v7225_v59 }
 0x2d1   : > { %v7437_v58 = vsel %vm9570_vm15, %v1719_v54, -inf  ;;  %vm9577_vm15 = vcmp.le.s32.totalorder %v7227_v60, %v7440_v0 }
 0x2d2   : > { %v1723_v2 = vpop.f32.mrf.mxu0  ;;  %v1811_v10 = vmax.f32 %v7432_v57, %v7437_v58 }
 0x2d3   : > { %v7452_v15 = vsel %vm9573_vm13, %v1723_v2, -inf  ;;  %vm9583_vm13 = vcmp.le.s32.totalorder %v7238_v63, %v7466_v44 }
 0x2d4   : > { %1812 = vmax.xlane.f32.xlu1 %v1811_v10  ;;  %v1725_v14 = vpop.f32.mrf.mxu0 }
 0x2d5   : > { %v7457_v24 = vsel %vm9572_vm14, %v1725_v14, -inf  ;;  %vm9578_vm14 = vcmp.le.s32.totalorder %v7227_v60, %v7466_v44  ;;  %v7487_v14 = vadd.s32 %v7231_v61, %v1391_v47 }
 0x2d6   : > { %v1727_v25 = vpop.f32.mrf.mxu0  ;;  %v1814_v33 = vmax.f32 %v7452_v15, %v7457_v24 }
 0x2d7   : > { %v7473_v54 = vsel %vm9577_vm15, %v1727_v25, -inf  ;;  %9747 = vst [vmem:[#allocation34_spill] sm:$0xff] %v7487_v14  ;;  %vm1441_vm15 = vcmp.le.s32.totalorder %v7238_v63, %v7487_v14 }
 0x2d8   : > { %1815 = vmax.xlane.f32.xlu0 %v1814_v33  ;;  %v1729_v50 = vpop.f32.mrf.mxu0  ;;  %v7490_v33 = vadd.s32 %v7231_v61, %v1392_v51 }
 0x2d9   : > { %v7478_v2 = vsel %vm9576_vm12, %v1729_v50, -inf  ;;  %vm1440_vm12 = vcmp.le.s32.totalorder %v7227_v60, %v7487_v14 }
 0x2da   : > { %v1733_v10 = vpop.f32.mrf.mxu0  ;;  %v1817_v11 = vmax.f32 %v7473_v54, %v7478_v2  ;;  %9748 = vst [vmem:[#allocation35_spill] sm:$0xff] %v7490_v33 }
 0x2db   : > { %v7495_v50 = vsel %vm9578_vm14, %v1733_v10, -inf  ;;  %vm9587_vm14 = vcmp.le.s32.totalorder %v7227_v60, %v7490_v33 }
 0x2dc   : > { %1818 = vmax.xlane.f32.xlu1 %v1817_v11  ;;  %v1735_v25 = vpop.f32.mrf.mxu0 }
 0x2dd   : > { %v7500_v0 = vsel %vm9583_vm13, %v1735_v25, -inf  ;;  %vm9586_vm13 = vcmp.le.s32.totalorder %v7238_v63, %v7490_v33 }
 0x2de   : > { %v1737_v47 = vpop.f32.mrf.mxu0  ;;  %v1820_v11 = vmax.f32 %v7495_v50, %v7500_v0 }
 0x2df   : > { %v7513_v10 = vsel %vm1440_vm12, %v1737_v47, -inf }
 0x2e0   : > { %1821 = vmax.xlane.f32.xlu0 %v1820_v11  ;;  %v1739_v51 = vpop.f32.mrf.mxu0 }
 0x2e1   : > { %v7518_v25 = vsel %vm1441_vm15, %v1739_v51, -inf }
 0x2e2   : > { %v1743_v44 = vpop.f32.mrf.mxu0  ;;  %v1823_v53 = vmax.f32 %v7513_v10, %v7518_v25 }
 0x2e3   : > { %v7527_v11 = vsel %vm9587_vm14, %v1743_v44, -inf }
 0x2e4   : > { %1824 = vmax.xlane.f32.xlu1 %v1823_v53  ;;  %v1745_v47 = vpop.f32.mrf.mxu0  ;;  %v1393_v53 = vadd.s32 120, %v7225_v59  ;;  %v7562_v59 = vpop.permute.xlu0 %2344 }
 0x2e5   : > { %v7532_v14 = vsel %vm9586_vm13, %v1745_v47, -inf }
 0x2e6   : > { %v1826_v51 = vmax.f32 %v7527_v11, %v7532_v14  ;;  %v7544_v44 = vadd.s32 %v7231_v61, %v1393_v53  ;;  %v1747_v47 = vpop.f32.mrf.mxu0 }
 0x2e8   : > { %1827 = vmax.xlane.f32.xlu0 %v1826_v51  ;;  %9749 = vst [vmem:[#allocation36_spill] sm:$0xff] %v7544_v44  ;;  %vm1444_vm13 = vcmp.le.s32.totalorder %v7227_v60, %v7544_v44  ;;  %vm9623_vm14 = vcmp.le.s32.totalorder %v7238_v63, %v7544_v44  ;;  %v1749_v51 = vpop.f32.mrf.mxu0  ;;  %v7564_v61 = vpop.permute.xlu0 %2342 }
 0x2ec   : > { %v7568_v53 = vpop.permute.xlu0 %2340 }
 0x2f0   : > { %v7572_v33 = vpop.permute.xlu0 %2338 }
 0x2f5   : > { %2352 = vrot.lane.b32.xlu1 %v7143_v23, %s6867_s14 }
 0x2f9   : > { %2334 = vrot.lane.b32.xlu1 %v7141_v22, %s6867_s14  ;;  %v7553_v22 = vsel %vm1444_vm13, %v1747_v47, -inf  ;;  %v7570_v47 = vpop.permute.xlu1 %2358 }
 0x2fd   : > { %v7574_v44 = vpop.permute.xlu1 %2356 }
 0x2fe   : > { %2336 = vrot.lane.b32.xlu0 %v7137_v21, %s6867_s14  ;;  %v7558_v21 = vsel %vm9623_vm14, %v1749_v51, -inf  ;;  %vm2297_vm14 = vcmask 257024  }
 0x2ff   : > { %v1829_v23 = vmax.f32 %v7553_v22, %v7558_v21 }
 0x301   : > { %v7578_v52 = vpop.permute.xlu1 %2354 }
 0x31d   : > { %1830 = vmax.xlane.f32.xlu1 %v1829_v23 }
 0x32e   : > { %2350 = vrot.lane.b32.xlu1 %v7154_v27, %s6867_s14 }
 0x339   : > { %v1786_v51 = vpop.xlane.xlu0 %1785 }
 0x33a   : > { %v1832_v26 = vsub.f32 %v7252_v5, %v1786_v51  ;;  %v1833_v23 = vsub.f32 %v7257_v6, %v1786_v51 }
 0x33c   : > { %v1864_v9 = vmul.f32 1.442695, %v1832_v26  ;;  %v1866_v1 = vmul.f32 1.442695, %v1833_v23 }
 0x33d   : > { %v1789_v43 = vpop.xlane.xlu0 %1788 }
 0x33e   : > { %6222 = vpow2.f32 %v1864_v9  ;;  %v1834_v30 = vsub.f32 %v7272_v12, %v1789_v43  ;;  %v1835_v16 = vsub.f32 %v7277_v13, %v1789_v43 }
 0x33f   : > { %6224 = vpow2.f32 %v1866_v1 }
 0x340   : > { %v1868_v7 = vmul.f32 1.442695, %v1834_v30  ;;  %v1870_v3 = vmul.f32 1.442695, %v1835_v16 }
 0x341   : > { %v1792_v63 = vpop.xlane.xlu1 %1791 }
 0x342   : > { %6226 = vpow2.f32 %v1868_v7  ;;  %v1836_v62 = vsub.f32 %v7292_v19, %v1792_v63  ;;  %v1837_v5 = vsub.f32 %v7297_v20, %v1792_v63 }
 0x343   : > { %6228 = vpow2.f32 %v1870_v3 }
 0x344   : > { %v1872_v6 = vmul.f32 1.442695, %v1836_v62  ;;  %v1874_v26 = vmul.f32 1.442695, %v1837_v5 }
 0x345   : > { %v1795_v51 = vpop.xlane.xlu1 %1794 }
 0x346   : > { %6230 = vpow2.f32 %v1872_v6  ;;  %v1838_v9 = vsub.f32 %v7312_v41, %v1795_v51  ;;  %v1839_v12 = vsub.f32 %v7317_v42, %v1795_v51 }
 0x347   : > { %6232 = vpow2.f32 %v1874_v26 }
 0x348   : > { %v1876_v13 = vmul.f32 1.442695, %v1838_v9  ;;  %v1878_v43 = vmul.f32 1.442695, %v1839_v12 }
 0x349   : > { %v1798_v30 = vpop.xlane.xlu0 %1797 }
 0x34a   : > { %6234 = vpow2.f32 %v1876_v13  ;;  %v1840_v7 = vsub.f32 %v7332_v48, %v1798_v30  ;;  %v1841_v16 = vsub.f32 %v7337_v49, %v1798_v30 }
 0x34b   : > { %v7588_v19 = vpop.eup %6222  ;;  %6236 = vpow2.f32 %v1878_v43 }
 0x34c   : > { %v7590_v62 = vpop.eup %6224  ;;  %v1880_v63 = vmul.f32 1.442695, %v1840_v7  ;;  %v1882_v3 = vmul.f32 1.442695, %v1841_v16 }
 0x34d   : > { %v1801_v20 = vpop.xlane.xlu1 %1800  ;;  %v1928_v41 = vadd.f32 %v7590_v62, %v7588_v19 }
 0x34e   : > { %6238 = vpow2.f32 %v1880_v63  ;;  %v1842_v42 = vsub.f32 %v7352_v55, %v1801_v20  ;;  %v1843_v1 = vsub.f32 %v7357_v56, %v1801_v20 }
 0x34f   : > { %v7596_v23 = vpop.eup %6226  ;;  %6240 = vpow2.f32 %v1882_v3  ;;  %1929 = vadd.xlane.f32.xlu0 %v1928_v41 }
 0x350   : > { %v7598_v48 = vpop.eup %6228  ;;  %v1884_v49 = vmul.f32 1.442695, %v1842_v42  ;;  %v1886_v5 = vmul.f32 1.442695, %v1843_v1 }
 0x351   : > { %v1804_v6 = vpop.xlane.xlu0 %1803  ;;  %v1931_v26 = vadd.f32 %v7598_v48, %v7596_v23 }
 0x352   : > { %6242 = vpow2.f32 %v1884_v49  ;;  %v1844_v51 = vsub.f32 %v7372_v4, %v1804_v6  ;;  %v1845_v9 = vsub.f32 %v7377_v8, %v1804_v6 }
 0x353   : > { %v7604_v55 = vpop.eup %6230  ;;  %6244 = vpow2.f32 %v1886_v5  ;;  %1932 = vadd.xlane.f32.xlu1 %v1931_v26 }
 0x354   : > { %v7606_v56 = vpop.eup %6232  ;;  %v1888_v12 = vmul.f32 1.442695, %v1844_v51  ;;  %v1890_v13 = vmul.f32 1.442695, %v1845_v9 }
 0x355   : > { %v1807_v43 = vpop.xlane.xlu1 %1806  ;;  %v1934_v30 = vadd.f32 %v7606_v56, %v7604_v55 }
 0x356   : > { %6246 = vpow2.f32 %v1888_v12  ;;  %v1846_v7 = vsub.f32 %v7392_v17, %v1807_v43  ;;  %v1847_v16 = vsub.f32 %v7397_v18, %v1807_v43 }
 0x357   : > { %v7612_v4 = vpop.eup %6234  ;;  %6248 = vpow2.f32 %v1890_v13  ;;  %1935 = vadd.xlane.f32.xlu0 %v1934_v30 }
 0x358   : > { %v7614_v8 = vpop.eup %6236  ;;  %v1892_v63 = vmul.f32 1.442695, %v1846_v7  ;;  %v1894_v3 = vmul.f32 1.442695, %v1847_v16 }
 0x359   : > { %v1810_v20 = vpop.xlane.xlu0 %1809  ;;  %v1937_v41 = vadd.f32 %v7614_v8, %v7612_v4 }
 0x35a   : > { %6250 = vpow2.f32 %v1892_v63  ;;  %v1848_v42 = vsub.f32 %v7412_v45, %v1810_v20  ;;  %v1849_v1 = vsub.f32 %v7417_v46, %v1810_v20 }
 0x35b   : > { %v7620_v17 = vpop.eup %6238  ;;  %6252 = vpow2.f32 %v1894_v3  ;;  %1938 = vadd.xlane.f32.xlu1 %v1937_v41 }
 0x35c   : > { %v7622_v18 = vpop.eup %6240  ;;  %v1896_v49 = vmul.f32 1.442695, %v1848_v42  ;;  %v1898_v5 = vmul.f32 1.442695, %v1849_v1 }
 0x35d   : > { %v1813_v6 = vpop.xlane.xlu1 %1812  ;;  %v1940_v26 = vadd.f32 %v7622_v18, %v7620_v17 }
 0x35e   : > { %6254 = vpow2.f32 %v1896_v49  ;;  %v1850_v51 = vsub.f32 %v7432_v57, %v1813_v6  ;;  %v1851_v9 = vsub.f32 %v7437_v58, %v1813_v6 }
 0x35f   : > { %v7628_v45 = vpop.eup %6242  ;;  %6256 = vpow2.f32 %v1898_v5  ;;  %1941 = vadd.xlane.f32.xlu0 %v1940_v26 }
 0x360   : > { %v7630_v46 = vpop.eup %6244  ;;  %v1900_v12 = vmul.f32 1.442695, %v1850_v51  ;;  %v1902_v13 = vmul.f32 1.442695, %v1851_v9 }
 0x361   : > { %v1816_v43 = vpop.xlane.xlu0 %1815  ;;  %v1943_v30 = vadd.f32 %v7630_v46, %v7628_v45 }
 0x362   : > { %6258 = vpow2.f32 %v1900_v12  ;;  %v1852_v7 = vsub.f32 %v7452_v15, %v1816_v43  ;;  %v1853_v16 = vsub.f32 %v7457_v24, %v1816_v43 }
 0x363   : > { %v7636_v57 = vpop.eup %6246  ;;  %6260 = vpow2.f32 %v1902_v13  ;;  %1944 = vadd.xlane.f32.xlu1 %v1943_v30 }
 0x364   : > { %v7638_v58 = vpop.eup %6248  ;;  %v1904_v63 = vmul.f32 1.442695, %v1852_v7  ;;  %v1906_v3 = vmul.f32 1.442695, %v1853_v16 }
 0x365   : > { %v1819_v20 = vpop.xlane.xlu1 %1818  ;;  %v1946_v41 = vadd.f32 %v7638_v58, %v7636_v57 }
 0x366   : > { %6262 = vpow2.f32 %v1904_v63  ;;  %v1854_v42 = vsub.f32 %v7473_v54, %v1819_v20  ;;  %v1855_v1 = vsub.f32 %v7478_v2, %v1819_v20 }
 0x367   : > { %v7644_v15 = vpop.eup %6250  ;;  %6264 = vpow2.f32 %v1906_v3  ;;  %1947 = vadd.xlane.f32.xlu0 %v1946_v41 }
 0x368   : > { %v7646_v24 = vpop.eup %6252  ;;  %v1908_v49 = vmul.f32 1.442695, %v1854_v42  ;;  %v1910_v5 = vmul.f32 1.442695, %v1855_v1 }
 0x369   : > { %v1822_v6 = vpop.xlane.xlu0 %1821  ;;  %v1949_v26 = vadd.f32 %v7646_v24, %v7644_v15 }
 0x36a   : > { %6266 = vpow2.f32 %v1908_v49  ;;  %v1856_v51 = vsub.f32 %v7495_v50, %v1822_v6  ;;  %v1857_v9 = vsub.f32 %v7500_v0, %v1822_v6 }
 0x36b   : > { %v7652_v54 = vpop.eup %6254  ;;  %6268 = vpow2.f32 %v1910_v5  ;;  %1950 = vadd.xlane.f32.xlu1 %v1949_v26 }
 0x36c   : > { %v7654_v2 = vpop.eup %6256  ;;  %v1912_v12 = vmul.f32 1.442695, %v1856_v51  ;;  %v1914_v13 = vmul.f32 1.442695, %v1857_v9 }
 0x36d   : > { %v1825_v43 = vpop.xlane.xlu1 %1824  ;;  %v1952_v30 = vadd.f32 %v7654_v2, %v7652_v54 }
 0x36e   : > { %6270 = vpow2.f32 %v1912_v12  ;;  %v1858_v7 = vsub.f32 %v7513_v10, %v1825_v43  ;;  %v1859_v16 = vsub.f32 %v7518_v25, %v1825_v43 }
 0x36f   : > { %v7660_v50 = vpop.eup %6258  ;;  %6272 = vpow2.f32 %v1914_v13  ;;  %1953 = vadd.xlane.f32.xlu1 %v1952_v30 }
 0x370   : > { %v7662_v0 = vpop.eup %6260  ;;  %v1916_v63 = vmul.f32 1.442695, %v1858_v7  ;;  %v1918_v3 = vmul.f32 1.442695, %v1859_v16 }
 0x371   : > { %v1955_v20 = vadd.f32 %v7662_v0, %v7660_v50  ;;  %v1828_v13 = vpop.xlane.xlu0 %1827  ;;  %v7696_v7 = vpop.permute.xlu1 %2352 }
 0x372   : > { %6274 = vpow2.f32 %v1916_v63  ;;  %v1860_v43 = vsub.f32 %v7527_v11, %v1828_v13  ;;  %v1861_v30 = vsub.f32 %v7532_v14, %v1828_v13 }
 0x373   : > { %v7666_v41 = vpop.eup %6262  ;;  %6276 = vpow2.f32 %v1918_v3  ;;  %1956 = vadd.xlane.f32.xlu0 %v1955_v20 }
 0x374   : > { %v7668_v42 = vpop.eup %6264  ;;  %v1920_v16 = vmul.f32 1.442695, %v1860_v43  ;;  %v1922_v63 = vmul.f32 1.442695, %v1861_v30  ;;  %v7722_v30 = vld [vmem:[#allocation2 + $0x154] ss:$12 sps:$4 sm:$0xff]  }
 0x375   : > { %v1958_v10 = vadd.f32 %v7668_v42, %v7666_v41  ;;  %v7698_v3 = vpop.permute.xlu1 %2334 }
 0x376   : > { %6278 = vpow2.f32 %v1920_v16  ;;  %v7728_v16 = vpop.permute.xlu0 %2336 }
 0x377   : > { %v7672_v25 = vpop.eup %6266  ;;  %1959 = vadd.xlane.f32.xlu1 %v1958_v10  ;;  %6280 = vpow2.f32 %v1922_v63  ;;  %v7730_v63 = vld [vmem:[#allocation2 + $0x7c] ss:$12 sps:$4 sm:$0xff]  }
 0x378   : > { %v7674_v1 = vpop.eup %6268 }
 0x379   : > { %v1961_v49 = vadd.f32 %v7674_v1, %v7672_v25 }
 0x37b   : > { %v7678_v5 = vpop.eup %6270  ;;  %1962 = vadd.xlane.f32.xlu0 %v1961_v49 }
 0x37c   : > { %9750 = vst [vmem:[#allocation37_spill] sm:$0xff] %v7678_v5  ;;  %v7680_v6 = vpop.eup %6272 }
 0x37d   : > { %v1964_v26 = vadd.f32 %v7680_v6, %v7678_v5 }
 0x37f   : > { %v7684_v51 = vpop.eup %6274  ;;  %1965 = vadd.xlane.f32.xlu1 %v1964_v26 }
 0x380   : > { %9751 = vst [vmem:[#allocation38_spill] sm:$0xff] %v7684_v51  ;;  %v7686_v9 = vpop.eup %6276 }
 0x381   : > { %9752 = vst [vmem:[#allocation39_spill] sm:$0xff] %v7686_v9  ;;  %v1967_v12 = vadd.f32 %v7686_v9, %v7684_v51 }
 0x383   : > { %1968 = vadd.xlane.f32.xlu0 %v1967_v12  ;;  %v7702_v26 = vpop.eup %6278 }
 0x384   : > { %9753 = vst [vmem:[#allocation40_spill] sm:$0xff] %v7702_v26  ;;  %v7704_v14 = vpop.eup %6280 }
 0x385   : > { %9754 = vst [vmem:[#allocation41_spill] sm:$0xff] %v7704_v14  ;;  %v1970_v12 = vadd.f32 %v7704_v14, %v7702_v26 }
 0x390   : > { %2348 = vrot.lane.b32.xlu1 %v7158_v28, %s6867_s14 }
 0x399   : > { %2332 = vrot.lane.b32.xlu0 %v7162_v29, %s6867_s14 }
 0x3a6   : > { %v1831_v20 = vpop.xlane.xlu1 %1830 }
 0x3a7   : > { %v1862_v10 = vsub.f32 %v7553_v22, %v1831_v20  ;;  %v1863_v28 = vsub.f32 %v7558_v21, %v1831_v20  ;;  %v7716_v21 = vld [vmem:[#allocation2 + $0xac] ss:$12 sps:$4 sm:$0xff]  }
 0x3a8   : > { %v7735_v20 = vld [vmem:[%s7132_s11] ss:$12 sps:$4 sm:$0xff]  }
 0x3a9   : > { %v1924_v49 = vmul.f32 1.442695, %v1862_v10  ;;  %v1926_v11 = vmul.f32 1.442695, %v1863_v28 }
 0x3aa   : > { %v7739_v10 = vpop.permute.xlu1 %2350 }
 0x3ab   : > { %6282 = vpow2.f32 %v1924_v49  ;;  %v7743_v49 = vld [vmem:[#allocation2 + $0x16c] ss:$12 sps:$4 sm:$0xff]  }
 0x3ac   : > { %6284 = vpow2.f32 %v1926_v11 }
 0x3b4   : > { %1971 = vadd.xlane.f32.xlu1 %v1970_v12  ;;  %v7747_v12 = vld [vmem:[#allocation2 + $0x124] ss:$12 sps:$4 sm:$0xff]  }
 0x3b8   : > { %v7708_v13 = vpop.eup %6282 }
 0x3b9   : > { %9755 = vst [vmem:[#allocation42_spill] sm:$0xff] %v7708_v13  ;;  %v7710_v43 = vpop.eup %6284 }
 0x3ba   : > { %9756 = vst [vmem:[#allocation43_spill] sm:$0xff] %v7710_v43  ;;  %v1973_v22 = vadd.f32 %v7710_v43, %v7708_v13 }
 0x3bc   : > { %1974 = vadd.xlane.f32.xlu0 %v1973_v22  ;;  %v7751_v22 = vld [vmem:[#allocation2 + $0x94] ss:$12 sps:$4 sm:$0xff]  }
 0x3c5   : > { %2346 = vrot.lane.b32.xlu1 %v7166_v31, %s6867_s14 }
 0x3c9   : > { %3123 = vrot.lane.b32.xlu1 %v7716_v21, %s6868_s1 }
 0x3cd   : > { %2316 = vrot.lane.b32.xlu1 %v7175_v34, %s6867_s14 }
 0x3d1   : > { %3137 = vrot.lane.b32.xlu1 %v7722_v30, %s6868_s1 }
 0x3d2   : > { %2330 = vrot.lane.b32.xlu0 %v7170_v32, %s6867_s14 }
 0x3d5   : > { %3119 = vrot.lane.b32.xlu1 %v7730_v63, %s6868_s1 }
 0x3d6   : > { %2314 = vrot.lane.b32.xlu0 %v7735_v20, %s6867_s14 }
 0x3d8   : > { %v1930_v28 = vpop.xlane.xlu0 %1929 }
 0x3d9   : > { %2320 = vrot.lane.b32.xlu1 %v7188_v36, %s6867_s14  ;;  %6286 = vrcp.f32 %v1930_v28  ;;  %v7755_v36 = vld [vmem:[#allocation2 + $0x4c] ss:$12 sps:$4 sm:$0xff]  }
 0x3da   : > { %3139 = vrot.lane.b32.xlu0 %v7743_v49, %s6868_s1 }
 0x3dc   : > { %v1933_v11 = vpop.xlane.xlu1 %1932 }
 0x3dd   : > { %6288 = vrcp.f32 %v1933_v11  ;;  %3133 = vrot.lane.b32.xlu1 %v7747_v12, %s6868_s1  ;;  %v7763_v11 = vld [vmem:[#allocation2 + $0x13c] ss:$12 sps:$4 sm:$0xff]  }
 0x3de   : > { %3121 = vrot.lane.b32.xlu0 %v7751_v22, %s6868_s1 }
 0x3e0   : > { %v1936_v60 = vpop.xlane.xlu0 %1935 }
 0x3e1   : > { %3115 = vrot.lane.b32.xlu1 %v7755_v36, %s6868_s1  ;;  %6290 = vrcp.f32 %v1936_v60 }
 0x3e2   : > { %2318 = vrot.lane.b32.xlu0 %v7181_v35, %s6867_s14  ;;  %v7770_v35 = vld [vmem:[#allocation2 + $0x64] ss:$12 sps:$4 sm:$0xff]  }
 0x3e4   : > { %v1939_v28 = vpop.xlane.xlu1 %1938 }
 0x3e5   : > { %6292 = vrcp.f32 %v1939_v28  ;;  %2324 = vrot.lane.b32.xlu1 %v7202_v38, %s6867_s14 }
 0x3e6   : > { %3135 = vrot.lane.b32.xlu0 %v7763_v11, %s6868_s1  ;;  %v6287_v13 = vpop.eup %6286 }
 0x3e7   : > { %v1993_v14 = vmul.f32 %v6287_v13, %v7590_v62  ;;  %v1992_v60 = vmul.f32 %v6287_v13, %v7588_v19  ;;  %v2408_v62 = vsel %vm1566_vm0, %v7562_v59, 0 }
 0x3e8   : > { %v1942_v26 = vpop.xlane.xlu0 %1941 }
 0x3e9   : > { %3129 = vrot.lane.b32.xlu1 %v7154_v27, %s6868_s1  ;;  %6294 = vrcp.f32 %v1942_v26 }
 0x3ea   : > { %v6289_v43 = vpop.eup %6288  ;;  %3117 = vrot.lane.b32.xlu0 %v7770_v35, %s6868_s1 }
 0x3eb   : > { %v1995_v38 = vmul.f32 %v6289_v43, %v7598_v48  ;;  %v1994_v28 = vmul.f32 %v6289_v43, %v7596_v23 }
 0x3ec   : > { %v1945_v51 = vpop.xlane.xlu1 %1944 }
 0x3ed   : > { %6296 = vrcp.f32 %v1945_v51  ;;  %v2025_v5 = vpack.c.bf16 %v1995_v38, %v1993_v14  ;;  %v2024_v9 = vpack.c.bf16 %v1994_v28, %v1992_v60  ;;  %3111 = vrot.lane.b32.xlu1 %v7162_v29, %s6868_s1  ;;  %v7787_v29 = vld [vmem:[#allocation2 + $0x10c] ss:$12 sps:$4 sm:$0xff]   ;;  %v7815_v38 = vld [vmem:[#allocation2 + $0xdc] ss:$12 sps:$4 sm:$0xff]  }
 0x3ee   : > { %2322 = vrot.lane.b32.xlu0 %v7195_v37, %s6867_s14  ;;  %v6291_v27 = vpop.eup %6290 }
 0x3ef   : > { %2168 = vmatprep.mubr.bf16.mxu1 %v2025_v5  ;;  %v1997_v37 = vmul.f32 %v6291_v27, %v7606_v56  ;;  %v1996_v23 = vmul.f32 %v6291_v27, %v7604_v55 }
 0x3f0   : > { %v1948_v48 = vpop.xlane.xlu0 %1947  ;;  %2169 = vmatmul.mubr.bf16.vlgmr.msra.gmra.mxu1 %v2024_v9 }
 0x3f1   : > { %5554 = vmatpush3.bf16.xpose.msra.mxu1 %v2408_v62  ;;  %2328 = vrot.lane.b32.xlu1 %v7216_v40, %s6867_s14  ;;  %6298 = vrcp.f32 %v1948_v48 }
 0x3f2   : > { %v6293_v19 = vpop.eup %6292  ;;  %5962 = vmatprep.subr.msk.bf16.mxu1 %vm1566_vm0, %v7570_v47  ;;  %3131 = vrot.lane.b32.xlu0 %v7787_v29, %s6868_s1  ;;  %v7797_v47 = vld [vmem:[#allocation2 + $0x34] ss:$12 sps:$4 sm:$0xff]  }
 0x3f3   : > { %v1999_v59 = vmul.f32 %v6293_v19, %v7614_v8  ;;  %v1998_v5 = vmul.f32 %v6293_v19, %v7612_v4  ;;  %v2405_v8 = vsel %vm1566_vm0, %v7564_v61, 0 }
 0x3f4   : > { %v1951_v51 = vpop.xlane.xlu1 %1950 }
 0x3f5   : > { %6300 = vrcp.f32 %v1951_v51  ;;  %v2027_v40 = vpack.c.bf16 %v1999_v59, %v1997_v37  ;;  %v2026_v9 = vpack.c.bf16 %v1998_v5, %v1996_v23  ;;  %3125 = vrot.lane.b32.xlu1 %v7166_v31, %s6868_s1  ;;  %v6621_v59 = vld [vmem:[%s7132_s11 + $0x78] ss:$12 sps:$4 sm:$0xff]   ;;  %v9758_v5 = vld [vmem:[#allocation37_spill] sm:$0xff] }
 0x3f6   : > { %3113 = vrot.lane.b32.xlu0 %v7797_v47, %s6868_s1  ;;  %v6295_v56 = vpop.eup %6294  ;;  %v9759_v51 = vld [vmem:[#allocation38_spill] sm:$0xff] }
 0x3f7   : > { %2176 = vmatprep.mubr.bf16.mxu1 %v2027_v40  ;;  %v2001_v31 = vmul.f32 %v6295_v56, %v7622_v18  ;;  %v2000_v61 = vmul.f32 %v6295_v56, %v7620_v17 }
 0x3f8   : > { %2177 = vmatmul.mubr.bf16.gmra.mxu1 %v2026_v9  ;;  %v1954_v55 = vpop.xlane.xlu1 %1953 }
 0x3f9   : > { %5556 = vmatpush3.bf16.xpose.msra.mxu1 %v2405_v8  ;;  %3902 = vrot.lane.b32.xlu1 %v7716_v21, %s6869_s29  ;;  %6302 = vrcp.f32 %v1954_v55  ;;  %v6623_v55 = vld [vmem:[#allocation2 + $0x1c] ss:$12 sps:$4 sm:$0xff]  }
 0x3fa   : > { %v6297_v4 = vpop.eup %6296  ;;  %5963 = vmatprep.subr.msk.bf16.mxu1 %vm1566_vm0, %v7574_v44  ;;  %2326 = vrot.lane.b32.xlu0 %v7209_v39, %s6867_s14  ;;  %v2402_v44 = vsel %vm1566_vm0, %v7568_v53, 0 }
 0x3fb   : > { %v2003_v26 = vmul.f32 %v6297_v4, %v7630_v46  ;;  %v2002_v14 = vmul.f32 %v6297_v4, %v7628_v45  ;;  %v6624_v4 = vld [vmem:[%s7132_s11 + $0x60] ss:$12 sps:$4 sm:$0xff]  }
 0x3fc   : > { %v1957_v13 = vpop.xlane.xlu0 %1956 }
 0x3fd   : > { %6304 = vrcp.f32 %v1957_v13  ;;  %v2029_v43 = vpack.c.bf16 %v2003_v26, %v2001_v31  ;;  %v2028_v21 = vpack.c.bf16 %v2002_v14, %v2000_v61  ;;  %3095 = vrot.lane.b32.xlu1 %v7175_v34, %s6868_s1  ;;  %v6626_v31 = vld [vmem:[#allocation2 + $0xc4] ss:$12 sps:$4 sm:$0xff]  }
 0x3fe   : > { %3127 = vrot.lane.b32.xlu0 %v7815_v38, %s6868_s1  ;;  %v6299_v39 = vpop.eup %6298  ;;  %v6627_v26 = vld [vmem:[%s7132_s11 + $0x18] ss:$12 sps:$4 sm:$0xff]   ;;  %v6628_v61 = vld [vmem:[%s7132_s11 + $0x90] ss:$12 sps:$4 sm:$0xff]  }
 0x3ff   : > { %2184 = vmatprep.mubr.bf16.mxu1 %v2029_v43  ;;  %v2005_v34 = vmul.f32 %v6299_v39, %v7638_v58  ;;  %v2004_v53 = vmul.f32 %v6299_v39, %v7636_v57  ;;  %v7838_v57 = vld [vmem:[%s7132_s11 + $0x48] ss:$12 sps:$4 sm:$0xff]   ;;  %v7909_v13 = vld [vmem:[#allocation2 + $0x98] ss:$12 sps:$4 sm:$0xff]   ;;  %v6633_v39 = vld [vmem:[#allocation2 + $0x50] ss:$12 sps:$4 sm:$0xff]  }
 0x400   : > { %2185 = vmatmul.mubr.bf16.gmra.mxu1 %v2028_v21  ;;  %v1960_v17 = vpop.xlane.xlu1 %1959  ;;  %v7914_v21 = vld [vmem:[#allocation2 + $0x80] ss:$12 sps:$4 sm:$0xff]  }
 0x401   : > { %5558 = vmatpush3.bf16.xpose.msra.mxu1 %v2402_v44  ;;  %3916 = vrot.lane.b32.xlu1 %v7722_v30, %s6869_s29  ;;  %6306 = vrcp.f32 %v1960_v17  ;;  %v7921_v44 = vld [vmem:[#allocation2 + $0x170] ss:$12 sps:$4 sm:$0xff]  }
 0x402   : > { %v6301_v18 = vpop.eup %6300  ;;  %5964 = vmatprep.subr.msk.bf16.mxu1 %vm1566_vm0, %v7578_v52  ;;  %3109 = vrot.lane.b32.xlu0 %v7170_v32, %s6868_s1  ;;  %v2399_v32 = vsel %vm1566_vm0, %v7572_v33, 0 }
 0x403   : > { %v2007_v45 = vmul.f32 %v6301_v18, %v7646_v24  ;;  %v2006_v46 = vmul.f32 %v6301_v18, %v7644_v15 }
 0x404   : > { %v1963_v60 = vpop.xlane.xlu0 %1962 }
 0x405   : > { %6308 = vrcp.f32 %v1963_v60  ;;  %v2031_v30 = vpack.c.bf16 %v2007_v45, %v2005_v34  ;;  %v2030_v28 = vpack.c.bf16 %v2006_v46, %v2004_v53  ;;  %3898 = vrot.lane.b32.xlu1 %v7730_v63, %s6869_s29  ;;  %v6635_v34 = vld [vmem:[#allocation2 + $0x20] ss:$12 sps:$4 sm:$0xff]   ;;  %v7927_v53 = vld [vmem:[#allocation2 + $0x158] ss:$12 sps:$4 sm:$0xff]  }
 0x406   : > { %3093 = vrot.lane.b32.xlu0 %v7735_v20, %s6868_s1  ;;  %v6303_v52 = vpop.eup %6302 }
 0x407   : > { %2192 = vmatprep.mubr.bf16.mxu1 %v2031_v30  ;;  %v2009_v24 = vmul.f32 %v6303_v52, %v7654_v2  ;;  %v2008_v63 = vmul.f32 %v6303_v52, %v7652_v54  ;;  %v7933_v30 = vld [vmem:[#allocation2 + $0x140] ss:$12 sps:$4 sm:$0xff]  }
 0x408   : > { %2193 = vmatmul.mubr.bf16.gmra.mxu1 %v2030_v28  ;;  %v1966_v58 = vpop.xlane.xlu1 %1965 }
 0x409   : > { %5560 = vmatpush3.bf16.xpose.msra.mxu1 %v2399_v32  ;;  %3099 = vrot.lane.b32.xlu1 %v7838_v57, %s6868_s1  ;;  %6310 = vrcp.f32 %v1966_v58  ;;  %v7940_v58 = vld [vmem:[#allocation2 + $0x128] ss:$12 sps:$4 sm:$0xff]  }
 0x40a   : > { %v6305_v15 = vpop.eup %6304  ;;  %5965 = vmatprep.subr.msk.bf16.mxu1 %vm1566_vm0, %v7696_v7  ;;  %3918 = vrot.lane.b32.xlu0 %v7743_v49, %s6869_s29 }
 0x40b   : > { %v2011_v33 = vmul.f32 %v6305_v15, %v7662_v0  ;;  %v2010_v27 = vmul.f32 %v6305_v15, %v7660_v50  ;;  %v2396_v0 = vsel %vm1566_vm0, %v7728_v16, 0  ;;  %v6620_v50 = vld [vmem:[%s7132_s11 + $0x30] ss:$12 sps:$4 sm:$0xff]  }
 0x40c   : > { %v1969_v62 = vpop.xlane.xlu0 %1968  ;;  %v9760_v15 = vld [vmem:[#allocation41_spill] sm:$0xff] }
 0x40d   : > { %6312 = vrcp.f32 %v1969_v62  ;;  %v2033_v48 = vpack.c.bf16 %v2011_v33, %v2009_v24  ;;  %v2032_v19 = vpack.c.bf16 %v2010_v27, %v2008_v63  ;;  %3912 = vrot.lane.b32.xlu1 %v7747_v12, %s6869_s29  ;;  %v9761_v33 = vld [vmem:[#allocation43_spill] sm:$0xff]  ;;  %v9762_v27 = vld [vmem:[#allocation40_spill] sm:$0xff] }
 0x40e   : > { %3900 = vrot.lane.b32.xlu0 %v7751_v22, %s6869_s29  ;;  %v6307_v2 = vpop.eup %6306 }
 0x40f   : > { %2200 = vmatprep.mubr.bf16.mxu1 %v2033_v48  ;;  %v2013_v7 = vmul.f32 %v6307_v2, %v7668_v42  ;;  %v2012_v12 = vmul.f32 %v6307_v2, %v7666_v41  ;;  %v2349_v42 = vpop.permute.xlu1 %2348  ;;  %v6622_v41 = vld [vmem:[#allocation2 + $0xf4] ss:$12 sps:$4 sm:$0xff]   ;;  %v9763_v48 = vld [vmem:[#allocation42_spill] sm:$0xff] }
 0x410   : > { %2201 = vmatmul.mubr.bf16.gmra.mxu1 %v2032_v19  ;;  %v2333_v9 = vpop.permute.xlu0 %2332 }
 0x411   : > { %5562 = vmatpush3.bf16.xpose.msra.mxu1 %v2396_v0  ;;  %3894 = vrot.lane.b32.xlu1 %v7755_v36, %s6869_s29  ;;  %v2393_v36 = vsel %vm1566_vm0, %v7698_v3, 0 }
 0x412   : > { %v6309_v54 = vpop.eup %6308  ;;  %5966 = vmatprep.subr.msk.bf16.mxu1 %vm1566_vm0, %v7739_v10  ;;  %3097 = vrot.lane.b32.xlu0 %v6620_v50, %s6868_s1 }
 0x413   : > { %v2015_v49 = vmul.f32 %v6309_v54, %v7674_v1  ;;  %v2014_v16 = vmul.f32 %v6309_v54, %v7672_v25 }
 0x415   : > { %v2035_v22 = vpack.c.bf16 %v2015_v49, %v2013_v7  ;;  %v2034_v37 = vpack.c.bf16 %v2014_v16, %v2012_v12  ;;  %3103 = vrot.lane.b32.xlu1 %v6621_v59, %s6868_s1  ;;  %v7950_v7 = vld [vmem:[#allocation2 + $0x68] ss:$12 sps:$4 sm:$0xff]   ;;  %v7956_v16 = vld [vmem:[#allocation2 + $0x110] ss:$12 sps:$4 sm:$0xff]  }
 0x416   : > { %3914 = vrot.lane.b32.xlu0 %v7763_v11, %s6869_s29  ;;  %v6311_v10 = vpop.eup %6310  ;;  %v9757_v11 = vld [vmem:[#allocation39_spill] sm:$0xff] }
 0x417   : > { %2208 = vmatprep.mubr.bf16.mxu1 %v2035_v22  ;;  %v2017_v1 = vmul.f32 %v6311_v10, %v7680_v6  ;;  %v2016_v3 = vmul.f32 %v6311_v10, %v9758_v5  ;;  %v2390_v6 = vsel %vm1566_vm0, %v2333_v9, 0 }
 0x418   : > { %2209 = vmatmul.mubr.bf16.gmra.mxu1 %v2034_v37 }
 0x419   : > { %5564 = vmatpush3.bf16.xpose.msra.mxu1 %v2393_v36  ;;  %3908 = vrot.lane.b32.xlu1 %v6622_v41, %s6869_s29  ;;  %v7971_v41 = vld [vmem:[#allocation2 + $0x38] ss:$12 sps:$4 sm:$0xff]  }
 0x41a   : > { %v6313_v25 = vpop.eup %6312  ;;  %5967 = vmatprep.subr.msk.bf16.mxu1 %vm1566_vm0, %v2349_v42  ;;  %3896 = vrot.lane.b32.xlu0 %v7770_v35, %s6869_s29  ;;  %v6625_v35 = vld [vmem:[%s7132_s11 + $0xa8] ss:$12 sps:$4 sm:$0xff]   ;;  %s6870_s11 = smov [#allocation10]  }
 0x41b   : > { %v2019_v23 = vmul.f32 %v6313_v25, %v9757_v11  ;;  %v2018_v40 = vmul.f32 %v6313_v25, %v9759_v51  ;;  %v6644_v51 = vld [vmem:[#allocation2 + $0xc8] ss:$12 sps:$4 sm:$0xff]  }
 0x41d   : > { %v2037_v56 = vpack.c.bf16 %v2019_v23, %v2017_v1  ;;  %v2036_v8 = vpack.c.bf16 %v2018_v40, %v2016_v3  ;;  %3890 = vrot.lane.b32.xlu1 %v6623_v55, %s6869_s29  ;;  %v7978_v23 = vld [vmem:[#allocation2 + $0xe0] ss:$12 sps:$4 sm:$0xff]  }
 0x41e   : > { %3101 = vrot.lane.b32.xlu0 %v6624_v4, %s6868_s1 }
 0x41f   : > { %2216 = vmatprep.mubr.bf16.mxu1 %v2037_v56 }
 0x420   : > { %2217 = vmatmul.mubr.bf16.gmra.mxu1 %v2036_v8  ;;  %v7991_v8 = vld [vmem:[#allocation2 + $0x8] ss:$12 sps:$4 sm:$0xff]  }
 0x421   : > { %5566 = vmatpush3.bf16.xpose.msra.mxu1 %v2390_v6  ;;  %3107 = vrot.lane.b32.xlu1 %v6625_v35, %s6868_s1 }
 0x422   : > { %3910 = vrot.lane.b32.xlu0 %v7787_v29, %s6869_s29  ;;  %v6629_v29 = vld [vmem:[#allocation2 + $0x4] ss:$12 sps:$4 sm:$0xff]  }
 0x425   : > { %3904 = vrot.lane.b32.xlu1 %v6626_v31, %s6869_s29 }
 0x426   : > { %3892 = vrot.lane.b32.xlu0 %v7797_v47, %s6869_s29  ;;  %v7904_v47 = vld [vmem:[#allocation2 + $0xb0] ss:$12 sps:$4 sm:$0xff]  }
 0x429   : > { %3874 = vrot.lane.b32.xlu1 %v6627_v26, %s6869_s29 }
 0x42a   : > { %3105 = vrot.lane.b32.xlu0 %v6628_v61, %s6868_s1 }
 0x42d   : > { %3878 = vrot.lane.b32.xlu1 %v7838_v57, %s6869_s29 }
 0x42e   : > { %3906 = vrot.lane.b32.xlu0 %v7815_v38, %s6869_s29 }
 0x431   : > { %3882 = vrot.lane.b32.xlu1 %v6621_v59, %s6869_s29  ;;  %v7961_v59 = vld [vmem:[#allocation2 + $0xf8] ss:$12 sps:$4 sm:$0xff]  }
 0x432   : > { %3888 = vrot.lane.b32.xlu0 %v6629_v29, %s6869_s29 }
 0x435   : > { %3886 = vrot.lane.b32.xlu1 %v6625_v35, %s6869_s29 }
 0x436   : > { %3872 = vrot.lane.b32.xlu0 %v7735_v20, %s6869_s29 }
 0x439   : > { %2849 = vrot.lane.b32.xlu1 %v7904_v47, %s6867_s14 }
 0x43a   : > { %3876 = vrot.lane.b32.xlu0 %v6620_v50, %s6869_s29 }
 0x43d   : > { %v1972_v14 = vpop.xlane.xlu1 %1971  ;;  %2847 = vrot.lane.b32.xlu1 %v7909_v13, %s6867_s14 }
 0x43e   : > { %3880 = vrot.lane.b32.xlu0 %v6624_v4, %s6869_s29  ;;  %6314 = vrcp.f32 %v1972_v14 }
 0x441   : > { %v2347_v43 = vpop.permute.xlu1 %2346  ;;  %2845 = vrot.lane.b32.xlu1 %v7914_v21, %s6867_s14 }
 0x442   : > { %5968 = vmatprep.subr.msk.bf16.mxu1 %vm1566_vm0, %v2347_v43  ;;  %3884 = vrot.lane.b32.xlu0 %v6628_v61, %s6869_s29 }
 0x445   : > { %v1975_v20 = vpop.xlane.xlu0 %1974  ;;  %v3124_v38 = vpop.permute.xlu1 %3123  ;;  %2841 = vrot.lane.b32.xlu1 %v6633_v39, %s6867_s14 }
 0x446   : > { %6316 = vrcp.f32 %v1975_v20  ;;  %2865 = vrot.lane.b32.xlu0 %v7921_v44, %s6867_s14  ;;  %v3187_v10 = vsel %vm1566_vm0, %v3124_v38, 0 }
 0x449   : > { %v2331_v17 = vpop.permute.xlu0 %2330  ;;  %v2317_v18 = vpop.permute.xlu1 %2316  ;;  %2837 = vrot.lane.b32.xlu1 %v6635_v34, %s6867_s14 }
 0x44a   : > { %v2387_v45 = vsel %vm1566_vm0, %v2331_v17, 0  ;;  %2863 = vrot.lane.b32.xlu0 %v7927_v53, %s6867_s14 }
 0x44b   : > { %5568 = vmatpush3.bf16.xpose.msra.mxu1 %v2387_v45  ;;  %v6315_v28 = vpop.eup %6314 }
 0x44c   : > { %v2021_v24 = vmul.f32 %v6315_v28, %v9760_v15  ;;  %v2020_v62 = vmul.f32 %v6315_v28, %v9762_v27 }
 0x44d   : > { %v2315_v46 = vpop.permute.xlu0 %2314  ;;  %v3138_v60 = vpop.permute.xlu1 %3137  ;;  %3628 = vrot.lane.b32.xlu1 %v7904_v47, %s6868_s1 }
 0x44e   : > { %2861 = vrot.lane.b32.xlu0 %v7933_v30, %s6867_s14 }
 0x451   : > { %v3140_v52 = vpop.permute.xlu0 %3139  ;;  %v3120_v32 = vpop.permute.xlu1 %3119  ;;  %3626 = vrot.lane.b32.xlu1 %v7909_v13, %s6868_s1 }
 0x452   : > { %5969 = vmatprep.subr.msk.bf16.mxu1 %vm1566_vm0, %v3140_v52  ;;  %2859 = vrot.lane.b32.xlu0 %v7940_v58, %s6867_s14  ;;  %v3181_v56 = vsel %vm1566_vm0, %v3120_v32, 0 }
 0x453   : > { %v6317_v57 = vpop.eup %6316 }
 0x454   : > { %v2023_v63 = vmul.f32 %v6317_v57, %v9761_v33  ;;  %v2022_v19 = vmul.f32 %v6317_v57, %v9763_v48 }
 0x455   : > { %v3122_v2 = vpop.permute.xlu0 %3121  ;;  %v2321_v0 = vpop.permute.xlu1 %2320  ;;  %3624 = vrot.lane.b32.xlu1 %v7914_v21, %s6868_s1 }
 0x456   : > { %v2039_v54 = vpack.c.bf16 %v2023_v63, %v2021_v24  ;;  %v2038_v50 = vpack.c.bf16 %v2022_v19, %v2020_v62  ;;  %2843 = vrot.lane.b32.xlu0 %v7950_v7, %s6867_s14  ;;  %v3184_v11 = vsel %vm1566_vm0, %v3122_v2, 0 }
 0x458   : > { %2224 = vmatprep.mubr.bf16.mxu1 %v2039_v54 }
 0x459   : > { %2225 = vmatmul.mubr.bf16.gmra.mxu1 %v2038_v50  ;;  %v2319_v49 = vpop.permute.xlu0 %2318  ;;  %v3134_v12 = vpop.permute.xlu1 %3133  ;;  %3620 = vrot.lane.b32.xlu1 %v6633_v39, %s6868_s1 }
 0x45a   : > { %5569 = vmatprep.mubr.msk.bf16.mxu1 %vm1566_vm0, %v2315_v46  ;;  %2857 = vrot.lane.b32.xlu0 %v7956_v16, %s6867_s14 }
 0x45d   : > { %v3136_v22 = vpop.permute.xlu0 %3135  ;;  %v3116_v37 = vpop.permute.xlu1 %3115  ;;  %3616 = vrot.lane.b32.xlu1 %v6635_v34, %s6868_s1 }
 0x45e   : > { %2855 = vrot.lane.b32.xlu0 %v7961_v59, %s6867_s14  ;;  %v3175_v14 = vsel %vm1566_vm0, %v3116_v37, 0 }
 0x461   : > { %5570 = vmatmul.mubr.msk.bf16.vlgmr.msra.gmra.mxu1 %vm1566_vm0, %v2315_v46  ;;  %v3118_v36 = vpop.permute.xlu0 %3117  ;;  %v2325_v42 = vpop.permute.xlu1 %2324  ;;  %4407 = vrot.lane.b32.xlu1 %v7904_v47, %s6869_s29 }
 0x462   : > { %5650 = vmatpush3.bf16.xpose.msra.mxu1 %v3187_v10  ;;  %5571 = vmatprep.mubr.msk.bf16.mxu1 %vm1566_vm0, %v2317_v18  ;;  %v3178_v31 = vsel %vm1566_vm0, %v3118_v36, 0 }
 0x463   : > { %5970 = vmatprep.subr.msk.bf16.mxu1 %vm1566_vm0, %v3138_v60  ;;  %2839 = vrot.lane.b32.xlu0 %v7971_v41, %s6867_s14 }
 0x465   : > { %v2323_v25 = vpop.permute.xlu0 %2322  ;;  %v3130_v1 = vpop.permute.xlu1 %3129  ;;  %4405 = vrot.lane.b32.xlu1 %v7909_v13, %s6869_s29 }
 0x467   : > { %2853 = vrot.lane.b32.xlu0 %v7978_v23, %s6867_s14 }
 0x469   : > { %5572 = vmatmul.mubr.msk.bf16.gmra.mxu1 %vm1566_vm0, %v2317_v18  ;;  %v3132_v5 = vpop.permute.xlu0 %3131  ;;  %v3112_v3 = vpop.permute.xlu1 %3111  ;;  %4417 = vrot.lane.b32.xlu1 %v7940_v58, %s6869_s29 }
 0x46a   : > { %5652 = vmatpush3.bf16.xpose.msra.mxu1 %v3184_v11  ;;  %5573 = vmatprep.mubr.msk.bf16.mxu1 %vm1566_vm0, %v2319_v49  ;;  %v3169_v46 = vsel %vm1566_vm0, %v3112_v3, 0 }
 0x46b   : > { %5971 = vmatprep.subr.msk.bf16.mxu1 %vm1566_vm0, %v3136_v22  ;;  %2851 = vrot.lane.b32.xlu0 %v6644_v51, %s6867_s14 }
 0x46d   : > { %v3114_v40 = vpop.permute.xlu0 %3113  ;;  %v2329_v9 = vpop.permute.xlu1 %2328  ;;  %4401 = vrot.lane.b32.xlu1 %v7950_v7, %s6869_s29 }
 0x46e   : > { %v3172_v39 = vsel %vm1566_vm0, %v3114_v40, 0 }
 0x46f   : > { %2835 = vrot.lane.b32.xlu0 %v7991_v8, %s6867_s14 }
 0x471   : > { %5574 = vmatmul.mubr.msk.bf16.gmra.mxu1 %vm1566_vm0, %v2319_v49  ;;  %v2327_v55 = vpop.permute.xlu0 %2326  ;;  %v3126_v4 = vpop.permute.xlu1 %3125 }
 0x472   : > { %5654 = vmatpush3.bf16.xpose.msra.mxu1 %v3181_v56  ;;  %5575 = vmatprep.mubr.msk.bf16.mxu1 %vm1566_vm0, %v2321_v0 }
 0x473   : > { %5972 = vmatprep.subr.msk.bf16.mxu1 %vm1566_vm0, %v3134_v12  ;;  %3644 = vrot.lane.b32.xlu0 %v7921_v44, %s6868_s1 }
 0x475   : > { %v3128_v6 = vpop.permute.xlu0 %3127  ;;  %v3903_v35 = vpop.permute.xlu1 %3902 }
 0x476   : > { %v3966_v33 = vsel %vm1566_vm0, %v3903_v35, 0 }
 0x477   : > { %3642 = vrot.lane.b32.xlu0 %v7927_v53, %s6868_s1 }
 0x479   : > { %5576 = vmatmul.mubr.msk.bf16.gmra.mxu1 %vm1566_vm0, %v2321_v0  ;;  %v3110_v26 = vpop.permute.xlu0 %3109  ;;  %v8004_v61 = vpop.permute.xlu1 %3095 }
 0x47a   : > { %5656 = vmatpush3.bf16.xpose.msra.mxu1 %v3178_v31  ;;  %5577 = vmatprep.mubr.msk.bf16.mxu1 %vm1566_vm0, %v2323_v25 }
 0x47b   : > { %5973 = vmatprep.subr.msk.bf16.mxu1 %vm1566_vm0, %v3132_v5  ;;  %3640 = vrot.lane.b32.xlu0 %v7933_v30, %s6868_s1 }
 0x47d   : > { %v3094_v29 = vpop.permute.xlu0 %3093  ;;  %v3917_v47 = vpop.permute.xlu1 %3916 }
 0x47f   : > { %3638 = vrot.lane.b32.xlu0 %v7940_v58, %s6868_s1  ;;  %v3166_v58 = vsel %vm1566_vm0, %v3110_v26, 0 }
 0x481   : > { %5578 = vmatmul.mubr.msk.bf16.gmra.mxu1 %vm1566_vm0, %v2323_v25  ;;  %v3919_v13 = vpop.permute.xlu0 %3918  ;;  %v3899_v43 = vpop.permute.xlu1 %3898 }
 0x482   : > { %5658 = vmatpush3.bf16.xpose.msra.mxu1 %v3175_v14  ;;  %5579 = vmatprep.mubr.msk.bf16.mxu1 %vm1566_vm0, %v2325_v42 }
 0x483   : > { %5974 = vmatprep.subr.msk.bf16.mxu1 %vm1566_vm0, %v3130_v1  ;;  %3622 = vrot.lane.b32.xlu0 %v7950_v7, %s6868_s1 }
 0x485   : > { %v3901_v20 = vpop.permute.xlu0 %3900  ;;  %v8018_v38 = vpop.permute.xlu1 %3099 }
 0x486   : > { %v3963_v19 = vsel %vm1566_vm0, %v3901_v20, 0 }
 0x487   : > { %3636 = vrot.lane.b32.xlu0 %v7956_v16, %s6868_s1 }
 0x489   : > { %5580 = vmatmul.mubr.msk.bf16.gmra.mxu1 %vm1566_vm0, %v2325_v42  ;;  %v3098_v17 = vpop.permute.xlu0 %3097  ;;  %v3913_v18 = vpop.permute.xlu1 %3912 }
 0x48a   : > { %5660 = vmatpush3.bf16.xpose.msra.mxu1 %v3172_v39  ;;  %5581 = vmatprep.mubr.msk.bf16.mxu1 %vm1566_vm0, %v2327_v55 }
 0x48b   : > { %5975 = vmatprep.subr.msk.bf16.mxu1 %vm1566_vm0, %v3128_v6  ;;  %3634 = vrot.lane.b32.xlu0 %v7961_v59, %s6868_s1 }
 0x48d   : > { %v3915_v34 = vpop.permute.xlu0 %3914  ;;  %v8028_v45 = vpop.permute.xlu1 %3894 }
 0x48e   : > { %v3954_v56 = vsel %vm1566_vm0, %v8028_v45, 0 }
 0x48f   : > { %3618 = vrot.lane.b32.xlu0 %v7971_v41, %s6868_s1 }
 0x491   : > { %5582 = vmatmul.mubr.msk.bf16.gmra.mxu1 %vm1566_vm0, %v2327_v55  ;;  %v3897_v60 = vpop.permute.xlu0 %3896  ;;  %v8034_v28 = vpop.permute.xlu1 %3103 }
 0x492   : > { %5662 = vmatpush3.bf16.xpose.msra.mxu1 %v3169_v46  ;;  %5583 = vmatprep.mubr.msk.bf16.mxu1 %vm1566_vm0, %v2329_v9  ;;  %v3957_v36 = vsel %vm1566_vm0, %v3897_v60, 0 }
 0x493   : > { %5976 = vmatprep.subr.msk.bf16.mxu1 %vm1566_vm0, %v3126_v4  ;;  %3632 = vrot.lane.b32.xlu0 %v7978_v23, %s6868_s1 }
 0x495   : > { %v8040_v52 = vpop.permute.xlu0 %3101  ;;  %v8042_v32 = vpop.permute.xlu1 %3908 }
 0x497   : > { %3630 = vrot.lane.b32.xlu0 %v6644_v51, %s6868_s1 }
 0x499   : > { %5584 = vmatmul.mubr.msk.bf16.gmra.mxu1 %vm1566_vm0, %v2329_v9  ;;  %v3911_v57 = vpop.permute.xlu0 %3910  ;;  %v8047_v15 = vpop.permute.xlu1 %3890 }
 0x49a   : > { %5664 = vmatpush3.bf16.xpose.msra.mxu1 %v3166_v58  ;;  %5665 = vmatprep.mubr.msk.bf16.mxu1 %vm1566_vm0, %v3094_v29 }
 0x49b   : > { %5977 = vmatprep.subr.msk.bf16.mxu1 %vm1566_vm0, %v3919_v13  ;;  %3614 = vrot.lane.b32.xlu0 %v7991_v8, %s6868_s1 }
 0x49d   : > { %v8053_v24 = vpop.permute.xlu0 %3892  ;;  %v8056_v63 = vpop.permute.xlu1 %3107 }
 0x49f   : > { %4423 = vrot.lane.b32.xlu0 %v7921_v44, %s6869_s29 }
 0x4a1   : > { %5666 = vmatmul.mubr.msk.bf16.vlgmr.msra.gmra.mxu1 %vm1566_vm0, %v3094_v29  ;;  %v8061_v27 = vpop.permute.xlu0 %3105  ;;  %v8070_v48 = vpop.permute.xlu1 %3904 }
 0x4a2   : > { %5746 = vmatpush3.bf16.xpose.msra.mxu1 %v3966_v33  ;;  %5667 = vmatprep.mubr.msk.bf16.mxu1 %vm1566_vm0, %v8004_v61 }
 0x4a3   : > { %5978 = vmatprep.subr.msk.bf16.mxu1 %vm1566_vm0, %v3917_v47  ;;  %4421 = vrot.lane.b32.xlu0 %v7927_v53, %s6869_s29 }
 0x4a5   : > { %v8068_v62 = vpop.permute.xlu0 %3906  ;;  %v8079_v2 = vpop.permute.xlu1 %3874 }
 0x4a7   : > { %4419 = vrot.lane.b32.xlu0 %v7933_v30, %s6869_s29  ;;  %v3960_v30 = vsel %vm1566_vm0, %v3899_v43, 0  ;;  %v3951_v43 = vsel %vm1566_vm0, %v8053_v24, 0 }
 0x4a9   : > { %5668 = vmatmul.mubr.msk.bf16.gmra.mxu1 %vm1566_vm0, %v8004_v61  ;;  %v8077_v44 = vpop.permute.xlu0 %3888  ;;  %v8087_v0 = vpop.permute.xlu1 %3878 }
 0x4aa   : > { %5748 = vmatpush3.bf16.xpose.msra.mxu1 %v3963_v19  ;;  %5669 = vmatprep.mubr.msk.bf16.mxu1 %vm1566_vm0, %v3098_v17 }
 0x4ab   : > { %5979 = vmatprep.subr.msk.bf16.mxu1 %vm1566_vm0, %v3915_v34  ;;  %4403 = vrot.lane.b32.xlu0 %v7914_v21, %s6869_s29 }
 0x4ad   : > { %v8085_v53 = vpop.permute.xlu0 %3872  ;;  %v8095_v7 = vpop.permute.xlu1 %3882 }
 0x4af   : > { %4415 = vrot.lane.b32.xlu0 %v7956_v16, %s6869_s29 }
 0x4b0   : > { %v5505_v54 = vpop.f32.mrf.mxu1 }
 0x4b1   : > { %5670 = vmatmul.mubr.msk.bf16.gmra.mxu1 %vm1566_vm0, %v3098_v17  ;;  %v8093_v50 = vpop.permute.xlu0 %3876  ;;  %v8102_v16 = vpop.permute.xlu1 %3886 }
 0x4b2   : > { %5750 = vmatpush3.bf16.xpose.msra.mxu1 %v3960_v30  ;;  %v5506_v49 = vpop.f32.mrf.mxu1  ;;  %5671 = vmatprep.mubr.msk.bf16.mxu1 %vm1566_vm0, %v8018_v38 }
 0x4b3   : > { %v5507_v21 = vadd.f32 %v5506_v49, %v5505_v54  ;;  %5980 = vmatprep.subr.msk.bf16.mxu1 %vm1566_vm0, %v3913_v18  ;;  %v3945_v49 = vsel %vm1566_vm0, %v8077_v44, 0 }
 0x4b4   : > { %v5508_v12 = vpop.f32.mrf.mxu1 }
 0x4b5   : > { %v5369_v22 = vpack.c.bf16 %v5507_v21, %v5507_v21  ;;  %v8100_v37 = vpop.permute.xlu0 %3880  ;;  %v2850_v1 = vpop.permute.xlu1 %2849 }
 0x4b6   : > { %v5509_v59 = vpop.f32.mrf.mxu1 }
 0x4b7   : > { %2298 = vst.msk [vmem:[#allocation3] sm:$0xf] %vm2297_vm14, %v5369_v22  ;;  %v5510_v10 = vadd.f32 %v5509_v59, %v5508_v12 }
 0x4b8   : > { %v5511_v42 = vpop.f32.mrf.mxu1 }
 0x4b9   : > { %v5370_v41 = vpack.c.bf16 %v5510_v10, %v5510_v10  ;;  %5672 = vmatmul.mubr.msk.bf16.gmra.mxu1 %vm1566_vm0, %v8018_v38  ;;  %v8108_v25 = vpop.permute.xlu0 %3884  ;;  %v2848_v8 = vpop.permute.xlu1 %2847 }
 0x4ba   : > { %5752 = vmatpush3.bf16.xpose.msra.mxu1 %v3957_v36  ;;  %v5512_v11 = vpop.f32.mrf.mxu1  ;;  %5673 = vmatprep.mubr.msk.bf16.mxu1 %vm1566_vm0, %v8040_v52 }
 0x4bb   : > { %2299 = vst.msk [vmem:[#allocation3 + $0x4] sm:$0xf] %vm2297_vm14, %v5370_v41  ;;  %v5513_v23 = vadd.f32 %v5512_v11, %v5511_v42  ;;  %5981 = vmatprep.subr.msk.bf16.mxu1 %vm1566_vm0, %v3911_v57 }
 0x4bc   : > { %v5514_v5 = vpop.f32.mrf.mxu1 }
 0x4bd   : > { %v5371_v3 = vpack.c.bf16 %v5513_v23, %v5513_v23  ;;  %v2866_v51 = vpop.permute.xlu0 %2865  ;;  %v2846_v47 = vpop.permute.xlu1 %2845 }
 0x4be   : > { %v5515_v40 = vpop.f32.mrf.mxu1  ;;  %5585 = vmatprep.subr.bf16.mxu0 %v2866_v51 }
 0x4bf   : > { %2300 = vst.msk [vmem:[#allocation3 + $0x8] sm:$0xf] %vm2297_vm14, %v5371_v3  ;;  %v5516_v9 = vadd.f32 %v5515_v40, %v5514_v5  ;;  %5586 = vmatpush3.bf16.msra.mxu0 %v2850_v1 }
 0x4c0   : > { %v5517_v55 = vpop.f32.mrf.mxu1 }
 0x4c1   : > { %v5372_v4 = vpack.c.bf16 %v5516_v9, %v5516_v9  ;;  %5674 = vmatmul.mubr.msk.bf16.gmra.mxu1 %vm1566_vm0, %v8040_v52  ;;  %v2864_v6 = vpop.permute.xlu0 %2863  ;;  %v3948_v52 = vsel %vm1566_vm0, %v8047_v15, 0  ;;  %v2842_v24 = vpop.permute.xlu1 %2841 }
 0x4c2   : > { %5754 = vmatpush3.bf16.xpose.msra.mxu1 %v3954_v56  ;;  %v5518_v35 = vpop.f32.mrf.mxu1  ;;  %5675 = vmatprep.mubr.msk.bf16.mxu1 %vm1566_vm0, %v8034_v28 }
 0x4c3   : > { %2301 = vst.msk [vmem:[#allocation3 + $0xc] sm:$0xf] %vm2297_vm14, %v5372_v4  ;;  %v5519_v31 = vadd.f32 %v5518_v35, %v5517_v55  ;;  %5982 = vmatprep.subr.msk.bf16.mxu1 %vm1566_vm0, %v8042_v32  ;;  %5587 = vmatprep.subr.bf16.mxu0 %v2864_v6 }
 0x4c4   : > { %v5520_v26 = vpop.f32.mrf.mxu1  ;;  %5588 = vmatpush3.bf16.msra.mxu0 %v2848_v8 }
 0x4c5   : > { %v5373_v61 = vpack.c.bf16 %v5519_v31, %v5519_v31  ;;  %v2862_v29 = vpop.permute.xlu0 %2861  ;;  %v2838_v36 = vpop.permute.xlu1 %2837 }
 0x4c6   : > { %v5521_v14 = vpop.f32.mrf.mxu1  ;;  %5589 = vmatprep.subr.bf16.mxu0 %v2862_v29 }
 0x4c7   : > { %2302 = vst.msk [vmem:[#allocation3 + $0x10] sm:$0xf] %vm2297_vm14, %v5373_v61  ;;  %v5522_v13 = vadd.f32 %v5521_v14, %v5520_v26 }
 0x4c8   : > { %v5523_v20 = vpop.f32.mrf.mxu1  ;;  %5590 = vmatpush3.bf16.msra.mxu0 %v2846_v47  ;;  %v9766_v47 = vld [vmem:[#allocation21_spill] sm:$0xff] }
 0x4c9   : > { %v5374_v38 = vpack.c.bf16 %v5522_v13, %v5522_v13  ;;  %5676 = vmatmul.mubr.msk.bf16.gmra.mxu1 %vm1566_vm0, %v8034_v28  ;;  %v2860_v39 = vpop.permute.xlu0 %2859 }
 0x4ca   : > { %5756 = vmatpush3.bf16.xpose.msra.mxu1 %v3951_v43  ;;  %v5524_v17 = vpop.f32.mrf.mxu1  ;;  %5677 = vmatprep.mubr.msk.bf16.mxu1 %vm1566_vm0, %v8061_v27 }
 0x4cb   : > { %2303 = vst.msk [vmem:[#allocation3 + $0x14] sm:$0xf] %vm2297_vm14, %v5374_v38  ;;  %v5525_v18 = vadd.f32 %v5524_v17, %v5523_v20  ;;  %5983 = vmatprep.subr.msk.bf16.mxu1 %vm1566_vm0, %v8068_v62  ;;  %5591 = vmatprep.subr.bf16.mxu0 %v2860_v39 }
 0x4cc   : > { %v5526_v34 = vpop.f32.mrf.mxu1 }
 0x4cd   : > { %v5375_v45 = vpack.c.bf16 %v5525_v18, %v5525_v18  ;;  %v2844_v46 = vpop.permute.xlu0 %2843 }
 0x4ce   : > { %v5527_v60 = vpop.f32.mrf.mxu1  ;;  %5592 = vmatpush3.bf16.msra.mxu0 %v2844_v46 }
 0x4cf   : > { %2304 = vst.msk [vmem:[#allocation3 + $0x18] sm:$0xf] %vm2297_vm14, %v5375_v45  ;;  %v5528_v28 = vadd.f32 %v5527_v60, %v5526_v34 }
 0x4d0   : > { %v5529_v32 = vpop.f32.mrf.mxu1 }
 0x4d1   : > { %v5376_v58 = vpack.c.bf16 %v5528_v28, %v5528_v28  ;;  %5678 = vmatmul.mubr.msk.bf16.gmra.mxu1 %vm1566_vm0, %v8061_v27  ;;  %v2858_v57 = vpop.permute.xlu0 %2857 }
 0x4d2   : > { %5758 = vmatpush3.bf16.xpose.msra.mxu1 %v3948_v52  ;;  %v5530_v33 = vpop.f32.mrf.mxu1  ;;  %5679 = vmatprep.mubr.msk.bf16.mxu1 %vm1566_vm0, %v8056_v63 }
 0x4d3   : > { %2305 = vst.msk [vmem:[#allocation3 + $0x1c] sm:$0xf] %vm2297_vm14, %v5376_v58  ;;  %v5531_v62 = vadd.f32 %v5530_v33, %v5529_v32  ;;  %5984 = vmatprep.subr.msk.bf16.mxu1 %vm1566_vm0, %v8070_v48  ;;  %5593 = vmatprep.subr.bf16.mxu0 %v2858_v57 }
 0x4d4   : > { %v5532_v15 = vpop.f32.mrf.mxu1  ;;  %5594 = vmatpush3.bf16.msra.mxu0 %v2842_v24 }
 0x4d5   : > { %v5377_v19 = vpack.c.bf16 %v5531_v62, %v5531_v62  ;;  %v2856_v30 = vpop.permute.xlu0 %2855 }
 0x4d6   : > { %v5533_v54 = vpop.f32.mrf.mxu1  ;;  %5595 = vmatprep.subr.bf16.mxu0 %v2856_v30 }
 0x4d7   : > { %2306 = vst.msk [vmem:[#allocation3 + $0x20] sm:$0xf] %vm2297_vm14, %v5377_v19  ;;  %v5534_v27 = vadd.f32 %v5533_v54, %v5532_v15 }
 0x4d8   : > { %v5535_v21 = vpop.f32.mrf.mxu1 }
 0x4d9   : > { %v5378_v12 = vpack.c.bf16 %v5534_v27, %v5534_v27  ;;  %5680 = vmatmul.mubr.msk.bf16.gmra.mxu1 %vm1566_vm0, %v8056_v63  ;;  %v2840_v22 = vpop.permute.xlu0 %2839 }
 0x4da   : > { %5760 = vmatpush3.bf16.xpose.msra.mxu1 %v3945_v49  ;;  %v5536_v48 = vpop.f32.mrf.mxu1  ;;  %5761 = vmatprep.mubr.msk.bf16.mxu1 %vm1566_vm0, %v8085_v53 }
 0x4db   : > { %2307 = vst.msk [vmem:[#allocation3 + $0x24] sm:$0xf] %vm2297_vm14, %v5378_v12  ;;  %v5537_v59 = vadd.f32 %v5536_v48, %v5535_v21  ;;  %5596 = vmatpush3.bf16.msra.mxu0 %v2840_v22  ;;  %v9771_v12 = vld [vmem:[#allocation26_spill] sm:$0xff] }
 0x4dc   : > { %v5538_v10 = vpop.f32.mrf.mxu1 }
 0x4dd   : > { %v5379_v42 = vpack.c.bf16 %v5537_v59, %v5537_v59  ;;  %v2854_v41 = vpop.permute.xlu0 %2853 }
 0x4de   : > { %v5539_v44 = vpop.f32.mrf.mxu1  ;;  %5597 = vmatprep.subr.bf16.mxu0 %v2854_v41 }
 0x4df   : > { %2308 = vst.msk [vmem:[#allocation3 + $0x28] sm:$0xf] %vm2297_vm14, %v5379_v42  ;;  %v5540_v1 = vadd.f32 %v5539_v44, %v5538_v10  ;;  %5598 = vmatpush3.bf16.msra.mxu0 %v2838_v36  ;;  %v9773_v42 = vld [vmem:[#allocation27_spill] sm:$0xff] }
 0x4e0   : > { %v5541_v63 = vpop.f32.mrf.mxu1 }
 0x4e1   : > { %v5380_v11 = vpack.c.bf16 %v5540_v1, %v5540_v1  ;;  %5762 = vmatmul.mubr.msk.bf16.vlgmr.msra.gmra.mxu1 %vm1566_vm0, %v8085_v53  ;;  %v2852_v23 = vpop.permute.xlu0 %2851 }
 0x4e2   : > { %v5542_v5 = vpop.f32.mrf.mxu1  ;;  %5763 = vmatprep.mubr.msk.bf16.mxu1 %vm1566_vm0, %v8079_v2  ;;  %5599 = vmatprep.subr.bf16.mxu0 %v2852_v23  ;;  %v9776_v23 = vld [vmem:[#allocation28_spill] sm:$0xff] }
 0x4e3   : > { %2309 = vst.msk [vmem:[#allocation3 + $0x2c] sm:$0xf] %vm2297_vm14, %v5380_v11  ;;  %v5543_v3 = vadd.f32 %v5542_v5, %v5541_v63 }
 0x4e4   : > { %v5544_v51 = vpop.f32.mrf.mxu1 }
 0x4e5   : > { %v5381_v40 = vpack.c.bf16 %v5543_v3, %v5543_v3  ;;  %v2836_v9 = vpop.permute.xlu0 %2835 }
 0x4e6   : > { %v5545_v56 = vpop.f32.mrf.mxu1  ;;  %5600 = vmatpush3.bf16.msra.mxu0 %v2836_v9 }
 0x4e7   : > { %2310 = vst.msk [vmem:[#allocation3 + $0x30] sm:$0xf] %vm2297_vm14, %v5381_v40  ;;  %v5546_v8 = vadd.f32 %v5545_v56, %v5544_v51  ;;  %v9779_v56 = vld [vmem:[#allocation29_spill] sm:$0xff] }
 0x4e9   : > { %v5382_v55 = vpack.c.bf16 %v5546_v8, %v5546_v8  ;;  %5764 = vmatmul.mubr.msk.bf16.gmra.mxu1 %vm1566_vm0, %v8079_v2  ;;  %v3645_v53 = vpop.permute.xlu0 %3644 }
 0x4ea   : > { %5765 = vmatprep.mubr.msk.bf16.mxu1 %vm1566_vm0, %v8093_v50  ;;  %5681 = vmatprep.subr.bf16.mxu0 %v3645_v53 }
 0x4eb   : > { %2311 = vst.msk [vmem:[#allocation3 + $0x34] sm:$0xf] %vm2297_vm14, %v5382_v55 }
 0x4f1   : > { %5766 = vmatmul.mubr.msk.bf16.gmra.mxu1 %vm1566_vm0, %v8093_v50 }
 0x4f2   : > { %5767 = vmatprep.mubr.msk.bf16.mxu1 %vm1566_vm0, %v8087_v0 }
 0x4f9   : > { %5768 = vmatmul.mubr.msk.bf16.gmra.mxu1 %vm1566_vm0, %v8087_v0 }
 0x4fa   : > { %5769 = vmatprep.mubr.msk.bf16.mxu1 %vm1566_vm0, %v8100_v37 }
 0x501   : > { %5770 = vmatmul.mubr.msk.bf16.gmra.mxu1 %vm1566_vm0, %v8100_v37 }
 0x502   : > { %5771 = vmatprep.mubr.msk.bf16.mxu1 %vm1566_vm0, %v8095_v7 }
 0x509   : > { %5772 = vmatmul.mubr.msk.bf16.gmra.mxu1 %vm1566_vm0, %v8095_v7 }
 0x50a   : > { %5773 = vmatprep.mubr.msk.bf16.mxu1 %vm1566_vm0, %v8108_v25 }
 0x511   : > { %5774 = vmatmul.mubr.msk.bf16.gmra.mxu1 %vm1566_vm0, %v8108_v25  ;;  %v9764_v25 = vld [vmem:[#allocation19_spill] sm:$0xff] }
 0x512   : > { %5775 = vmatprep.mubr.msk.bf16.mxu1 %vm1566_vm0, %v8102_v16 }
 0x519   : > { %v5547_v2 = vpop.f32.mrf.mxu1  ;;  %5776 = vmatmul.mubr.msk.bf16.gmra.mxu1 %vm1566_vm0, %v8102_v16  ;;  %vm9772_vm0 = vcmp.le.s32.totalorder %v9766_v47, %v9771_v12 }
 0x51b   : > { %v5548_v0 = vpop.f32.mrf.mxu1 }
 0x51c   : > { %v5549_v50 = vadd.f32 %v5548_v0, %v5547_v2 }
 0x51d   : > { %v5550_v37 = vpop.f32.mrf.mxu1 }
 0x51e   : > { %v5383_v4 = vpack.c.bf16 %v5549_v50, %v5549_v50  ;;  %v9782_v50 = vld [vmem:[#allocation30_spill] sm:$0xff] }
 0x51f   : > { %v5551_v6 = vpop.f32.mrf.mxu1 }
 0x520   : > { %2312 = vst.msk [vmem:[#allocation3 + $0x38] sm:$0xf] %vm2297_vm14, %v5383_v4  ;;  %v5552_v7 = vadd.f32 %v5551_v6, %v5550_v37 }
 0x521   : > { %v2468_v35 = vpop.f32.mrf.mxu1 }
 0x522   : > { %v5384_v31 = vpack.c.bf16 %v5552_v7, %v5552_v7  ;;  %v8191_v29 = vsel %vm1414_vm1, %v2468_v35, -inf }
 0x523   : > { %v2470_v26 = vpop.f32.mrf.mxu1 }
 0x524   : > { %2313 = vst.msk [vmem:[#allocation3 + $0x3c] sm:$0xf] %vm2297_vm14, %v5384_v31  ;;  %v8196_v16 = vsel %vm1415_vm2, %v2470_v26, -inf  ;;  %vm9774_vm14 = vcmp.le.s32.totalorder %v9764_v25, %v9773_v42  ;;  %v9785_v31 = vld [vmem:[#allocation31_spill] sm:$0xff] }
 0x525   : > { %v2579_v14 = vmax.f32 %v8191_v29, %v8196_v16  ;;  %v2472_v13 = vpop.f32.mrf.mxu1 }
 0x526   : > { %v8203_v38 = vsel %vm1416_vm3, %v2472_v13, -inf }
 0x527   : > { %2580 = vmax.xlane.f32.xlu0 %v2579_v14  ;;  %v2474_v43 = vpop.f32.mrf.mxu1 }
 0x528   : > { %v8208_v39 = vsel %vm1417_vm4, %v2474_v43, -inf }
 0x529   : > { %v2582_v17 = vmax.f32 %v8203_v38, %v8208_v39  ;;  %v2478_v18 = vpop.f32.mrf.mxu1 }
 0x52a   : > { %v8215_v46 = vsel %vm1418_vm5, %v2478_v18, -inf  ;;  %v9788_v18 = vld [vmem:[#allocation32_spill] sm:$0xff] }
 0x52b   : > { %2583 = vmax.xlane.f32.xlu1 %v2582_v17  ;;  %v2480_v34 = vpop.f32.mrf.mxu1 }
 0x52c   : > { %v8220_v60 = vsel %vm1419_vm6, %v2480_v34, -inf }
 0x52d   : > { %v2585_v28 = vmax.f32 %v8215_v46, %v8220_v60  ;;  %v2482_v52 = vpop.f32.mrf.mxu1 }
 0x52e   : > { %v8227_v57 = vsel %vm1420_vm7, %v2482_v52, -inf }
 0x52f   : > { %2586 = vmax.xlane.f32.xlu0 %v2585_v28  ;;  %v2484_v32 = vpop.f32.mrf.mxu1 }
 0x530   : > { %v8232_v24 = vsel %vm1421_vm8, %v2484_v32, -inf }
 0x531   : > { %v2588_v33 = vmax.f32 %v8227_v57, %v8232_v24  ;;  %v2488_v62 = vpop.f32.mrf.mxu1 }
 0x532   : > { %v8239_v30 = vsel %vm1422_vm9, %v2488_v62, -inf  ;;  %v9791_v62 = vld [vmem:[#allocation33_spill] sm:$0xff] }
 0x533   : > { %2589 = vmax.xlane.f32.xlu0 %v2588_v33  ;;  %v2490_v15 = vpop.f32.mrf.mxu1 }
 0x534   : > { %v8244_v54 = vsel %vm1423_vm10, %v2490_v15, -inf }
 0x535   : > { %v2591_v27 = vmax.f32 %v8239_v30, %v8244_v54  ;;  %v2492_v49 = vpop.f32.mrf.mxu1 }
 0x536   : > { %v8251_v22 = vsel %vm9624_vm11, %v2492_v49, -inf  ;;  %vm9775_vm11 = vcmp.le.s32.totalorder %v9766_v47, %v9773_v42 }
 0x537   : > { %2592 = vmax.xlane.f32.xlu0 %v2591_v27  ;;  %v2494_v21 = vpop.f32.mrf.mxu1 }
 0x538   : > { %v8256_v48 = vsel %vm9772_vm0, %v2494_v21, -inf  ;;  %vm9777_vm0 = vcmp.le.s32.totalorder %v9764_v25, %v9776_v23 }
 0x539   : > { %v2594_v59 = vmax.f32 %v8251_v22, %v8256_v48  ;;  %v2498_v10 = vpop.f32.mrf.mxu1 }
 0x53a   : > { %v8263_v41 = vsel %vm9774_vm14, %v2498_v10, -inf  ;;  %vm9778_vm14 = vcmp.le.s32.totalorder %v9766_v47, %v9776_v23 }
 0x53b   : > { %2595 = vmax.xlane.f32.xlu1 %v2594_v59  ;;  %v2500_v36 = vpop.f32.mrf.mxu1 }
 0x53c   : > { %v8268_v44 = vsel %vm9775_vm11, %v2500_v36, -inf  ;;  %vm9780_vm11 = vcmp.le.s32.totalorder %v9764_v25, %v9779_v56 }
 0x53d   : > { %v2597_v1 = vmax.f32 %v8263_v41, %v8268_v44  ;;  %v2502_v63 = vpop.f32.mrf.mxu1 }
 0x53e   : > { %v8275_v5 = vsel %vm9777_vm0, %v2502_v63, -inf  ;;  %vm9781_vm0 = vcmp.le.s32.totalorder %v9766_v47, %v9779_v56  ;;  %v8354_v63 = vpop.permute.xlu0 %3642 }
 0x53f   : > { %2598 = vmax.xlane.f32.xlu0 %v2597_v1  ;;  %v2504_v11 = vpop.f32.mrf.mxu1  ;;  %9795 = vst [vmem:[#allocation39_spill] sm:$0xff] %v8354_v63 }
 0x540   : > { %v8280_v3 = vsel %vm9778_vm14, %v2504_v11, -inf  ;;  %vm9783_vm14 = vcmp.le.s32.totalorder %v9764_v25, %v9782_v50 }
 0x541   : > { %v2600_v51 = vmax.f32 %v8275_v5, %v8280_v3  ;;  %v2508_v40 = vpop.f32.mrf.mxu1 }
 0x542   : > { %v8287_v8 = vsel %vm9780_vm11, %v2508_v40, -inf  ;;  %vm9784_vm11 = vcmp.le.s32.totalorder %v9766_v47, %v9782_v50 }
 0x543   : > { %2601 = vmax.xlane.f32.xlu1 %v2600_v51  ;;  %v2510_v9 = vpop.f32.mrf.mxu1 }
 0x544   : > { %v8292_v55 = vsel %vm9781_vm0, %v2510_v9, -inf  ;;  %vm9786_vm0 = vcmp.le.s32.totalorder %v9764_v25, %v9785_v31  ;;  %v9796_v9 = vld [vmem:[#allocation35_spill] sm:$0xff] }
 0x545   : > { %v2603_v53 = vmax.f32 %v8287_v8, %v8292_v55  ;;  %v2512_v2 = vpop.f32.mrf.mxu1 }
 0x546   : > { %v8299_v37 = vsel %vm9783_vm14, %v2512_v2, -inf  ;;  %vm9787_vm14 = vcmp.le.s32.totalorder %v9766_v47, %v9785_v31 }
 0x547   : > { %2604 = vmax.xlane.f32.xlu0 %v2603_v53  ;;  %v2514_v0 = vpop.f32.mrf.mxu1 }
 0x548   : > { %v8304_v4 = vsel %vm9784_vm11, %v2514_v0, -inf  ;;  %vm9789_vm11 = vcmp.le.s32.totalorder %v9764_v25, %v9788_v18 }
 0x549   : > { %v2606_v6 = vmax.f32 %v8299_v37, %v8304_v4  ;;  %v2518_v7 = vpop.f32.mrf.mxu1 }
 0x54a   : > { %v8311_v26 = vsel %vm9786_vm0, %v2518_v7, -inf  ;;  %vm9790_vm0 = vcmp.le.s32.totalorder %v9766_v47, %v9788_v18  ;;  %v8370_v7 = vpop.permute.xlu0 %3640 }
 0x54b   : > { %2607 = vmax.xlane.f32.xlu1 %v2606_v6  ;;  %v2520_v35 = vpop.f32.mrf.mxu1  ;;  %9799 = vst [vmem:[#allocation37_spill] sm:$0xff] %v8370_v7 }
 0x54c   : > { %v8316_v14 = vsel %vm9787_vm14, %v2520_v35, -inf  ;;  %vm9792_vm14 = vcmp.le.s32.totalorder %v9764_v25, %v9791_v62 }
 0x54d   : > { %v2609_v13 = vmax.f32 %v8311_v26, %v8316_v14  ;;  %v2522_v43 = vpop.f32.mrf.mxu1 }
 0x54e   : > { %v8323_v34 = vsel %vm9789_vm11, %v2522_v43, -inf  ;;  %vm9793_vm11 = vcmp.le.s32.totalorder %v9766_v47, %v9791_v62 }
 0x54f   : > { %2610 = vmax.xlane.f32.xlu0 %v2609_v13  ;;  %v2524_v17 = vpop.f32.mrf.mxu1  ;;  %v9800_v13 = vld [vmem:[#allocation36_spill] sm:$0xff] }
 0x550   : > { %v8328_v28 = vsel %vm9790_vm0, %v2524_v17, -inf  ;;  %vm9797_vm0 = vcmp.le.s32.totalorder %v9764_v25, %v9796_v9 }
 0x551   : > { %v2612_v52 = vmax.f32 %v8323_v34, %v8328_v28  ;;  %v2528_v32 = vpop.f32.mrf.mxu1 }
 0x552   : > { %v8335_v15 = vsel %vm9792_vm14, %v2528_v32, -inf  ;;  %vm9798_vm14 = vcmp.le.s32.totalorder %v9766_v47, %v9796_v9 }
 0x553   : > { %2613 = vmax.xlane.f32.xlu1 %v2612_v52  ;;  %v2530_v33 = vpop.f32.mrf.mxu1 }
 0x554   : > { %v8340_v27 = vsel %vm9793_vm11, %v2530_v33, -inf  ;;  %vm9801_vm11 = vcmp.le.s32.totalorder %v9766_v47, %v9800_v13 }
 0x555   : > { %v2615_v49 = vmax.f32 %v8335_v15, %v8340_v27  ;;  %v2532_v21 = vpop.f32.mrf.mxu1 }
 0x556   : > { %v8347_v36 = vsel %vm1440_vm12, %v2532_v21, -inf }
 0x557   : > { %2616 = vmax.xlane.f32.xlu0 %v2615_v49  ;;  %v2534_v59 = vpop.f32.mrf.mxu1 }
 0x558   : > { %v8352_v1 = vsel %vm1441_vm15, %v2534_v59, -inf  ;;  %v8394_v59 = vpop.permute.xlu0 %3638 }
 0x559   : > { %v2618_v11 = vmax.f32 %v8347_v36, %v8352_v1  ;;  %v2538_v51 = vpop.f32.mrf.mxu1  ;;  %9802 = vst [vmem:[#allocation38_spill] sm:$0xff] %v8394_v59 }
 0x55a   : > { %v8361_v53 = vsel %vm9797_vm0, %v2538_v51, -inf  ;;  %vm9812_vm0 = vcmp.le.s32.totalorder %v9764_v25, %v9771_v12 }
 0x55b   : > { %2619 = vmax.xlane.f32.xlu1 %v2618_v11  ;;  %v2540_v40 = vpop.f32.mrf.mxu1 }
 0x55c   : > { %v8366_v2 = vsel %vm9798_vm14, %v2540_v40, -inf  ;;  %vm9814_vm14 = vcmp.le.s32.totalorder %v9766_v47, %v9771_v12 }
 0x55d   : > { %v2621_v0 = vmax.f32 %v8361_v53, %v8366_v2  ;;  %v2542_v6 = vpop.f32.mrf.mxu1 }
 0x55e   : > { %v8375_v43 = vsel %vm1444_vm13, %v2542_v6, -inf }
 0x55f   : > { %2622 = vmax.xlane.f32.xlu0 %v2621_v0  ;;  %v2544_v35 = vpop.f32.mrf.mxu1 }
 0x560   : > { %v8380_v17 = vsel %vm9801_vm11, %v2544_v35, -inf  ;;  %vm9817_vm11 = vcmp.le.s32.totalorder %v9764_v25, %v9773_v42 }
 0x561   : > { %v2624_v52 = vmax.f32 %v8375_v43, %v8380_v17  ;;  %v3247_v32 = vpop.f32.mrf.mxu1 }
 0x562   : > { %v8387_v49 = vsel %vm1414_vm1, %v3247_v32, -inf  ;;  %v8410_v32 = vpop.permute.xlu0 %3622 }
 0x563   : > { %2625 = vmax.xlane.f32.xlu1 %v2624_v52  ;;  %v3249_v33 = vpop.f32.mrf.mxu1  ;;  %9803 = vst [vmem:[#allocation41_spill] sm:$0xff] %v8410_v32 }
 0x564   : > { %v8392_v21 = vsel %vm1415_vm2, %v3249_v33, -inf }
 0x565   : > { %v3358_v11 = vmax.f32 %v8387_v49, %v8392_v21  ;;  %v3251_v51 = vpop.f32.mrf.mxu1 }
 0x566   : > { %v8401_v0 = vsel %vm1416_vm3, %v3251_v51, -inf  ;;  %v8429_v32 = vpop.permute.xlu0 %3636 }
 0x567   : > { %3359 = vmax.xlane.f32.xlu0 %v3358_v11  ;;  %v3253_v40 = vpop.f32.mrf.mxu1  ;;  %9807 = vst [vmem:[#allocation19_spill] sm:$0xff] %v8429_v32 }
 0x568   : > { %v8406_v6 = vsel %vm1417_vm4, %v3253_v40, -inf }
 0x569   : > { %v3361_v35 = vmax.f32 %v8401_v0, %v8406_v6  ;;  %v3257_v52 = vpop.f32.mrf.mxu1 }
 0x56a   : > { %v8415_v11 = vsel %vm1418_vm5, %v3257_v52, -inf }
 0x56b   : > { %3362 = vmax.xlane.f32.xlu1 %v3361_v35  ;;  %v3259_v33 = vpop.f32.mrf.mxu1  ;;  %9804 = vst [vmem:[#allocation43_spill] sm:$0xff] %v8415_v11 }
 0x56c   : > { %v8420_v51 = vsel %vm1419_vm6, %v3259_v33, -inf }
 0x56d   : > { %9805 = vst [vmem:[#allocation40_spill] sm:$0xff] %v8420_v51  ;;  %v3364_v40 = vmax.f32 %v8415_v11, %v8420_v51  ;;  %v3261_v59 = vpop.f32.mrf.mxu1  ;;  %v8450_v11 = vpop.permute.xlu0 %3634 }
 0x56e   : > { %v8427_v35 = vsel %vm1420_vm7, %v3261_v59, -inf  ;;  %9811 = vst [vmem:[#allocation23_spill] sm:$0xff] %v8450_v11 }
 0x56f   : > { %3365 = vmax.xlane.f32.xlu0 %v3364_v40  ;;  %v3263_v7 = vpop.f32.mrf.mxu1  ;;  %9806 = vst [vmem:[#allocation42_spill] sm:$0xff] %v8427_v35 }
 0x570   : > { %v8434_v52 = vsel %vm1421_vm8, %v3263_v7, -inf }
 0x571   : > { %9808 = vst [vmem:[#allocation20_spill] sm:$0xff] %v8434_v52  ;;  %v3367_v33 = vmax.f32 %v8427_v35, %v8434_v52  ;;  %v3267_v63 = vpop.f32.mrf.mxu1 }
 0x572   : > { %v8441_v40 = vsel %vm1422_vm9, %v3267_v63, -inf }
 0x573   : > { %3368 = vmax.xlane.f32.xlu1 %v3367_v33  ;;  %v3269_v51 = vpop.f32.mrf.mxu1  ;;  %9809 = vst [vmem:[#allocation21_spill] sm:$0xff] %v8441_v40 }
 0x574   : > { %v8446_v59 = vsel %vm1423_vm10, %v3269_v51, -inf }
 0x575   : > { %9810 = vst [vmem:[#allocation22_spill] sm:$0xff] %v8446_v59  ;;  %v3370_v7 = vmax.f32 %v8441_v40, %v8446_v59  ;;  %v3271_v32 = vpop.f32.mrf.mxu1  ;;  %v8464_v40 = vpop.permute.xlu0 %3618 }
 0x576   : > { %v8455_v33 = vsel %vm9812_vm0, %v3271_v32, -inf  ;;  %9816 = vst [vmem:[#allocation26_spill] sm:$0xff] %v8464_v40  ;;  %vm9819_vm0 = vcmp.le.s32.totalorder %v9766_v47, %v9773_v42 }
 0x577   : > { %3371 = vmax.xlane.f32.xlu0 %v3370_v7  ;;  %v3273_v52 = vpop.f32.mrf.mxu1  ;;  %9813 = vst [vmem:[#allocation24_spill] sm:$0xff] %v8455_v33 }
 0x578   : > { %v8460_v63 = vsel %vm9814_vm14, %v3273_v52, -inf  ;;  %vm9822_vm14 = vcmp.le.s32.totalorder %v9764_v25, %v9776_v23 }
 0x579   : > { %9815 = vst [vmem:[#allocation25_spill] sm:$0xff] %v8460_v63  ;;  %v3373_v51 = vmax.f32 %v8455_v33, %v8460_v63  ;;  %v3277_v35 = vpop.f32.mrf.mxu1 }
 0x57a   : > { %v8469_v7 = vsel %vm9817_vm11, %v3277_v35, -inf  ;;  %vm9824_vm11 = vcmp.le.s32.totalorder %v9766_v47, %v9776_v23 }
 0x57b   : > { %3374 = vmax.xlane.f32.xlu1 %v3373_v51  ;;  %v3279_v59 = vpop.f32.mrf.mxu1  ;;  %9818 = vst [vmem:[#allocation27_spill] sm:$0xff] %v8469_v7  ;;  %v8478_v51 = vpop.permute.xlu1 %3628 }
 0x57c   : > { %v8474_v32 = vsel %vm9819_vm0, %v3279_v59, -inf  ;;  %9821 = vst [vmem:[#allocation29_spill] sm:$0xff] %v8478_v51  ;;  %vm9827_vm0 = vcmp.le.s32.totalorder %v9764_v25, %v9779_v56 }
 0x57d   : > { %9820 = vst [vmem:[#allocation28_spill] sm:$0xff] %v8474_v32  ;;  %v3376_v52 = vmax.f32 %v8469_v7, %v8474_v32  ;;  %v3281_v11 = vpop.f32.mrf.mxu1  ;;  %v8492_v32 = vpop.permute.xlu0 %3632 }
 0x57e   : > { %v8483_v40 = vsel %vm9822_vm14, %v3281_v11, -inf  ;;  %9826 = vst [vmem:[#allocation32_spill] sm:$0xff] %v8492_v32  ;;  %vm9829_vm14 = vcmp.le.s32.totalorder %v9766_v47, %v9779_v56 }
 0x57f   : > { %3377 = vmax.xlane.f32.xlu0 %v3376_v52  ;;  %v3283_v63 = vpop.f32.mrf.mxu1  ;;  %9823 = vst [vmem:[#allocation30_spill] sm:$0xff] %v8483_v40 }
 0x580   : > { %v8488_v35 = vsel %vm9824_vm11, %v3283_v63, -inf  ;;  %vm9833_vm11 = vcmp.le.s32.totalorder %v9764_v25, %v9782_v50 }
 0x581   : > { %9825 = vst [vmem:[#allocation31_spill] sm:$0xff] %v8488_v35  ;;  %v3379_v59 = vmax.f32 %v8483_v40, %v8488_v35  ;;  %v3287_v33 = vpop.f32.mrf.mxu1  ;;  %v8506_v35 = vpop.permute.xlu1 %3626 }
 0x582   : > { %v8497_v51 = vsel %vm9827_vm0, %v3287_v33, -inf  ;;  %9831 = vst [vmem:[#allocation35_spill] sm:$0xff] %v8506_v35  ;;  %vm9835_vm0 = vcmp.le.s32.totalorder %v9766_v47, %v9782_v50 }
 0x583   : > { %3380 = vmax.xlane.f32.xlu1 %v3379_v59  ;;  %v3289_v52 = vpop.f32.mrf.mxu1  ;;  %9828 = vst [vmem:[#allocation33_spill] sm:$0xff] %v8497_v51  ;;  %v8508_v59 = vpop.permute.xlu0 %3630 }
 0x584   : > { %v8502_v11 = vsel %vm9829_vm14, %v3289_v52, -inf  ;;  %9832 = vst [vmem:[#allocation36_spill] sm:$0xff] %v8508_v59  ;;  %vm9838_vm14 = vcmp.le.s32.totalorder %v9764_v25, %v9785_v31 }
 0x585   : > { %9830 = vst [vmem:[#allocation34_spill] sm:$0xff] %v8502_v11  ;;  %v3382_v63 = vmax.f32 %v8497_v51, %v8502_v11  ;;  %v3291_v7 = vpop.f32.mrf.mxu1 }
 0x586   : > { %v8513_v33 = vsel %vm9833_vm11, %v3291_v7, -inf  ;;  %vm9840_vm11 = vcmp.le.s32.totalorder %v9766_v47, %v9785_v31 }
 0x587   : > { %3383 = vmax.xlane.f32.xlu0 %v3382_v63  ;;  %v3293_v32 = vpop.f32.mrf.mxu1  ;;  %9834 = vst [vmem:[#allocation44_spill] sm:$0xff] %v8513_v33  ;;  %v8522_v63 = vpop.permute.xlu1 %3624 }
 0x588   : > { %v8518_v52 = vsel %vm9835_vm0, %v3293_v32, -inf  ;;  %9837 = vst [vmem:[#allocation46_spill] sm:$0xff] %v8522_v63  ;;  %vm9843_vm0 = vcmp.le.s32.totalorder %v9764_v25, %v9788_v18 }
 0x589   : > { %9836 = vst [vmem:[#allocation45_spill] sm:$0xff] %v8518_v52  ;;  %v3385_v11 = vmax.f32 %v8513_v33, %v8518_v52  ;;  %v3297_v51 = vpop.f32.mrf.mxu1  ;;  %v8536_v52 = vpop.permute.xlu0 %3614 }
 0x58a   : > { %v8527_v59 = vsel %vm9838_vm14, %v3297_v51, -inf  ;;  %9842 = vst [vmem:[#allocation49_spill] sm:$0xff] %v8536_v52  ;;  %vm9845_vm14 = vcmp.le.s32.totalorder %v9766_v47, %v9788_v18 }
 0x58b   : > { %3386 = vmax.xlane.f32.xlu1 %v3385_v11  ;;  %v3299_v35 = vpop.f32.mrf.mxu1  ;;  %9839 = vst [vmem:[#allocation47_spill] sm:$0xff] %v8527_v59 }
 0x58c   : > { %v8532_v7 = vsel %vm9840_vm11, %v3299_v35, -inf  ;;  %vm9849_vm11 = vcmp.le.s32.totalorder %v9764_v25, %v9791_v62 }
 0x58d   : > { %9841 = vst [vmem:[#allocation48_spill] sm:$0xff] %v8532_v7  ;;  %v3388_v32 = vmax.f32 %v8527_v59, %v8532_v7  ;;  %v3301_v40 = vpop.f32.mrf.mxu1  ;;  %v8550_v7 = vpop.permute.xlu1 %3620 }
 0x58e   : > { %v8541_v63 = vsel %vm9843_vm0, %v3301_v40, -inf  ;;  %9847 = vst [vmem:[#allocation52_spill] sm:$0xff] %v8550_v7  ;;  %vm9851_vm0 = vcmp.le.s32.totalorder %v9766_v47, %v9791_v62 }
 0x58f   : > { %3389 = vmax.xlane.f32.xlu0 %v3388_v32  ;;  %v3303_v11 = vpop.f32.mrf.mxu1  ;;  %9844 = vst [vmem:[#allocation50_spill] sm:$0xff] %v8541_v63  ;;  %v8552_v32 = vpop.permute.xlu0 %4423 }
 0x590   : > { %v8546_v51 = vsel %vm9845_vm14, %v3303_v11, -inf  ;;  %9848 = vst [vmem:[#allocation53_spill] sm:$0xff] %v8552_v32  ;;  %vm9857_vm14 = vcmp.le.s32.totalorder %v9764_v25, %v9796_v9 }
 0x591   : > { %9846 = vst [vmem:[#allocation51_spill] sm:$0xff] %v8546_v51  ;;  %v3391_v35 = vmax.f32 %v8541_v63, %v8546_v51  ;;  %v3307_v33 = vpop.f32.mrf.mxu1 }
 0x592   : > { %v8557_v40 = vsel %vm9849_vm11, %v3307_v33, -inf  ;;  %vm9859_vm11 = vcmp.le.s32.totalorder %v9766_v47, %v9796_v9 }
 0x593   : > { %3392 = vmax.xlane.f32.xlu1 %v3391_v35  ;;  %v3309_v52 = vpop.f32.mrf.mxu1  ;;  %9850 = vst [vmem:[#allocation54_spill] sm:$0xff] %v8557_v40  ;;  %v8566_v35 = vpop.permute.xlu1 %3616 }
 0x594   : > { %v8562_v11 = vsel %vm9851_vm0, %v3309_v52, -inf  ;;  %9853 = vst [vmem:[#allocation56_spill] sm:$0xff] %v8566_v35  ;;  %vm9863_vm0 = vcmp.le.s32.totalorder %v9766_v47, %v9800_v13 }
 0x595   : > { %9852 = vst [vmem:[#allocation55_spill] sm:$0xff] %v8562_v11  ;;  %v3394_v51 = vmax.f32 %v8557_v40, %v8562_v11  ;;  %v3311_v63 = vpop.f32.mrf.mxu1  ;;  %v8580_v11 = vpop.permute.xlu0 %4421 }
 0x596   : > { %v8571_v32 = vsel %vm1440_vm12, %v3311_v63, -inf  ;;  %9856 = vst [vmem:[#allocation59_spill] sm:$0xff] %v8580_v11 }
 0x597   : > { %3395 = vmax.xlane.f32.xlu0 %v3394_v51  ;;  %v3313_v7 = vpop.f32.mrf.mxu1  ;;  %9854 = vst [vmem:[#allocation57_spill] sm:$0xff] %v8571_v32 }
 0x598   : > { %v8576_v33 = vsel %vm1441_vm15, %v3313_v7, -inf }
 0x599   : > { %9855 = vst [vmem:[#allocation58_spill] sm:$0xff] %v8576_v33  ;;  %v3397_v52 = vmax.f32 %v8571_v32, %v8576_v33  ;;  %v3317_v59 = vpop.f32.mrf.mxu1  ;;  %v8594_v33 = vpop.permute.xlu1 %4407 }
 0x59a   : > { %v8585_v35 = vsel %vm9857_vm14, %v3317_v59, -inf  ;;  %9861 = vst [vmem:[#allocation62_spill] sm:$0xff] %v8594_v33  ;;  %vm9890_vm14 = vcmp.le.s32.totalorder %v9764_v25, %v9785_v31 }
 0x59b   : > { %3398 = vmax.xlane.f32.xlu1 %v3397_v52  ;;  %v3319_v51 = vpop.f32.mrf.mxu1  ;;  %9858 = vst [vmem:[#allocation60_spill] sm:$0xff] %v8585_v35  ;;  %v8596_v52 = vpop.permute.xlu0 %4419 }
 0x59c   : > { %v8590_v63 = vsel %vm9859_vm11, %v3319_v51, -inf  ;;  %9862 = vst [vmem:[#allocation63_spill] sm:$0xff] %v8596_v52  ;;  %vm9892_vm11 = vcmp.le.s32.totalorder %v9766_v47, %v9785_v31 }
 0x59d   : > { %9860 = vst [vmem:[#allocation61_spill] sm:$0xff] %v8590_v63  ;;  %v3400_v7 = vmax.f32 %v8585_v35, %v8590_v63  ;;  %v3321_v40 = vpop.f32.mrf.mxu1 }
 0x59e   : > { %v8601_v59 = vsel %vm1444_vm13, %v3321_v40, -inf }
 0x59f   : > { %3401 = vmax.xlane.f32.xlu0 %v3400_v7  ;;  %v3323_v11 = vpop.f32.mrf.mxu1  ;;  %v8610_v7 = vpop.permute.xlu1 %4405 }
 0x5a0   : > { %v8606_v51 = vsel %vm9863_vm0, %v3323_v11, -inf  ;;  %9865 = vst [vmem:[#allocation65_spill] sm:$0xff] %v8610_v7  ;;  %vm9894_vm0 = vcmp.le.s32.totalorder %v9764_v25, %v9791_v62 }
 0x5a1   : > { %9864 = vst [vmem:[#allocation64_spill] sm:$0xff] %v8606_v51  ;;  %v3403_v63 = vmax.f32 %v8601_v59, %v8606_v51  ;;  %v4026_v35 = vpop.f32.mrf.mxu1  ;;  %v8624_v51 = vpop.permute.xlu0 %4403 }
 0x5a2   : > { %v8615_v52 = vsel %vm1414_vm1, %v4026_v35, -inf  ;;  %9868 = vst [vmem:[#allocation68_spill] sm:$0xff] %v8624_v51  ;;  %vm9876_vm1 = vcmp.le.s32.totalorder %v9764_v25, %v9771_v12 }
 0x5a3   : > { %3404 = vmax.xlane.f32.xlu1 %v3403_v63  ;;  %v4028_v33 = vpop.f32.mrf.mxu1  ;;  %9866 = vst [vmem:[#allocation66_spill] sm:$0xff] %v8615_v52 }
 0x5a4   : > { %v8620_v40 = vsel %vm1415_vm2, %v4028_v33, -inf  ;;  %vm9877_vm2 = vcmp.le.s32.totalorder %v9766_v47, %v9771_v12 }
 0x5a5   : > { %9867 = vst [vmem:[#allocation67_spill] sm:$0xff] %v8620_v40  ;;  %v4137_v11 = vmax.f32 %v8615_v52, %v8620_v40  ;;  %v4030_v32 = vpop.f32.mrf.mxu1  ;;  %v8638_v40 = vpop.permute.xlu1 %4417 }
 0x5a6   : > { %v8629_v7 = vsel %vm1416_vm3, %v4030_v32, -inf  ;;  %9871 = vst [vmem:[#allocation71_spill] sm:$0xff] %v8638_v40  ;;  %vm9878_vm3 = vcmp.le.s32.totalorder %v9764_v25, %v9773_v42 }
 0x5a7   : > { %4138 = vmax.xlane.f32.xlu0 %v4137_v11  ;;  %v4032_v63 = vpop.f32.mrf.mxu1  ;;  %9869 = vst [vmem:[#allocation69_spill] sm:$0xff] %v8629_v7  ;;  %v8640_v11 = vpop.permute.xlu0 %4415 }
 0x5a8   : > { %v8634_v35 = vsel %vm1417_vm4, %v4032_v63, -inf  ;;  %9872 = vst [vmem:[#allocation72_spill] sm:$0xff] %v8640_v11  ;;  %vm9879_vm4 = vcmp.le.s32.totalorder %v9766_v47, %v9773_v42 }
 0x5a9   : > { %9870 = vst [vmem:[#allocation70_spill] sm:$0xff] %v8634_v35  ;;  %v4140_v61 = vmax.f32 %v8629_v7, %v8634_v35  ;;  %v4036_v33 = vpop.f32.mrf.mxu1 }
 0x5aa   : > { %v8645_v32 = vsel %vm1418_vm5, %v4036_v33, -inf  ;;  %vm9880_vm5 = vcmp.le.s32.totalorder %v9764_v25, %v9776_v23 }
 0x5ab   : > { %4141 = vmax.xlane.f32.xlu1 %v4140_v61  ;;  %v4038_v51 = vpop.f32.mrf.mxu1  ;;  %9873 = vst [vmem:[#allocation73_spill] sm:$0xff] %v8645_v32  ;;  %v8654_v61 = vpop.permute.xlu1 %4401 }
 0x5ac   : > { %v8650_v20 = vsel %vm1419_vm6, %v4038_v51, -inf  ;;  %9875 = vst [vmem:[#allocation75_spill] sm:$0xff] %v8654_v61  ;;  %vm9881_vm6 = vcmp.le.s32.totalorder %v9766_v47, %v9776_v23 }
 0x5ad   : > { %9874 = vst [vmem:[#allocation74_spill] sm:$0xff] %v8650_v20  ;;  %v4143_v63 = vmax.f32 %v8645_v32, %v8650_v20  ;;  %v4040_v35 = vpop.f32.mrf.mxu1 }
 0x5ae   : > { %v8659_v11 = vsel %vm1420_vm7, %v4040_v35, -inf  ;;  %vm9882_vm7 = vcmp.le.s32.totalorder %v9764_v25, %v9779_v56 }
 0x5af   : > { %4144 = vmax.xlane.f32.xlu0 %v4143_v63  ;;  %v4042_v40 = vpop.f32.mrf.mxu1 }
 0x5b0   : > { %v8664_v33 = vsel %vm1421_vm8, %v4042_v40, -inf  ;;  %v2581_v45 = vpop.xlane.xlu0 %2580  ;;  %vm9884_vm8 = vcmp.le.s32.totalorder %v9766_v47, %v9779_v56 }
 0x5b1   : > { %v4146_v51 = vmax.f32 %v8659_v11, %v8664_v33  ;;  %v2627_v20 = vsub.f32 %v8191_v29, %v2581_v45  ;;  %v2628_v63 = vsub.f32 %v8196_v16, %v2581_v45  ;;  %v4046_v32 = vpop.f32.mrf.mxu1 }
 0x5b2   : > { %v8673_v35 = vsel %vm1422_vm9, %v4046_v32, -inf  ;;  %vm9886_vm9 = vcmp.le.s32.totalorder %v9764_v25, %v9782_v50 }
 0x5b3   : > { %v2659_v61 = vmul.f32 1.442695, %v2627_v20  ;;  %v2661_v7 = vmul.f32 1.442695, %v2628_v63  ;;  %4147 = vmax.xlane.f32.xlu1 %v4146_v51  ;;  %v4048_v52 = vpop.f32.mrf.mxu1 }
 0x5b4   : > { %v8678_v58 = vsel %vm1423_vm10, %v4048_v52, -inf  ;;  %v2584_v40 = vpop.xlane.xlu1 %2583  ;;  %vm9888_vm10 = vcmp.le.s32.totalorder %v9766_v47, %v9782_v50 }
 0x5b5   : > { %6318 = vpow2.f32 %v2659_v61  ;;  %v4149_v29 = vmax.f32 %v8673_v35, %v8678_v58  ;;  %v2629_v16 = vsub.f32 %v8203_v38, %v2584_v40  ;;  %v2630_v20 = vsub.f32 %v8208_v39, %v2584_v40  ;;  %v4050_v45 = vpop.f32.mrf.mxu1 }
 0x5b6   : > { %6320 = vpow2.f32 %v2661_v7  ;;  %v8687_v19 = vsel %vm9876_vm1, %v4050_v45, -inf  ;;  %vm9896_vm1 = vcmp.le.s32.totalorder %v9764_v25, %v9788_v18 }
 0x5b7   : > { %v2663_v51 = vmul.f32 1.442695, %v2629_v16  ;;  %v2665_v63 = vmul.f32 1.442695, %v2630_v20  ;;  %4150 = vmax.xlane.f32.xlu0 %v4149_v29  ;;  %v4052_v32 = vpop.f32.mrf.mxu1 }
 0x5b8   : > { %v8692_v52 = vsel %vm9877_vm2, %v4052_v32, -inf  ;;  %v2587_v61 = vpop.xlane.xlu0 %2586  ;;  %vm9898_vm2 = vcmp.le.s32.totalorder %v9766_v47, %v9788_v18 }
 0x5b9   : > { %6322 = vpow2.f32 %v2663_v51  ;;  %v4152_v38 = vmax.f32 %v8687_v19, %v8692_v52  ;;  %v2631_v39 = vsub.f32 %v8215_v46, %v2587_v61  ;;  %v2632_v7 = vsub.f32 %v8220_v60, %v2587_v61  ;;  %v4056_v40 = vpop.f32.mrf.mxu1 }
 0x5ba   : > { %6324 = vpow2.f32 %v2665_v63  ;;  %v8701_v29 = vsel %vm9878_vm3, %v4056_v40, -inf  ;;  %vm9900_vm3 = vcmp.le.s32.totalorder %v9766_v47, %v9791_v62 }
 0x5bb   : > { %4153 = vmax.xlane.f32.xlu1 %v4152_v38  ;;  %v4058_v12 = vpop.f32.mrf.mxu1  ;;  %v2667_v16 = vmul.f32 1.442695, %v2631_v39  ;;  %v2669_v51 = vmul.f32 1.442695, %v2632_v7 }
 0x5bc   : > { %v8706_v20 = vsel %vm9879_vm4, %v4058_v12, -inf  ;;  %v2590_v45 = vpop.xlane.xlu0 %2589  ;;  %vm9902_vm4 = vcmp.le.s32.totalorder %v9764_v25, %v9796_v9 }
 0x5bd   : > { %v4155_v46 = vmax.f32 %v8701_v29, %v8706_v20  ;;  %v2633_v60 = vsub.f32 %v8227_v57, %v2590_v45  ;;  %v2634_v63 = vsub.f32 %v8232_v24, %v2590_v45  ;;  %v4060_v32 = vpop.f32.mrf.mxu1  ;;  %6326 = vpow2.f32 %v2667_v16 }
 0x5be   : > { %v8715_v61 = vsel %vm9880_vm5, %v4060_v32, -inf  ;;  %6328 = vpow2.f32 %v2669_v51  ;;  %vm9904_vm5 = vcmp.le.s32.totalorder %v9766_v47, %v9796_v9 }
 0x5bf   : > { %v2671_v38 = vmul.f32 1.442695, %v2633_v60  ;;  %4156 = vmax.xlane.f32.xlu0 %v4155_v46  ;;  %v4062_v42 = vpop.f32.mrf.mxu1  ;;  %v2673_v39 = vmul.f32 1.442695, %v2634_v63 }
 0x5c0   : > { %v8720_v7 = vsel %vm9881_vm6, %v4062_v42, -inf  ;;  %v2593_v40 = vpop.xlane.xlu0 %2592  ;;  %vm4634_vm6 = vcmask 1044224  }
 0x5c1   : > { %v4158_v57 = vmax.f32 %v8715_v61, %v8720_v7  ;;  %v4066_v24 = vpop.f32.mrf.mxu1  ;;  %6330 = vpow2.f32 %v2671_v38  ;;  %v2635_v23 = vsub.f32 %v8239_v30, %v2593_v40  ;;  %v2636_v51 = vsub.f32 %v8244_v54, %v2593_v40 }
 0x5c2   : > { %v8724_v12 = vpop.eup %6318  ;;  %v8729_v45 = vsel %vm9882_vm7, %v4066_v24, -inf  ;;  %6332 = vpow2.f32 %v2673_v39 }
 0x5c3   : > { %9883 = vst [vmem:[#allocation76_spill] sm:$0xff] %v8729_v45  ;;  %v8731_v16 = vpop.eup %6320  ;;  %4159 = vmax.xlane.f32.xlu1 %v4158_v57  ;;  %v4068_v46 = vpop.f32.mrf.mxu1  ;;  %v2675_v39 = vmul.f32 1.442695, %v2635_v23  ;;  %v2677_v40 = vmul.f32 1.442695, %v2636_v51 }
 0x5c4   : > { %v8738_v60 = vsel %vm9884_vm8, %v4068_v46, -inf  ;;  %v2596_v32 = vpop.xlane.xlu1 %2595  ;;  %v2723_v38 = vadd.f32 %v8731_v16, %v8724_v12 }
 0x5c5   : > { %9885 = vst [vmem:[#allocation77_spill] sm:$0xff] %v8738_v60  ;;  %v4161_v63 = vmax.f32 %v8729_v45, %v8738_v60  ;;  %v4070_v42 = vpop.f32.mrf.mxu1  ;;  %v2637_v56 = vsub.f32 %v8251_v22, %v2596_v32  ;;  %v2638_v45 = vsub.f32 %v8256_v48, %v2596_v32  ;;  %6334 = vpow2.f32 %v2675_v39 }
 0x5c6   : > { %v8744_v24 = vpop.eup %6322  ;;  %v8752_v57 = vsel %vm9886_vm9, %v4070_v42, -inf  ;;  %6336 = vpow2.f32 %v2677_v40 }
 0x5c7   : > { %v8746_v30 = vpop.eup %6324  ;;  %2724 = vadd.xlane.f32.xlu1 %v2723_v38  ;;  %4162 = vmax.xlane.f32.xlu0 %v4161_v63  ;;  %v4072_v54 = vpop.f32.mrf.mxu1  ;;  %9887 = vst [vmem:[#allocation78_spill] sm:$0xff] %v8752_v57  ;;  %v2679_v38 = vmul.f32 1.442695, %v2637_v56 }
 0x5c8   : > { %v8757_v46 = vsel %vm9888_vm10, %v4072_v54, -inf  ;;  %v2599_v60 = vpop.xlane.xlu0 %2598  ;;  %v2726_v63 = vadd.f32 %v8746_v30, %v8744_v24 }
 0x5c9   : > { %9889 = vst [vmem:[#allocation79_spill] sm:$0xff] %v8757_v46  ;;  %v4076_v23 = vpop.f32.mrf.mxu1  ;;  %v2639_v51 = vsub.f32 %v8263_v41, %v2599_v60  ;;  %v4164_v50 = vmax.f32 %v8752_v57, %v8757_v46  ;;  %v2681_v41 = vmul.f32 1.442695, %v2638_v45  ;;  %v2640_v46 = vsub.f32 %v8268_v44, %v2599_v60 }
 0x5ca   : > { %v8766_v22 = vsel %vm9890_vm14, %v4076_v23, -inf  ;;  %v8775_v32 = vpop.eup %6326  ;;  %6338 = vpow2.f32 %v2679_v38 }
 0x5cb   : > { %9891 = vst [vmem:[#allocation80_spill] sm:$0xff] %v8766_v22  ;;  %v4078_v42 = vpop.f32.mrf.mxu1  ;;  %2727 = vadd.xlane.f32.xlu1 %v2726_v63  ;;  %v8779_v39 = vpop.eup %6328  ;;  %v2683_v57 = vmul.f32 1.442695, %v2639_v51  ;;  %6340 = vpow2.f32 %v2681_v41  ;;  %v2685_v60 = vmul.f32 1.442695, %v2640_v46 }
 0x5cc   : > { %v8773_v48 = vsel %vm9892_vm11, %v4078_v42, -inf  ;;  %v2602_v31 = vpop.xlane.xlu1 %2601  ;;  %v2729_v44 = vadd.f32 %v8779_v39, %v8775_v32 }
 0x5cd   : > { %9893 = vst [vmem:[#allocation81_spill] sm:$0xff] %v8773_v48  ;;  %v4167_v54 = vmax.f32 %v8766_v22, %v8773_v48  ;;  %v4080_v23 = vpop.f32.mrf.mxu1  ;;  %6342 = vpow2.f32 %v2683_v57  ;;  %v2642_v38 = vsub.f32 %v8280_v3, %v2602_v31 }
 0x5ce   : > { %v8782_v56 = vpop.eup %6330 }
 0x5cf   : > { %4168 = vmax.xlane.f32.xlu0 %v4167_v54  ;;  %v4082_v40 = vpop.f32.mrf.mxu1  ;;  %4165 = vmax.xlane.f32.xlu1 %v4164_v50  ;;  %v8784_v42 = vpop.eup %6332  ;;  %v2641_v50 = vsub.f32 %v8275_v5, %v2602_v31 }
 0x5d0   : > { %v2605_v63 = vpop.xlane.xlu0 %2604  ;;  %v8805_v57 = vsel %vm9898_vm2, %v4082_v40, -inf  ;;  %v2732_v46 = vadd.f32 %v8784_v42, %v8782_v56 }
 0x5d1   : > { %v2643_v45 = vsub.f32 %v8287_v8, %v2605_v63  ;;  %v2644_v48 = vsub.f32 %v8292_v55, %v2605_v63  ;;  %v4086_v22 = vpop.f32.mrf.mxu1  ;;  %v8800_v55 = vsel %vm9896_vm1, %v4080_v23, -inf  ;;  %9899 = vst [vmem:[#allocation84_spill] sm:$0xff] %v8805_v57  ;;  %v2687_v40 = vmul.f32 1.442695, %v2641_v50 }
 0x5d2   : > { %v8793_v51 = vsel %vm9894_vm0, %v4086_v22, -inf  ;;  %9897 = vst [vmem:[#allocation83_spill] sm:$0xff] %v8800_v55  ;;  %v4170_v62 = vmax.f32 %v8800_v55, %v8805_v57 }
 0x5d3   : > { %9895 = vst [vmem:[#allocation82_spill] sm:$0xff] %v8793_v51  ;;  %v2691_v41 = vmul.f32 1.442695, %v2643_v45  ;;  %v2693_v54 = vmul.f32 1.442695, %v2644_v48  ;;  %v4088_v8 = vpop.f32.mrf.mxu1  ;;  %2730 = vadd.xlane.f32.xlu1 %v2729_v44  ;;  %v8820_v44 = vpop.eup %6334 }
 0x5d4   : > { %v8810_v5 = vsel %vm9900_vm3, %v4088_v8, -inf  ;;  %v2608_v3 = vpop.xlane.xlu1 %2607 }
 0x5d5   : > { %9901 = vst [vmem:[#allocation85_spill] sm:$0xff] %v8810_v5  ;;  %6344 = vpow2.f32 %v2691_v41  ;;  %v4173_v22 = vmax.f32 %v8793_v51, %v8810_v5  ;;  %v2645_v48 = vsub.f32 %v8299_v37, %v2608_v3  ;;  %v2646_v23 = vsub.f32 %v8304_v4, %v2608_v3  ;;  %v4090_v18 = vpop.f32.mrf.mxu1  ;;  %v8822_v5 = vpop.eup %6336 }
 0x5d6   : > { %6346 = vpow2.f32 %v2693_v54  ;;  %v2689_v41 = vmul.f32 1.442695, %v2642_v38 }
 0x5d7   : > { %v2695_v31 = vmul.f32 1.442695, %v2645_v48  ;;  %v2697_v63 = vmul.f32 1.442695, %v2646_v23  ;;  %4174 = vmax.xlane.f32.xlu0 %v4173_v22  ;;  %v4092_v45 = vpop.f32.mrf.mxu1  ;;  %2733 = vadd.xlane.f32.xlu1 %v2732_v46  ;;  %6348 = vpow2.f32 %v2685_v60  ;;  %v8838_v22 = vpop.eup %6338 }
 0x5d8   : > { %v2611_v8 = vpop.xlane.xlu0 %2610 }
 0x5d9   : > { %6350 = vpow2.f32 %v2695_v31  ;;  %v2647_v37 = vsub.f32 %v8311_v26, %v2611_v8  ;;  %v2648_v4 = vsub.f32 %v8316_v14, %v2611_v8  ;;  %v4096_v50 = vpop.f32.mrf.mxu1  ;;  %v2735_v14 = vadd.f32 %v8822_v5, %v8820_v44 }
 0x5da   : > { %6352 = vpow2.f32 %v2697_v63  ;;  %v8829_v54 = vsel %vm9902_vm4, %v4096_v50, -inf  ;;  %v8851_v63 = vsel %vm1440_vm12, %v4090_v18, -inf  ;;  %vm9908_vm12 = vcmp.le.s32.totalorder %v9766_v47, %v9800_v13 }
 0x5db   : > { %9903 = vst [vmem:[#allocation86_spill] sm:$0xff] %v8829_v54  ;;  %6354 = vpow2.f32 %v2687_v40  ;;  %v2699_v3 = vmul.f32 1.442695, %v2647_v37  ;;  %v2701_v46 = vmul.f32 1.442695, %v2648_v4  ;;  %v4098_v60 = vpop.f32.mrf.mxu1  ;;  %4171 = vmax.xlane.f32.xlu1 %v4170_v62  ;;  %v8844_v62 = vpop.eup %6340 }
 0x5dc   : > { %6356 = vpow2.f32 %v2689_v41  ;;  %v8834_v38 = vsel %vm9904_vm5, %v4098_v60, -inf  ;;  %v2614_v26 = vpop.xlane.xlu1 %2613  ;;  %v8846_v9 = vpop.eup %6342  ;;  %v8856_v41 = vsel %vm1441_vm15, %v4092_v45, -inf  ;;  %v2738_v4 = vadd.f32 %v8844_v62, %v8838_v22 }
 0x5dd   : > { %9905 = vst [vmem:[#allocation87_spill] sm:$0xff] %v8834_v38  ;;  %6358 = vpow2.f32 %v2699_v3  ;;  %v4179_v48 = vmax.f32 %v8829_v54, %v8834_v38  ;;  %v2649_v23 = vsub.f32 %v8323_v34, %v2614_v26  ;;  %v2650_v40 = vsub.f32 %v8328_v28, %v2614_v26  ;;  %9906 = vst [vmem:[#allocation88_spill] sm:$0xff] %v8856_v41 }
 0x5de   : > { %6360 = vpow2.f32 %v2701_v46  ;;  %v4176_v18 = vmax.f32 %v8851_v63, %v8856_v41  ;;  %vm3855_vm15 = vcmask 781824  }
 0x5df   : > { %v2703_v31 = vmul.f32 1.442695, %v2649_v23  ;;  %4180 = vmax.xlane.f32.xlu0 %v4179_v48  ;;  %2736 = vadd.xlane.f32.xlu1 %v2735_v14  ;;  %v2705_v34 = vmul.f32 1.442695, %v2650_v40  ;;  %v4100_v14 = vpop.f32.mrf.mxu1 }
 0x5e0   : > { %v2617_v28 = vpop.xlane.xlu0 %2616 }
 0x5e1   : > { %v2651_v8 = vsub.f32 %v8335_v15, %v2617_v28  ;;  %v2652_v37 = vsub.f32 %v8340_v27, %v2617_v28  ;;  %6362 = vpow2.f32 %v2703_v31 }
 0x5e2   : > { %v8862_v50 = vpop.eup %6344  ;;  %6364 = vpow2.f32 %v2705_v34 }
 0x5e3   : > { %v8864_v3 = vpop.eup %6346  ;;  %v2707_v10 = vmul.f32 1.442695, %v2651_v8  ;;  %v2709_v45 = vmul.f32 1.442695, %v2652_v37  ;;  %2739 = vadd.xlane.f32.xlu1 %v2738_v4 }
 0x5e4   : > { %v2620_v46 = vpop.xlane.xlu1 %2619  ;;  %v2747_v15 = vadd.f32 %v8864_v3, %v8862_v50  ;;  %v8870_v27 = vpop.eup %6348 }
 0x5e5   : > { %6366 = vpow2.f32 %v2707_v10  ;;  %v2653_v60 = vsub.f32 %v8347_v36, %v2620_v46  ;;  %v2654_v26 = vsub.f32 %v8352_v1, %v2620_v46  ;;  %v2741_v4 = vadd.f32 %v8870_v27, %v8846_v9  ;;  %v4102_v10 = vpop.f32.mrf.mxu1 }
 0x5e6   : > { %v8874_v48 = vpop.eup %6350  ;;  %6368 = vpow2.f32 %v2709_v45  ;;  %2748 = vadd.xlane.f32.xlu0 %v2747_v15 }
 0x5e7   : > { %v8876_v23 = vpop.eup %6352  ;;  %v2711_v40 = vmul.f32 1.442695, %v2653_v60  ;;  %v2713_v31 = vmul.f32 1.442695, %v2654_v26  ;;  %4177 = vmax.xlane.f32.xlu1 %v4176_v18  ;;  %v8902_v26 = vsel %vm9908_vm12, %v4102_v10, -inf }
 0x5e8   : > { %v8878_v34 = vpop.eup %6354  ;;  %v2623_v28 = vpop.xlane.xlu0 %2622  ;;  %v2750_v8 = vadd.f32 %v8876_v23, %v8874_v48  ;;  %9909 = vst [vmem:[#allocation90_spill] sm:$0xff] %v8902_v26 }
 0x5e9   : > { %v8882_v37 = vpop.eup %6356  ;;  %6370 = vpow2.f32 %v2711_v40  ;;  %v2655_v36 = vsub.f32 %v8361_v53, %v2623_v28  ;;  %v2656_v1 = vsub.f32 %v8366_v2, %v2623_v28  ;;  %v8895_v53 = vsel %vm1444_vm13, %v4100_v14, -inf }
 0x5ea   : > { %v8888_v45 = vpop.eup %6358  ;;  %6372 = vpow2.f32 %v2713_v31  ;;  %2751 = vadd.xlane.f32.xlu0 %v2750_v8  ;;  %9907 = vst [vmem:[#allocation89_spill] sm:$0xff] %v8895_v53  ;;  %v2744_v28 = vadd.f32 %v8882_v37, %v8878_v34  ;;  %v4182_v8 = vmax.f32 %v8895_v53, %v8902_v26  ;;  %vm3076_vm13 = vcmask 519424  }
 0x5eb   : > { %v8890_v18 = vpop.eup %6360  ;;  %v2715_v46 = vmul.f32 1.442695, %v2655_v36  ;;  %v2717_v15 = vmul.f32 1.442695, %v2656_v1  ;;  %2742 = vadd.xlane.f32.xlu1 %v2741_v4 }
 0x5ec   : > { %v2626_v60 = vpop.xlane.xlu1 %2625  ;;  %v2753_v2 = vadd.f32 %v8890_v18, %v8888_v45 }
 0x5ed   : > { %6374 = vpow2.f32 %v2715_v46  ;;  %v2657_v40 = vsub.f32 %v8375_v43, %v2626_v60  ;;  %v2658_v31 = vsub.f32 %v8380_v17, %v2626_v60 }
 0x5ee   : > { %6376 = vpow2.f32 %v2717_v15  ;;  %2754 = vadd.xlane.f32.xlu0 %v2753_v2  ;;  %v8910_v36 = vpop.eup %6362 }
 0x5ef   : > { %v2719_v25 = vmul.f32 1.442695, %v2657_v40  ;;  %v2721_v14 = vmul.f32 1.442695, %v2658_v31  ;;  %2745 = vadd.xlane.f32.xlu1 %v2744_v28  ;;  %v8912_v13 = vpop.eup %6364 }
 0x5f0   : > { %v3360_v47 = vpop.xlane.xlu0 %3359 }
 0x5f1   : > { %6378 = vpow2.f32 %v2719_v25  ;;  %v3406_v43 = vsub.f32 %v8387_v49, %v3360_v47  ;;  %v3407_v17 = vsub.f32 %v8392_v21, %v3360_v47  ;;  %v2756_v49 = vadd.f32 %v8912_v13, %v8910_v36 }
 0x5f2   : > { %v8916_v1 = vpop.eup %6366  ;;  %6380 = vpow2.f32 %v2721_v14 }
 0x5f3   : > { %v8918_v4 = vpop.eup %6368  ;;  %v3438_v10 = vmul.f32 1.442695, %v3406_v43  ;;  %v3440_v46 = vmul.f32 1.442695, %v3407_v17  ;;  %4183 = vmax.xlane.f32.xlu1 %v4182_v8  ;;  %v9910_v8 = vld [vmem:[#allocation43_spill] sm:$0xff]  ;;  %v9911_v43 = vld [vmem:[#allocation40_spill] sm:$0xff] }
 0x5f4   : > { %v3363_v15 = vpop.xlane.xlu1 %3362  ;;  %v2759_v60 = vadd.f32 %v8918_v4, %v8916_v1 }
 0x5f5   : > { %6382 = vpow2.f32 %v3438_v10  ;;  %v3408_v2 = vsub.f32 %v8401_v0, %v3363_v15  ;;  %v3409_v40 = vsub.f32 %v8406_v6, %v3363_v15 }
 0x5f6   : > { %v8926_v21 = vpop.eup %6370  ;;  %6384 = vpow2.f32 %v3440_v46  ;;  %2760 = vadd.xlane.f32.xlu0 %v2759_v60 }
 0x5f7   : > { %v8928_v31 = vpop.eup %6372  ;;  %v3442_v28 = vmul.f32 1.442695, %v3408_v2  ;;  %v3444_v25 = vmul.f32 1.442695, %v3409_v40  ;;  %2757 = vadd.xlane.f32.xlu1 %v2756_v49  ;;  %v9912_v40 = vld [vmem:[#allocation42_spill] sm:$0xff] }
 0x5f8   : > { %v3366_v14 = vpop.xlane.xlu0 %3365  ;;  %v2762_v6 = vadd.f32 %v8928_v31, %v8926_v21 }
 0x5f9   : > { %6386 = vpow2.f32 %v3442_v28  ;;  %v3410_v47 = vsub.f32 %v9910_v8, %v3366_v14  ;;  %v3411_v0 = vsub.f32 %v9911_v43, %v3366_v14  ;;  %v9913_v28 = vld [vmem:[#allocation20_spill] sm:$0xff] }
 0x5fa   : > { %v8934_v17 = vpop.eup %6374  ;;  %6388 = vpow2.f32 %v3444_v25 }
 0x5fb   : > { %v8936_v10 = vpop.eup %6376  ;;  %v3446_v46 = vmul.f32 1.442695, %v3410_v47  ;;  %v3448_v15 = vmul.f32 1.442695, %v3411_v0  ;;  %2763 = vadd.xlane.f32.xlu1 %v2762_v6  ;;  %v9914_v6 = vld [vmem:[#allocation21_spill] sm:$0xff] }
 0x5fc   : > { %v3369_v60 = vpop.xlane.xlu1 %3368  ;;  %v2765_v2 = vadd.f32 %v8936_v10, %v8934_v17 }
 0x5fd   : > { %6390 = vpow2.f32 %v3446_v46  ;;  %v3412_v49 = vsub.f32 %v9912_v40, %v3369_v60  ;;  %v3413_v14 = vsub.f32 %v9913_v28, %v3369_v60  ;;  %v9915_v46 = vld [vmem:[#allocation22_spill] sm:$0xff] }
 0x5fe   : > { %v8942_v8 = vpop.eup %6378  ;;  %6392 = vpow2.f32 %v3448_v15  ;;  %2766 = vadd.xlane.f32.xlu0 %v2765_v2 }
 0x5ff   : > { %v8944_v43 = vpop.eup %6380  ;;  %v3450_v25 = vmul.f32 1.442695, %v3412_v49  ;;  %v3452_v38 = vmul.f32 1.442695, %v3413_v14  ;;  %v9917_v14 = vld [vmem:[#allocation24_spill] sm:$0xff] }
 0x600   : > { %v3372_v47 = vpop.xlane.xlu0 %3371  ;;  %v2768_v0 = vadd.f32 %v8944_v43, %v8942_v8 }
 0x601   : > { %6394 = vpow2.f32 %v3450_v25  ;;  %v3414_v54 = vsub.f32 %v9914_v6, %v3372_v47  ;;  %v3415_v51 = vsub.f32 %v9915_v46, %v3372_v47  ;;  %v9918_v25 = vld [vmem:[#allocation25_spill] sm:$0xff] }
 0x602   : > { %v8950_v40 = vpop.eup %6382  ;;  %6396 = vpow2.f32 %v3452_v38  ;;  %2769 = vadd.xlane.f32.xlu1 %v2768_v0 }
 0x603   : > { %9916 = vst [vmem:[#allocation43_spill] sm:$0xff] %v8950_v40  ;;  %v8952_v60 = vpop.eup %6384  ;;  %v3454_v15 = vmul.f32 1.442695, %v3414_v54  ;;  %v3456_v2 = vmul.f32 1.442695, %v3415_v51  ;;  %v9919_v54 = vld [vmem:[#allocation27_spill] sm:$0xff] }
 0x604   : > { %v3375_v28 = vpop.xlane.xlu1 %3374  ;;  %v3502_v49 = vadd.f32 %v8952_v60, %v8950_v40 }
 0x605   : > { %6398 = vpow2.f32 %v3454_v15  ;;  %v3416_v26 = vsub.f32 %v9917_v14, %v3375_v28  ;;  %v3417_v53 = vsub.f32 %v9918_v25, %v3375_v28  ;;  %v9920_v15 = vld [vmem:[#allocation28_spill] sm:$0xff] }
 0x606   : > { %v8958_v6 = vpop.eup %6386  ;;  %6400 = vpow2.f32 %v3456_v2  ;;  %3503 = vadd.xlane.f32.xlu1 %v3502_v49 }
 0x607   : > { %v8960_v47 = vpop.eup %6388  ;;  %v3458_v38 = vmul.f32 1.442695, %v3416_v26  ;;  %v3460_v0 = vmul.f32 1.442695, %v3417_v53  ;;  %v9923_v26 = vld [vmem:[#allocation30_spill] sm:$0xff] }
 0x608   : > { %v3378_v46 = vpop.xlane.xlu0 %3377  ;;  %v3505_v51 = vadd.f32 %v8960_v47, %v8958_v6 }
 0x609   : > { %6402 = vpow2.f32 %v3458_v38  ;;  %v3418_v57 = vsub.f32 %v9919_v54, %v3378_v46  ;;  %v3419_v55 = vsub.f32 %v9920_v15, %v3378_v46  ;;  %v9924_v38 = vld [vmem:[#allocation31_spill] sm:$0xff] }
 0x60a   : > { %v8966_v14 = vpop.eup %6390  ;;  %6404 = vpow2.f32 %v3460_v0  ;;  %3506 = vadd.xlane.f32.xlu1 %v3505_v51 }
 0x60b   : > { %9921 = vst [vmem:[#allocation40_spill] sm:$0xff] %v8966_v14  ;;  %v8968_v28 = vpop.eup %6392  ;;  %v3462_v2 = vmul.f32 1.442695, %v3418_v57  ;;  %v3464_v49 = vmul.f32 1.442695, %v3419_v55  ;;  %v9927_v57 = vld [vmem:[#allocation33_spill] sm:$0xff] }
 0x60c   : > { %9922 = vst [vmem:[#allocation42_spill] sm:$0xff] %v8968_v28  ;;  %v3381_v25 = vpop.xlane.xlu1 %3380  ;;  %v3508_v53 = vadd.f32 %v8968_v28, %v8966_v14 }
 0x60d   : > { %6406 = vpow2.f32 %v3462_v2  ;;  %v3420_v41 = vsub.f32 %v9923_v26, %v3381_v25  ;;  %v3421_v40 = vsub.f32 %v9924_v38, %v3381_v25  ;;  %v9928_v2 = vld [vmem:[#allocation34_spill] sm:$0xff] }
 0x60e   : > { %v8974_v54 = vpop.eup %6394  ;;  %6408 = vpow2.f32 %v3464_v49  ;;  %3509 = vadd.xlane.f32.xlu1 %v3508_v53 }
 0x60f   : > { %9925 = vst [vmem:[#allocation20_spill] sm:$0xff] %v8974_v54  ;;  %v8976_v46 = vpop.eup %6396  ;;  %v3466_v0 = vmul.f32 1.442695, %v3420_v41  ;;  %v3468_v51 = vmul.f32 1.442695, %v3421_v40  ;;  %v9931_v40 = vld [vmem:[#allocation44_spill] sm:$0xff] }
 0x610   : > { %9926 = vst [vmem:[#allocation21_spill] sm:$0xff] %v8976_v46  ;;  %v3384_v15 = vpop.xlane.xlu0 %3383  ;;  %v3511_v55 = vadd.f32 %v8976_v46, %v8974_v54 }
 0x611   : > { %6410 = vpow2.f32 %v3466_v0  ;;  %v3422_v14 = vsub.f32 %v9927_v57, %v3384_v15  ;;  %v3423_v28 = vsub.f32 %v9928_v2, %v3384_v15  ;;  %v9932_v0 = vld [vmem:[#allocation45_spill] sm:$0xff] }
 0x612   : > { %v8982_v26 = vpop.eup %6398  ;;  %6412 = vpow2.f32 %v3468_v51  ;;  %3512 = vadd.xlane.f32.xlu1 %v3511_v55 }
 0x613   : > { %9929 = vst [vmem:[#allocation22_spill] sm:$0xff] %v8982_v26  ;;  %v8984_v25 = vpop.eup %6400  ;;  %v3470_v49 = vmul.f32 1.442695, %v3422_v14  ;;  %v3472_v53 = vmul.f32 1.442695, %v3423_v28  ;;  %v9935_v28 = vld [vmem:[#allocation47_spill] sm:$0xff] }
 0x614   : > { %9930 = vst [vmem:[#allocation24_spill] sm:$0xff] %v8984_v25  ;;  %v3387_v38 = vpop.xlane.xlu1 %3386  ;;  %v3514_v41 = vadd.f32 %v8984_v25, %v8982_v26 }
 0x615   : > { %6414 = vpow2.f32 %v3470_v49  ;;  %v3424_v54 = vsub.f32 %v9931_v40, %v3387_v38  ;;  %v3425_v46 = vsub.f32 %v9932_v0, %v3387_v38  ;;  %v9936_v49 = vld [vmem:[#allocation48_spill] sm:$0xff] }
 0x616   : > { %v8990_v57 = vpop.eup %6402  ;;  %6416 = vpow2.f32 %v3472_v53  ;;  %3515 = vadd.xlane.f32.xlu1 %v3514_v41 }
 0x617   : > { %9933 = vst [vmem:[#allocation25_spill] sm:$0xff] %v8990_v57  ;;  %v8992_v15 = vpop.eup %6404  ;;  %v3474_v51 = vmul.f32 1.442695, %v3424_v54  ;;  %v3476_v55 = vmul.f32 1.442695, %v3425_v46  ;;  %v9939_v46 = vld [vmem:[#allocation50_spill] sm:$0xff] }
 0x618   : > { %9934 = vst [vmem:[#allocation27_spill] sm:$0xff] %v8992_v15  ;;  %v3390_v2 = vpop.xlane.xlu0 %3389  ;;  %v3517_v14 = vadd.f32 %v8992_v15, %v8990_v57 }
 0x619   : > { %6418 = vpow2.f32 %v3474_v51  ;;  %v3426_v26 = vsub.f32 %v9935_v28, %v3390_v2  ;;  %v3427_v25 = vsub.f32 %v9936_v49, %v3390_v2  ;;  %v9940_v51 = vld [vmem:[#allocation51_spill] sm:$0xff] }
 0x61a   : > { %v8998_v40 = vpop.eup %6406  ;;  %6420 = vpow2.f32 %v3476_v55  ;;  %3518 = vadd.xlane.f32.xlu1 %v3517_v14 }
 0x61b   : > { %9937 = vst [vmem:[#allocation28_spill] sm:$0xff] %v8998_v40  ;;  %v9000_v38 = vpop.eup %6408  ;;  %v3478_v53 = vmul.f32 1.442695, %v3426_v26  ;;  %v3480_v41 = vmul.f32 1.442695, %v3427_v25  ;;  %v9943_v25 = vld [vmem:[#allocation54_spill] sm:$0xff] }
 0x61c   : > { %9938 = vst [vmem:[#allocation30_spill] sm:$0xff] %v9000_v38  ;;  %v3393_v0 = vpop.xlane.xlu1 %3392  ;;  %v3520_v54 = vadd.f32 %v9000_v38, %v8998_v40 }
 0x61d   : > { %6422 = vpow2.f32 %v3478_v53  ;;  %v3428_v57 = vsub.f32 %v9939_v46, %v3393_v0  ;;  %v3429_v15 = vsub.f32 %v9940_v51, %v3393_v0  ;;  %v9944_v53 = vld [vmem:[#allocation55_spill] sm:$0xff] }
 0x61e   : > { %v9006_v28 = vpop.eup %6410  ;;  %6424 = vpow2.f32 %v3480_v41  ;;  %3521 = vadd.xlane.f32.xlu1 %v3520_v54 }
 0x61f   : > { %9941 = vst [vmem:[#allocation31_spill] sm:$0xff] %v9006_v28  ;;  %v9008_v2 = vpop.eup %6412  ;;  %v3482_v55 = vmul.f32 1.442695, %v3428_v57  ;;  %v3484_v14 = vmul.f32 1.442695, %v3429_v15  ;;  %v9947_v15 = vld [vmem:[#allocation57_spill] sm:$0xff] }
 0x620   : > { %9942 = vst [vmem:[#allocation33_spill] sm:$0xff] %v9008_v2  ;;  %v3396_v49 = vpop.xlane.xlu0 %3395  ;;  %v3523_v26 = vadd.f32 %v9008_v2, %v9006_v28 }
 0x621   : > { %6426 = vpow2.f32 %v3482_v55  ;;  %v3430_v40 = vsub.f32 %v9943_v25, %v3396_v49  ;;  %v3431_v38 = vsub.f32 %v9944_v53, %v3396_v49  ;;  %v9948_v55 = vld [vmem:[#allocation58_spill] sm:$0xff] }
 0x622   : > { %v9014_v46 = vpop.eup %6414  ;;  %6428 = vpow2.f32 %v3484_v14  ;;  %3524 = vadd.xlane.f32.xlu1 %v3523_v26 }
 0x623   : > { %9945 = vst [vmem:[#allocation34_spill] sm:$0xff] %v9014_v46  ;;  %v9016_v0 = vpop.eup %6416  ;;  %v3486_v41 = vmul.f32 1.442695, %v3430_v40  ;;  %v3488_v54 = vmul.f32 1.442695, %v3431_v38  ;;  %v9950_v38 = vld [vmem:[#allocation60_spill] sm:$0xff] }
 0x624   : > { %9946 = vst [vmem:[#allocation44_spill] sm:$0xff] %v9016_v0  ;;  %v3399_v51 = vpop.xlane.xlu1 %3398  ;;  %v3526_v57 = vadd.f32 %v9016_v0, %v9014_v46 }
 0x625   : > { %6430 = vpow2.f32 %v3486_v41  ;;  %v3432_v28 = vsub.f32 %v9947_v15, %v3399_v51  ;;  %v3433_v2 = vsub.f32 %v9948_v55, %v3399_v51  ;;  %v9951_v41 = vld [vmem:[#allocation61_spill] sm:$0xff] }
 0x626   : > { %v9022_v25 = vpop.eup %6418  ;;  %6432 = vpow2.f32 %v3488_v54  ;;  %3527 = vadd.xlane.f32.xlu0 %v3526_v57 }
 0x627   : > { %9949 = vst [vmem:[#allocation45_spill] sm:$0xff] %v9022_v25  ;;  %v9024_v49 = vpop.eup %6420  ;;  %v3490_v14 = vmul.f32 1.442695, %v3432_v28  ;;  %v3492_v26 = vmul.f32 1.442695, %v3433_v2 }
 0x628   : > { %v3402_v53 = vpop.xlane.xlu0 %3401  ;;  %v3529_v40 = vadd.f32 %v9024_v49, %v9022_v25 }
 0x629   : > { %6434 = vpow2.f32 %v3490_v14  ;;  %v3434_v46 = vsub.f32 %v9950_v38, %v3402_v53  ;;  %v3435_v0 = vsub.f32 %v9951_v41, %v3402_v53  ;;  %v9954_v14 = vld [vmem:[#allocation64_spill] sm:$0xff] }
 0x62a   : > { %v9030_v15 = vpop.eup %6422  ;;  %6436 = vpow2.f32 %v3492_v26  ;;  %3530 = vadd.xlane.f32.xlu0 %v3529_v40 }
 0x62b   : > { %9952 = vst [vmem:[#allocation47_spill] sm:$0xff] %v9030_v15  ;;  %v9032_v51 = vpop.eup %6424  ;;  %v3494_v54 = vmul.f32 1.442695, %v3434_v46  ;;  %v3496_v57 = vmul.f32 1.442695, %v3435_v0  ;;  %v9957_v0 = vld [vmem:[#allocation66_spill] sm:$0xff] }
 0x62c   : > { %9953 = vst [vmem:[#allocation48_spill] sm:$0xff] %v9032_v51  ;;  %v3405_v55 = vpop.xlane.xlu1 %3404  ;;  %v3532_v28 = vadd.f32 %v9032_v51, %v9030_v15 }
 0x62d   : > { %6438 = vpow2.f32 %v3494_v54  ;;  %v3436_v2 = vsub.f32 %v8601_v59, %v3405_v55  ;;  %v3437_v25 = vsub.f32 %v9954_v14, %v3405_v55  ;;  %v9958_v54 = vld [vmem:[#allocation67_spill] sm:$0xff] }
 0x62e   : > { %v9038_v38 = vpop.eup %6426  ;;  %6440 = vpow2.f32 %v3496_v57  ;;  %3533 = vadd.xlane.f32.xlu0 %v3532_v28 }
 0x62f   : > { %9955 = vst [vmem:[#allocation50_spill] sm:$0xff] %v9038_v38  ;;  %v9040_v53 = vpop.eup %6428  ;;  %v3498_v26 = vmul.f32 1.442695, %v3436_v2  ;;  %v3500_v40 = vmul.f32 1.442695, %v3437_v25  ;;  %v9961_v2 = vld [vmem:[#allocation69_spill] sm:$0xff] }
 0x630   : > { %9956 = vst [vmem:[#allocation51_spill] sm:$0xff] %v9040_v53  ;;  %v4139_v41 = vpop.xlane.xlu0 %4138  ;;  %v3535_v46 = vadd.f32 %v9040_v53, %v9038_v38 }
 0x631   : > { %6442 = vpow2.f32 %v3498_v26  ;;  %v4185_v15 = vsub.f32 %v9957_v0, %v4139_v41  ;;  %v4186_v51 = vsub.f32 %v9958_v54, %v4139_v41  ;;  %v9962_v26 = vld [vmem:[#allocation70_spill] sm:$0xff] }
 0x632   : > { %v9046_v59 = vpop.eup %6430  ;;  %6444 = vpow2.f32 %v3500_v40  ;;  %3536 = vadd.xlane.f32.xlu1 %v3535_v46 }
 0x633   : > { %9959 = vst [vmem:[#allocation54_spill] sm:$0xff] %v9046_v59  ;;  %v9048_v55 = vpop.eup %6432  ;;  %v4217_v57 = vmul.f32 1.442695, %v4185_v15  ;;  %v4219_v28 = vmul.f32 1.442695, %v4186_v51  ;;  %v9963_v51 = vld [vmem:[#allocation73_spill] sm:$0xff] }
 0x634   : > { %9960 = vst [vmem:[#allocation55_spill] sm:$0xff] %v9048_v55  ;;  %v4142_v14 = vpop.xlane.xlu1 %4141  ;;  %v3538_v25 = vadd.f32 %v9048_v55, %v9046_v59 }
 0x635   : > { %6446 = vpow2.f32 %v4217_v57  ;;  %v4187_v38 = vsub.f32 %v9961_v2, %v4142_v14  ;;  %v4188_v53 = vsub.f32 %v9962_v26, %v4142_v14  ;;  %v9964_v57 = vld [vmem:[#allocation74_spill] sm:$0xff] }
 0x636   : > { %v9054_v0 = vpop.eup %6434  ;;  %6448 = vpow2.f32 %v4219_v28  ;;  %3539 = vadd.xlane.f32.xlu0 %v3538_v25 }
 0x637   : > { %v9056_v41 = vpop.eup %6436  ;;  %v4221_v40 = vmul.f32 1.442695, %v4187_v38  ;;  %v4223_v46 = vmul.f32 1.442695, %v4188_v53 }
 0x638   : > { %v4145_v54 = vpop.xlane.xlu0 %4144  ;;  %v3541_v15 = vadd.f32 %v9056_v41, %v9054_v0 }
 0x639   : > { %6450 = vpow2.f32 %v4221_v40  ;;  %v4189_v59 = vsub.f32 %v9963_v51, %v4145_v54  ;;  %v4190_v55 = vsub.f32 %v9964_v57, %v4145_v54 }
 0x63a   : > { %v9062_v2 = vpop.eup %6438  ;;  %6452 = vpow2.f32 %v4223_v46  ;;  %3542 = vadd.xlane.f32.xlu1 %v3541_v15 }
 0x63b   : > { %9965 = vst [vmem:[#allocation57_spill] sm:$0xff] %v9062_v2  ;;  %v9064_v14 = vpop.eup %6440  ;;  %v4225_v28 = vmul.f32 1.442695, %v4189_v59  ;;  %v4227_v25 = vmul.f32 1.442695, %v4190_v55 }
 0x63c   : > { %9966 = vst [vmem:[#allocation58_spill] sm:$0xff] %v9064_v14  ;;  %v4148_v26 = vpop.xlane.xlu1 %4147  ;;  %v3544_v38 = vadd.f32 %v9064_v14, %v9062_v2 }
 0x63d   : > { %6454 = vpow2.f32 %v4225_v28  ;;  %v4191_v53 = vsub.f32 %v8659_v11, %v4148_v26  ;;  %v4192_v40 = vsub.f32 %v8664_v33, %v4148_v26 }
 0x63e   : > { %v9070_v51 = vpop.eup %6442  ;;  %6456 = vpow2.f32 %v4227_v25  ;;  %3545 = vadd.xlane.f32.xlu0 %v3544_v38 }
 0x63f   : > { %9967 = vst [vmem:[#allocation60_spill] sm:$0xff] %v9070_v51  ;;  %v9072_v54 = vpop.eup %6444  ;;  %v4229_v46 = vmul.f32 1.442695, %v4191_v53  ;;  %v4231_v15 = vmul.f32 1.442695, %v4192_v40 }
 0x640   : > { %v4151_v57 = vpop.xlane.xlu0 %4150  ;;  %v3547_v59 = vadd.f32 %v9072_v54, %v9070_v51 }
 0x641   : > { %6458 = vpow2.f32 %v4229_v46  ;;  %v4193_v55 = vsub.f32 %v8673_v35, %v4151_v57  ;;  %v4194_v28 = vsub.f32 %v8678_v58, %v4151_v57 }
 0x642   : > { %v9078_v11 = vpop.eup %6446  ;;  %6460 = vpow2.f32 %v4231_v15  ;;  %3548 = vadd.xlane.f32.xlu1 %v3547_v59 }
 0x643   : > { %9968 = vst [vmem:[#allocation61_spill] sm:$0xff] %v9078_v11  ;;  %v9080_v33 = vpop.eup %6448  ;;  %v4233_v25 = vmul.f32 1.442695, %v4193_v55  ;;  %v4235_v26 = vmul.f32 1.442695, %v4194_v28 }
 0x644   : > { %9969 = vst [vmem:[#allocation64_spill] sm:$0xff] %v9080_v33  ;;  %v4154_v38 = vpop.xlane.xlu1 %4153  ;;  %v4281_v53 = vadd.f32 %v9080_v33, %v9078_v11  ;;  %v9980_v11 = vld [vmem:[#allocation29_spill] sm:$0xff] }
 0x645   : > { %6462 = vpow2.f32 %v4233_v25  ;;  %v4195_v40 = vsub.f32 %v8687_v19, %v4154_v38  ;;  %v4196_v46 = vsub.f32 %v8692_v52, %v4154_v38 }
 0x646   : > { %v9086_v35 = vpop.eup %6450  ;;  %6464 = vpow2.f32 %v4235_v26  ;;  %4282 = vadd.xlane.f32.xlu1 %v4281_v53 }
 0x647   : > { %9970 = vst [vmem:[#allocation66_spill] sm:$0xff] %v9086_v35  ;;  %v9088_v58 = vpop.eup %6452  ;;  %v4237_v15 = vmul.f32 1.442695, %v4195_v40  ;;  %v4239_v57 = vmul.f32 1.442695, %v4196_v46 }
 0x648   : > { %9971 = vst [vmem:[#allocation67_spill] sm:$0xff] %v9088_v58  ;;  %v4284_v59 = vadd.f32 %v9088_v58, %v9086_v35  ;;  %v6646_v58 = vld [vmem:[#allocation2 + $0xf8] ss:$12 sps:$4 sm:$0xff]  }
 0x649   : > { %6466 = vpow2.f32 %v4237_v15 }
 0x64a   : > { %v9092_v55 = vpop.eup %6454  ;;  %6468 = vpow2.f32 %v4239_v57  ;;  %4285 = vadd.xlane.f32.xlu1 %v4284_v59 }
 0x64b   : > { %9972 = vst [vmem:[#allocation69_spill] sm:$0xff] %v9092_v55  ;;  %v9094_v28 = vpop.eup %6456 }
 0x64c   : > { %9973 = vst [vmem:[#allocation70_spill] sm:$0xff] %v9094_v28  ;;  %v9096_v19 = vpop.xlane.xlu1 %4159  ;;  %v4287_v52 = vadd.f32 %v9094_v28, %v9092_v55 }
 0x64e   : > { %v9100_v25 = vpop.eup %6458  ;;  %4288 = vadd.xlane.f32.xlu1 %v4287_v52 }
 0x64f   : > { %9974 = vst [vmem:[#allocation73_spill] sm:$0xff] %v9100_v25  ;;  %v9102_v26 = vpop.eup %6460 }
 0x650   : > { %9975 = vst [vmem:[#allocation74_spill] sm:$0xff] %v9102_v26  ;;  %v2725_v38 = vpop.xlane.xlu1 %2724  ;;  %v4290_v53 = vadd.f32 %v9102_v26, %v9100_v25 }
 0x651   : > { %6470 = vrcp.f32 %v2725_v38 }
 0x652   : > { %v9106_v40 = vpop.eup %6462  ;;  %4291 = vadd.xlane.f32.xlu0 %v4290_v53  ;;  %v4157_v53 = vpop.xlane.xlu0 %4156 }
 0x653   : > { %9976 = vst [vmem:[#allocation91_spill] sm:$0xff] %v9106_v40  ;;  %v9108_v46 = vpop.eup %6464 }
 0x654   : > { %9977 = vst [vmem:[#allocation92_spill] sm:$0xff] %v9108_v46  ;;  %v2728_v15 = vpop.xlane.xlu1 %2727  ;;  %v4293_v57 = vadd.f32 %v9108_v46, %v9106_v40 }
 0x655   : > { %6472 = vrcp.f32 %v2728_v15 }
 0x656   : > { %v9112_v59 = vpop.eup %6466  ;;  %4294 = vadd.xlane.f32.xlu1 %v4293_v57  ;;  %v9120_v26 = vpop.xlane.xlu0 %4162 }
 0x657   : > { %9978 = vst [vmem:[#allocation93_spill] sm:$0xff] %v9112_v59  ;;  %v9114_v52 = vpop.eup %6468 }
 0x658   : > { %9979 = vst [vmem:[#allocation94_spill] sm:$0xff] %v9114_v52  ;;  %v9116_v55 = vpop.xlane.xlu1 %4165  ;;  %v4296_v25 = vadd.f32 %v9114_v52, %v9112_v59 }
 0x65a   : > { %4297 = vadd.xlane.f32.xlu0 %v4296_v25  ;;  %v9122_v38 = vpop.xlane.xlu0 %4168 }
 0x65c   : > { %v2731_v28 = vpop.xlane.xlu1 %2730 }
 0x65d   : > { %6474 = vrcp.f32 %v2731_v28 }
 0x65e   : > { %v6471_v40 = vpop.eup %6470 }
 0x65f   : > { %v2788_v15 = vmul.f32 %v6471_v40, %v8731_v16  ;;  %v2787_v59 = vmul.f32 %v6471_v40, %v8724_v12  ;;  %v6647_v16 = vld [vmem:[#allocation2 + $0x38] ss:$12 sps:$4 sm:$0xff]  }
 0x660   : > { %v2734_v33 = vpop.xlane.xlu1 %2733  ;;  %v9130_v52 = vpop.xlane.xlu0 %4174  ;;  %v9981_v12 = vld [vmem:[#allocation39_spill] sm:$0xff] }
 0x661   : > { %6476 = vrcp.f32 %v2734_v33 }
 0x662   : > { %v6473_v57 = vpop.eup %6472 }
 0x663   : > { %v2790_v2 = vmul.f32 %v6473_v57, %v8746_v30  ;;  %v2789_v25 = vmul.f32 %v6473_v57, %v8744_v24  ;;  %v9982_v57 = vld [vmem:[#allocation35_spill] sm:$0xff] }
 0x664   : > { %v9124_v46 = vpop.xlane.xlu1 %4171 }
 0x665   : > { %v2820_v28 = vpack.c.bf16 %v2790_v2, %v2788_v15  ;;  %v2819_v33 = vpack.c.bf16 %v2789_v25, %v2787_v59  ;;  %v9983_v59 = vld [vmem:[#allocation37_spill] sm:$0xff] }
 0x666   : > { %v6648_v15 = vld [vmem:[#allocation2 + $0x50] ss:$12 sps:$4 sm:$0xff]  }
 0x667   : > { %4413 = vrot.lane.b32.xlu1 %v6646_v58, %s6869_s29  ;;  %2915 = vmatprep.mubr.bf16.mxu0 %v2820_v28 }
 0x668   : > { %v2737_v51 = vpop.xlane.xlu1 %2736  ;;  %2916 = vmatmul.mubr.bf16.vlgmr.msra.gmra.mxu0 %v2819_v33  ;;  %v9133_v35 = vpop.xlane.xlu0 %4180 }
 0x669   : > { %5682 = vmatpush3.bf16.msra.mxu0 %v9980_v11  ;;  %6478 = vrcp.f32 %v2737_v51 }
 0x66a   : > { %5683 = vmatprep.subr.bf16.mxu0 %v9981_v12  ;;  %v6475_v30 = vpop.eup %6474  ;;  %v4197_v12 = vsub.f32 %v8701_v29, %v4157_v53 }
 0x66b   : > { %4397 = vrot.lane.b32.xlu1 %v6647_v16, %s6869_s29  ;;  %v2792_v58 = vmul.f32 %v6475_v30, %v8779_v39  ;;  %v2791_v28 = vmul.f32 %v6475_v30, %v8775_v32 }
 0x66c   : > { %v2740_v24 = vpop.xlane.xlu1 %2739  ;;  %v4241_v32 = vmul.f32 1.442695, %v4197_v12  ;;  %v9990_v12 = vld [vmem:[#allocation26_spill] sm:$0xff] }
 0x66d   : > { %5684 = vmatpush3.bf16.msra.mxu0 %v9982_v57  ;;  %6480 = vrcp.f32 %v2740_v24  ;;  %v9984_v24 = vld [vmem:[#allocation46_spill] sm:$0xff]  ;;  %v4198_v57 = vsub.f32 %v8706_v20, %v4157_v53  ;;  %v4200_v20 = vsub.f32 %v8720_v7, %v9096_v19  ;;  %v9987_v53 = vld [vmem:[#allocation19_spill] sm:$0xff] }
 0x66e   : > { %v6477_v40 = vpop.eup %6476  ;;  %5685 = vmatprep.subr.bf16.mxu0 %v9983_v59  ;;  %v9985_v59 = vld [vmem:[#allocation38_spill] sm:$0xff] }
 0x66f   : > { %v2749_v2 = vpop.xlane.xlu0 %2748  ;;  %v2794_v25 = vmul.f32 %v6477_v40, %v8784_v42  ;;  %v2793_v51 = vmul.f32 %v6477_v40, %v8782_v56  ;;  %v4199_v56 = vsub.f32 %v8715_v61, %v9096_v19  ;;  %v9986_v42 = vld [vmem:[#allocation41_spill] sm:$0xff]  ;;  %v4243_v29 = vmul.f32 1.442695, %v4198_v57  ;;  %v9991_v57 = vld [vmem:[#allocation32_spill] sm:$0xff] }
 0x670   : > { %4399 = vrot.lane.b32.xlu0 %v6648_v15, %s6869_s29  ;;  %v9142_v11 = vpop.xlane.xlu1 %4177  ;;  %v6649_v15 = vld [vmem:[#allocation2 + $0xe0] ss:$12 sps:$4 sm:$0xff]   ;;  %v4247_v61 = vmul.f32 1.442695, %v4200_v20  ;;  %v9994_v20 = vld [vmem:[#allocation49_spill] sm:$0xff] }
 0x671   : > { %v2822_v33 = vpack.c.bf16 %v2794_v25, %v2792_v58  ;;  %v2821_v16 = vpack.c.bf16 %v2793_v51, %v2791_v28  ;;  %5686 = vmatpush3.bf16.msra.mxu0 %v9984_v24  ;;  %v4245_v58 = vmul.f32 1.442695, %v4199_v56  ;;  %v9988_v25 = vld [vmem:[#allocation52_spill] sm:$0xff]  ;;  %v9989_v51 = vld [vmem:[#allocation23_spill] sm:$0xff] }
 0x672   : > { %5687 = vmatprep.subr.bf16.mxu0 %v9985_v59 }
 0x673   : > { %v2752_v39 = vpop.xlane.xlu0 %2751  ;;  %2923 = vmatprep.mubr.bf16.mxu0 %v2822_v33 }
 0x674   : > { %4411 = vrot.lane.b32.xlu0 %v6649_v15, %s6869_s29  ;;  %v2743_v14 = vpop.xlane.xlu1 %2742  ;;  %6482 = vrcp.f32 %v2752_v39  ;;  %2924 = vmatmul.mubr.bf16.gmra.mxu0 %v2821_v16  ;;  %v9992_v15 = vld [vmem:[#allocation56_spill] sm:$0xff] }
 0x675   : > { %5688 = vmatpush3.bf16.msra.mxu0 %v9986_v42  ;;  %6484 = vrcp.f32 %v2743_v14 }
 0x676   : > { %6486 = vrcp.f32 %v2749_v2  ;;  %5689 = vmatprep.subr.bf16.mxu0 %v9987_v53  ;;  %v6479_v40 = vpop.eup %6478 }
 0x677   : > { %v2796_v33 = vmul.f32 %v6479_v40, %v8822_v5  ;;  %v2795_v19 = vmul.f32 %v6479_v40, %v8820_v44  ;;  %v2755_v16 = vpop.xlane.xlu0 %2754 }
 0x678   : > { %v2746_v30 = vpop.xlane.xlu1 %2745 }
 0x679   : > { %6488 = vrcp.f32 %v2746_v30  ;;  %5690 = vmatpush3.bf16.msra.mxu0 %v9988_v25 }
 0x67a   : > { %6490 = vpow2.f32 %v4241_v32  ;;  %v6481_v28 = vpop.eup %6480  ;;  %5691 = vmatprep.subr.bf16.mxu0 %v9989_v51 }
 0x67b   : > { %6492 = vpow2.f32 %v4243_v29  ;;  %v2798_v7 = vmul.f32 %v6481_v28, %v8844_v62  ;;  %v2797_v2 = vmul.f32 %v6481_v28, %v8838_v22  ;;  %v9993_v62 = vld [vmem:[#allocation36_spill] sm:$0xff]  ;;  %v9995_v28 = vld [vmem:[#allocation53_spill] sm:$0xff] }
 0x67c   : > { %v9160_v14 = vpop.xlane.xlu1 %4183  ;;  %6494 = vpow2.f32 %v4245_v58 }
 0x67d   : > { %5692 = vmatpush3.bf16.msra.mxu0 %v9990_v12  ;;  %v2824_v24 = vpack.c.bf16 %v2798_v7, %v2796_v33  ;;  %v2823_v39 = vpack.c.bf16 %v2797_v2, %v2795_v19  ;;  %6496 = vpow2.f32 %v4247_v61 }
 0x67e   : > { %5693 = vmatprep.subr.bf16.mxu0 %v9991_v57  ;;  %6498 = vrcp.f32 %v2755_v16 }
 0x67f   : > { %2931 = vmatprep.mubr.bf16.mxu0 %v2824_v24  ;;  %v2761_v42 = vpop.xlane.xlu0 %2760 }
 0x680   : > { %v2758_v59 = vpop.xlane.xlu1 %2757  ;;  %2932 = vmatmul.mubr.bf16.gmra.mxu0 %v2823_v39 }
 0x681   : > { %v6483_v5 = vpop.eup %6482  ;;  %5694 = vmatpush3.bf16.msra.mxu0 %v9992_v15  ;;  %6500 = vrcp.f32 %v2758_v59 }
 0x682   : > { %v6485_v44 = vpop.eup %6484  ;;  %5695 = vmatprep.subr.bf16.mxu0 %v9993_v62  ;;  %v2806_v29 = vmul.f32 %v6483_v5, %v8876_v23  ;;  %v2805_v16 = vmul.f32 %v6483_v5, %v8874_v48 }
 0x683   : > { %v6487_v32 = vpop.eup %6486  ;;  %v2800_v53 = vmul.f32 %v6485_v44, %v8870_v27  ;;  %v2799_v40 = vmul.f32 %v6485_v44, %v8846_v9 }
 0x684   : > { %v2764_v22 = vpop.xlane.xlu1 %2763  ;;  %v2804_v23 = vmul.f32 %v6487_v32, %v8864_v3  ;;  %v2803_v24 = vmul.f32 %v6487_v32, %v8862_v50 }
 0x685   : > { %6502 = vrcp.f32 %v2764_v22  ;;  %5696 = vmatpush3.bf16.msra.mxu0 %v9994_v20 }
 0x686   : > { %v6489_v56 = vpop.eup %6488  ;;  %5777 = vmatprep.subr.bf16.mxu0 %v9995_v28  ;;  %6504 = vrcp.f32 %v2761_v42  ;;  %v2828_v27 = vpack.c.bf16 %v2806_v29, %v2804_v23  ;;  %v2827_v15 = vpack.c.bf16 %v2805_v16, %v2803_v24  ;;  %v6651_v23 = vld [vmem:[#allocation2 + $0x8] ss:$12 sps:$4 sm:$0xff]  }
 0x687   : > { %v2802_v30 = vmul.f32 %v6489_v56, %v8882_v37  ;;  %v2801_v58 = vmul.f32 %v6489_v56, %v8878_v34  ;;  %v9176_v25 = vpop.eup %6490  ;;  %v2767_v2 = vpop.xlane.xlu0 %2766  ;;  %v9997_v16 = vld [vmem:[#allocation77_spill] sm:$0xff] }
 0x688   : > { %v9179_v61 = vpop.eup %6492 }
 0x689   : > { %v2826_v51 = vpack.c.bf16 %v2802_v30, %v2800_v53  ;;  %v2825_v33 = vpack.c.bf16 %v2801_v58, %v2799_v40  ;;  %v9182_v19 = vpop.eup %6494  ;;  %v4299_v34 = vadd.f32 %v9179_v61, %v9176_v25  ;;  %v6650_v58 = vld [vmem:[#allocation2 + $0xc8] ss:$12 sps:$4 sm:$0xff]  }
 0x68a   : > { %v9184_v9 = vpop.eup %6496 }
 0x68b   : > { %v2770_v7 = vpop.xlane.xlu1 %2769  ;;  %2939 = vmatprep.mubr.bf16.mxu0 %v2826_v51  ;;  %v6499_v37 = vpop.eup %6498  ;;  %v4302_v39 = vadd.f32 %v9184_v9, %v9182_v19 }
 0x68c   : > { %2940 = vmatmul.mubr.bf16.gmra.mxu0 %v2825_v33  ;;  %6506 = vrcp.f32 %v2770_v7  ;;  %v2808_v57 = vmul.f32 %v6499_v37, %v8890_v18  ;;  %v2807_v56 = vmul.f32 %v6499_v37, %v8888_v45  ;;  %v6652_v37 = vld [vmem:[#allocation2 + $0x20] ss:$12 sps:$4 sm:$0xff]  }
 0x68d   : > { %2947 = vmatprep.mubr.bf16.mxu0 %v2828_v27  ;;  %6508 = vrcp.f32 %v2767_v2 }
 0x68e   : > { %v6501_v3 = vpop.eup %6500 }
 0x68f   : > { %4300 = vadd.xlane.f32.xlu1 %v4299_v34  ;;  %v3504_v12 = vpop.xlane.xlu1 %3503  ;;  %v2810_v59 = vmul.f32 %v6501_v3, %v8912_v13  ;;  %v2809_v5 = vmul.f32 %v6501_v3, %v8910_v36 }
 0x691   : > { %v2830_v22 = vpack.c.bf16 %v2810_v59, %v2808_v57  ;;  %v2829_v13 = vpack.c.bf16 %v2809_v5, %v2807_v56  ;;  %v9999_v59 = vld [vmem:[#allocation81_spill] sm:$0xff] }
 0x692   : > { %v6503_v44 = vpop.eup %6502 }
 0x693   : > { %4303 = vadd.xlane.f32.xlu0 %v4302_v39  ;;  %v3507_v62 = vpop.xlane.xlu1 %3506  ;;  %v6505_v48 = vpop.eup %6504  ;;  %v2814_v32 = vmul.f32 %v6503_v44, %v8928_v31  ;;  %v2813_v30 = vmul.f32 %v6503_v44, %v8926_v21  ;;  %v10000_v44 = vld [vmem:[#allocation78_spill] sm:$0xff] }
 0x694   : > { %2948 = vmatmul.mubr.bf16.gmra.mxu0 %v2827_v15  ;;  %6510 = vrcp.f32 %v3507_v62  ;;  %v2812_v18 = vmul.f32 %v6505_v48, %v8918_v4  ;;  %v2811_v45 = vmul.f32 %v6505_v48, %v8916_v1  ;;  %v9996_v1 = vld [vmem:[#allocation76_spill] sm:$0xff]  ;;  %v4206_v15 = vsub.f32 %v9999_v59, %v9122_v38 }
 0x695   : > { %2955 = vmatprep.mubr.bf16.mxu0 %v2830_v22  ;;  %6512 = vrcp.f32 %v3504_v12  ;;  %v4201_v34 = vsub.f32 %v9996_v1, %v9120_v26  ;;  %v4202_v12 = vsub.f32 %v9997_v16, %v9120_v26  ;;  %v4203_v62 = vsub.f32 %v10000_v44, %v9116_v55  ;;  %v10001_v26 = vld [vmem:[#allocation79_spill] sm:$0xff] }
 0x696   : > { %v2832_v29 = vpack.c.bf16 %v2814_v32, %v2812_v18  ;;  %v2831_v31 = vpack.c.bf16 %v2813_v30, %v2811_v45  ;;  %v4204_v48 = vsub.f32 %v10001_v26, %v9116_v55  ;;  %v4211_v32 = vsub.f32 %v8851_v63, %v9142_v11  ;;  %v10005_v55 = vld [vmem:[#allocation42_spill] sm:$0xff]  ;;  %v10006_v63 = vld [vmem:[#allocation83_spill] sm:$0xff] }
 0x697   : > { %v3510_v50 = vpop.xlane.xlu1 %3509  ;;  %v4249_v57 = vmul.f32 1.442695, %v4201_v34  ;;  %v4251_v22 = vmul.f32 1.442695, %v4202_v12  ;;  %v10011_v34 = vld [vmem:[#allocation59_spill] sm:$0xff] }
 0x698   : > { %v4269_v45 = vmul.f32 1.442695, %v4211_v32  ;;  %v10014_v12 = vld [vmem:[#allocation27_spill] sm:$0xff] }
 0x699   : > { %v6507_v20 = vpop.eup %6506 }
 0x69a   : > { %v6509_v53 = vpop.eup %6508  ;;  %v2818_v40 = vmul.f32 %v6507_v20, %v8944_v43  ;;  %v2817_v43 = vmul.f32 %v6507_v20, %v8942_v8  ;;  %v9998_v8 = vld [vmem:[#allocation80_spill] sm:$0xff]  ;;  %v4253_v20 = vmul.f32 1.442695, %v4203_v62  ;;  %v10019_v62 = vld [vmem:[#allocation63_spill] sm:$0xff] }
 0x69b   : > { %v3513_v42 = vpop.xlane.xlu1 %3512  ;;  %v2816_v4 = vmul.f32 %v6509_v53, %v8936_v10  ;;  %v2815_v10 = vmul.f32 %v6509_v53, %v8934_v17  ;;  %v4205_v24 = vsub.f32 %v9998_v8, %v9122_v38  ;;  %v10002_v38 = vld [vmem:[#allocation21_spill] sm:$0xff]  ;;  %v10004_v53 = vld [vmem:[#allocation88_spill] sm:$0xff] }
 0x69c   : > { %2956 = vmatmul.mubr.bf16.gmra.mxu0 %v2829_v13  ;;  %6514 = vrcp.f32 %v3513_v42  ;;  %v4259_v13 = vmul.f32 1.442695, %v4206_v15  ;;  %v10003_v42 = vld [vmem:[#allocation43_spill] sm:$0xff]  ;;  %v4212_v30 = vsub.f32 %v10004_v53, %v9142_v11  ;;  %v10017_v15 = vld [vmem:[#allocation65_spill] sm:$0xff] }
 0x69d   : > { %2963 = vmatprep.mubr.bf16.mxu0 %v2832_v29  ;;  %6516 = vrcp.f32 %v3510_v50  ;;  %v2834_v51 = vpack.c.bf16 %v2818_v40, %v2816_v4  ;;  %v2833_v3 = vpack.c.bf16 %v2817_v43, %v2815_v10  ;;  %v4257_v50 = vmul.f32 1.442695, %v4205_v24  ;;  %v10009_v43 = vld [vmem:[#allocation62_spill] sm:$0xff]  ;;  %v10012_v10 = vld [vmem:[#allocation20_spill] sm:$0xff] }
 0x69e   : > { %v4271_v11 = vmul.f32 1.442695, %v4212_v30  ;;  %v10015_v24 = vld [vmem:[#allocation40_spill] sm:$0xff] }
 0x69f   : > { %v3516_v36 = vpop.xlane.xlu1 %3515 }
 0x6a0   : > { %4409 = vrot.lane.b32.xlu1 %v6650_v58, %s6869_s29  ;;  %v4207_v58 = vsub.f32 %v10006_v63, %v9124_v46  ;;  %v10026_v63 = vld [vmem:[#allocation22_spill] sm:$0xff] }
 0x6a1   : > { %v6511_v33 = vpop.eup %6510 }
 0x6a2   : > { %v6513_v21 = vpop.eup %6512  ;;  %v3569_v27 = vmul.f32 %v6511_v33, %v8960_v47  ;;  %v3568_v5 = vmul.f32 %v6511_v33, %v8958_v6  ;;  %v4255_v6 = vmul.f32 1.442695, %v4204_v48  ;;  %v10008_v33 = vld [vmem:[#allocation89_spill] sm:$0xff]  ;;  %v4261_v16 = vmul.f32 1.442695, %v4207_v58 }
 0x6a3   : > { %v3519_v28 = vpop.xlane.xlu1 %3518  ;;  %v3567_v2 = vmul.f32 %v6513_v21, %v8952_v60  ;;  %v3566_v29 = vmul.f32 %v6513_v21, %v10003_v42 }
 0x6a4   : > { %4393 = vrot.lane.b32.xlu1 %v6651_v23, %s6869_s29  ;;  %2964 = vmatmul.mubr.bf16.gmra.mxu0 %v2831_v31  ;;  %6518 = vrcp.f32 %v3519_v28  ;;  %v10007_v28 = vld [vmem:[#allocation84_spill] sm:$0xff]  ;;  %v4215_v23 = vsub.f32 %v10008_v33, %v9160_v14 }
 0x6a5   : > { %2971 = vmatprep.mubr.bf16.mxu0 %v2834_v51  ;;  %6520 = vrcp.f32 %v3516_v36  ;;  %v3599_v39 = vpack.c.bf16 %v3569_v27, %v3567_v2  ;;  %v3598_v40 = vpack.c.bf16 %v3568_v5, %v3566_v29  ;;  %v4208_v51 = vsub.f32 %v10007_v28, %v9124_v46  ;;  %v10010_v27 = vld [vmem:[#allocation90_spill] sm:$0xff]  ;;  %v10023_v29 = vld [vmem:[#allocation71_spill] sm:$0xff]  ;;  %v10029_v33 = vld [vmem:[#allocation72_spill] sm:$0xff] }
 0x6a6   : > { %v4216_v1 = vsub.f32 %v10010_v27, %v9160_v14  ;;  %v10013_v46 = vld [vmem:[#allocation82_spill] sm:$0xff]  ;;  %v4277_v14 = vmul.f32 1.442695, %v4215_v23 }
 0x6a7   : > { %v3522_v7 = vpop.xlane.xlu1 %3521  ;;  %v4209_v2 = vsub.f32 %v10013_v46, %v9130_v52  ;;  %v4263_v8 = vmul.f32 1.442695, %v4208_v51  ;;  %v10028_v28 = vld [vmem:[#allocation30_spill] sm:$0xff] }
 0x6a8   : > { %v4279_v44 = vmul.f32 1.442695, %v4216_v1 }
 0x6a9   : > { %4395 = vrot.lane.b32.xlu0 %v6652_v37, %s6869_s29  ;;  %v6515_v47 = vpop.eup %6514  ;;  %v4265_v26 = vmul.f32 1.442695, %v4209_v2 }
 0x6aa   : > { %v6517_v60 = vpop.eup %6516  ;;  %v3573_v18 = vmul.f32 %v6515_v47, %v10002_v38  ;;  %v3572_v37 = vmul.f32 %v6515_v47, %v10012_v10 }
 0x6ab   : > { %v3525_v17 = vpop.xlane.xlu1 %3524  ;;  %v3571_v36 = vmul.f32 %v6517_v60, %v10005_v55 }
 0x6ac   : > { %2972 = vmatmul.mubr.bf16.gmra.mxu0 %v2833_v3  ;;  %6522 = vrcp.f32 %v3525_v17  ;;  %v10018_v17 = vld [vmem:[#allocation24_spill] sm:$0xff] }
 0x6ad   : > { %3694 = vmatprep.mubr.bf16.mxu0 %v3599_v39  ;;  %6524 = vpow2.f32 %v4249_v57  ;;  %v3601_v4 = vpack.c.bf16 %v3573_v18, %v3571_v36  ;;  %v3570_v39 = vmul.f32 %v6517_v60, %v10015_v24  ;;  %v10016_v57 = vld [vmem:[#allocation85_spill] sm:$0xff]  ;;  %v10021_v18 = vld [vmem:[#allocation68_spill] sm:$0xff] }
 0x6ae   : > { %6526 = vrcp.f32 %v3522_v7  ;;  %v4210_v59 = vsub.f32 %v10016_v57, %v9130_v52  ;;  %v10025_v36 = vld [vmem:[#allocation33_spill] sm:$0xff] }
 0x6af   : > { %v3528_v56 = vpop.xlane.xlu0 %3527  ;;  %6528 = vpow2.f32 %v4251_v22  ;;  %v3600_v22 = vpack.c.bf16 %v3572_v37, %v3570_v39  ;;  %v10031_v39 = vld [vmem:[#allocation28_spill] sm:$0xff] }
 0x6b0   : > { %6530 = vpow2.f32 %v4257_v50  ;;  %v4267_v52 = vmul.f32 1.442695, %v4210_v59  ;;  %v10020_v50 = vld [vmem:[#allocation86_spill] sm:$0xff] }
 0x6b1   : > { %v6519_v31 = vpop.eup %6518  ;;  %6532 = vpow2.f32 %v4259_v13  ;;  %v4213_v32 = vsub.f32 %v10020_v50, %v9133_v35  ;;  %v10022_v13 = vld [vmem:[#allocation87_spill] sm:$0xff] }
 0x6b2   : > { %6534 = vpow2.f32 %v4253_v20  ;;  %v6521_v7 = vpop.eup %6520  ;;  %v3577_v3 = vmul.f32 %v6519_v31, %v10014_v12  ;;  %v4214_v42 = vsub.f32 %v10022_v13, %v9133_v35  ;;  %v10024_v20 = vld [vmem:[#allocation25_spill] sm:$0xff] }
 0x6b3   : > { %v3531_v21 = vpop.xlane.xlu0 %3530  ;;  %6536 = vpow2.f32 %v4255_v6  ;;  %v3575_v47 = vmul.f32 %v6521_v7, %v10018_v17  ;;  %v3576_v53 = vmul.f32 %v6519_v31, %v10024_v20  ;;  %v3574_v58 = vmul.f32 %v6521_v7, %v10026_v63  ;;  %v10032_v17 = vld [vmem:[#allocation44_spill] sm:$0xff]  ;;  %v10035_v20 = vld [vmem:[#allocation34_spill] sm:$0xff] }
 0x6b4   : > { %3695 = vmatmul.mubr.bf16.vlgmr.msra.gmra.mxu0 %v3598_v40  ;;  %6538 = vpow2.f32 %v4269_v45  ;;  %v4273_v35 = vmul.f32 1.442695, %v4213_v32 }
 0x6b5   : > { %5778 = vmatpush3.bf16.msra.mxu0 %v10009_v43  ;;  %3702 = vmatprep.mubr.bf16.mxu0 %v3601_v4  ;;  %6540 = vrcp.f32 %v3531_v21  ;;  %v3603_v48 = vpack.c.bf16 %v3577_v3, %v3575_v47  ;;  %v10027_v4 = vld [vmem:[#allocation75_spill] sm:$0xff]  ;;  %v3602_v23 = vpack.c.bf16 %v3576_v53, %v3574_v58 }
 0x6b6   : > { %5779 = vmatprep.subr.bf16.mxu0 %v10011_v34  ;;  %6542 = vpow2.f32 %v4271_v11  ;;  %v4275_v11 = vmul.f32 1.442695, %v4214_v42  ;;  %v10034_v42 = vld [vmem:[#allocation51_spill] sm:$0xff] }
 0x6b7   : > { %6544 = vrcp.f32 %v3528_v56  ;;  %v3534_v55 = vpop.xlane.xlu0 %3533 }
 0x6b8   : > { %6546 = vpow2.f32 %v4261_v16  ;;  %v10030_v16 = vld [vmem:[#allocation31_spill] sm:$0xff] }
 0x6b9   : > { %5780 = vmatpush3.bf16.msra.mxu0 %v10017_v15  ;;  %v6523_v5 = vpop.eup %6522  ;;  %6548 = vpow2.f32 %v4263_v8 }
 0x6ba   : > { %5781 = vmatprep.subr.bf16.mxu0 %v10019_v62  ;;  %v9249_v60 = vpop.eup %6524  ;;  %6550 = vpow2.f32 %v4277_v14  ;;  %v3581_v6 = vmul.f32 %v6523_v5, %v10025_v36  ;;  %v3580_v12 = vmul.f32 %v6523_v5, %v10030_v16 }
 0x6bb   : > { %v3537_v38 = vpop.xlane.xlu1 %3536  ;;  %v6527_v56 = vpop.eup %6526  ;;  %6552 = vpow2.f32 %v4279_v44 }
 0x6bc   : > { %3703 = vmatmul.mubr.bf16.gmra.mxu0 %v3600_v22  ;;  %v9258_v30 = vpop.eup %6528  ;;  %6554 = vpow2.f32 %v4265_v26  ;;  %v3579_v51 = vmul.f32 %v6527_v56, %v10028_v28  ;;  %v3578_v57 = vmul.f32 %v6527_v56, %v10031_v39  ;;  %v10033_v56 = vld [vmem:[#allocation45_spill] sm:$0xff] }
 0x6bd   : > { %5782 = vmatpush3.bf16.msra.mxu0 %v10021_v18  ;;  %3710 = vmatprep.mubr.bf16.mxu0 %v3603_v48  ;;  %v9261_v40 = vpop.eup %6530  ;;  %6556 = vrcp.f32 %v3537_v38  ;;  %v4305_v10 = vadd.f32 %v9258_v30, %v9249_v60 }
 0x6be   : > { %5783 = vmatprep.subr.bf16.mxu0 %v10023_v29  ;;  %v9264_v45 = vpop.eup %6532  ;;  %6558 = vpow2.f32 %v4267_v52  ;;  %v3605_v43 = vpack.c.bf16 %v3581_v6, %v3579_v51  ;;  %v3604_v22 = vpack.c.bf16 %v3580_v12, %v3578_v57  ;;  %v10036_v6 = vld [vmem:[#allocation48_spill] sm:$0xff] }
 0x6bf   : > { %v9268_v31 = vpop.eup %6534  ;;  %6560 = vrcp.f32 %v3534_v55  ;;  %v3540_v2 = vpop.xlane.xlu0 %3539  ;;  %v4311_v14 = vadd.f32 %v9264_v45, %v9261_v40 }
 0x6c0   : > { %v9271_v21 = vpop.eup %6536  ;;  %6562 = vpow2.f32 %v4273_v35 }
 0x6c1   : > { %5784 = vmatpush3.bf16.msra.mxu0 %v10027_v4  ;;  %v9273_v27 = vpop.eup %6538  ;;  %6564 = vpow2.f32 %v4275_v11  ;;  %v4308_v37 = vadd.f32 %v9271_v21, %v9268_v31 }
 0x6c2   : > { %5785 = vmatprep.subr.bf16.mxu0 %v10029_v33  ;;  %v6541_v7 = vpop.eup %6540 }
 0x6c3   : > { %v3543_v1 = vpop.xlane.xlu1 %3542  ;;  %v9275_v34 = vpop.eup %6542  ;;  %v3585_v8 = vmul.f32 %v6541_v7, %v9024_v49  ;;  %v3584_v13 = vmul.f32 %v6541_v7, %v10033_v56 }
 0x6c4   : > { %3711 = vmatmul.mubr.bf16.gmra.mxu0 %v3602_v23  ;;  %v6545_v46 = vpop.eup %6544  ;;  %6566 = vrcp.f32 %v3543_v1  ;;  %v4320_v15 = vadd.f32 %v9275_v34, %v9273_v27  ;;  %v10037_v23 = vld [vmem:[#allocation50_spill] sm:$0xff]  ;;  %v10038_v1 = vld [vmem:[#allocation47_spill] sm:$0xff] }
 0x6c5   : > { %3718 = vmatprep.mubr.bf16.mxu0 %v3605_v43  ;;  %v9282_v3 = vpop.eup %6546  ;;  %6568 = vrcp.f32 %v3540_v2  ;;  %v3583_v47 = vmul.f32 %v6545_v46, %v10032_v17  ;;  %v3582_v53 = vmul.f32 %v6545_v46, %v10035_v20 }
 0x6c6   : > { %v9285_v24 = vpop.eup %6548 }
 0x6c7   : > { %v9288_v59 = vpop.eup %6550  ;;  %v3607_v26 = vpack.c.bf16 %v3585_v8, %v3583_v47  ;;  %v3546_v52 = vpop.xlane.xlu0 %3545  ;;  %v4314_v50 = vadd.f32 %v9285_v24, %v9282_v3  ;;  %v3606_v4 = vpack.c.bf16 %v3584_v13, %v3582_v53 }
 0x6c8   : > { %4306 = vadd.xlane.f32.xlu0 %v4305_v10  ;;  %4309 = vadd.xlane.f32.xlu1 %v4308_v37  ;;  %v9295_v44 = vpop.eup %6552  ;;  %v10039_v37 = vld [vmem:[#allocation55_spill] sm:$0xff] }
 0x6c9   : > { %v9297_v49 = vpop.eup %6554  ;;  %v4326_v32 = vadd.f32 %v9295_v44, %v9288_v59 }
 0x6ca   : > { %v6557_v48 = vpop.eup %6556 }
 0x6cb   : > { %v3549_v62 = vpop.xlane.xlu1 %3548  ;;  %v9299_v5 = vpop.eup %6558  ;;  %v3589_v29 = vmul.f32 %v6557_v48, %v10034_v42  ;;  %v3588_v43 = vmul.f32 %v6557_v48, %v10037_v23 }
 0x6cc   : > { %4312 = vadd.xlane.f32.xlu0 %v4311_v14  ;;  %4321 = vadd.xlane.f32.xlu1 %v4320_v15  ;;  %v6561_v38 = vpop.eup %6560  ;;  %6570 = vrcp.f32 %v3549_v62  ;;  %v4317_v36 = vadd.f32 %v9299_v5, %v9297_v49 }
 0x6cd   : > { %3719 = vmatmul.mubr.bf16.gmra.mxu0 %v3604_v22  ;;  %6572 = vrcp.f32 %v3546_v52  ;;  %v9308_v55 = vpop.eup %6562  ;;  %v3587_v63 = vmul.f32 %v6561_v38, %v10036_v6  ;;  %v3586_v10 = vmul.f32 %v6561_v38, %v10038_v1  ;;  %v10042_v52 = vld [vmem:[#allocation61_spill] sm:$0xff] }
 0x6ce   : > { %3726 = vmatprep.mubr.bf16.mxu0 %v3607_v26  ;;  %v9313_v58 = vpop.eup %6564  ;;  %v10041_v26 = vld [vmem:[#allocation58_spill] sm:$0xff]  ;;  %v10046_v6 = vld [vmem:[#allocation57_spill] sm:$0xff] }
 0x6cf   : > { %v4283_v18 = vpop.xlane.xlu1 %4282  ;;  %v3609_v28 = vpack.c.bf16 %v3589_v29, %v3587_v63  ;;  %v4323_v11 = vadd.f32 %v9313_v58, %v9308_v55  ;;  %v3608_v16 = vpack.c.bf16 %v3588_v43, %v3586_v10 }
 0x6d0   : > { %4315 = vadd.xlane.f32.xlu0 %v4314_v50  ;;  %4327 = vadd.xlane.f32.xlu1 %v4326_v32  ;;  %6574 = vrcp.f32 %v4283_v18  ;;  %v10043_v32 = vld [vmem:[#allocation66_spill] sm:$0xff] }
 0x6d1   : > { %v6567_v51 = vpop.eup %6566 }
 0x6d2   : > { %v6569_v33 = vpop.eup %6568  ;;  %v3593_v7 = vmul.f32 %v6567_v51, %v9056_v41  ;;  %v3592_v17 = vmul.f32 %v6567_v51, %v9054_v0  ;;  %v10040_v41 = vld [vmem:[#allocation54_spill] sm:$0xff]  ;;  %v10044_v0 = vld [vmem:[#allocation60_spill] sm:$0xff] }
 0x6d3   : > { %v4286_v35 = vpop.xlane.xlu1 %4285  ;;  %v3591_v46 = vmul.f32 %v6569_v33, %v10039_v37  ;;  %v3590_v22 = vmul.f32 %v6569_v33, %v10040_v41 }
 0x6d4   : > { %6576 = vrcp.f32 %v4286_v35  ;;  %4318 = vadd.xlane.f32.xlu0 %v4317_v36  ;;  %v10047_v35 = vld [vmem:[#allocation64_spill] sm:$0xff] }
 0x6d5   : > { %3727 = vmatmul.mubr.bf16.gmra.mxu0 %v3606_v4  ;;  %v3611_v12 = vpack.c.bf16 %v3593_v7, %v3591_v46  ;;  %v3610_v56 = vpack.c.bf16 %v3592_v17, %v3590_v22  ;;  %v10048_v46 = vld [vmem:[#allocation74_spill] sm:$0xff]  ;;  %v10050_v17 = vld [vmem:[#allocation73_spill] sm:$0xff] }
 0x6d6   : > { %3734 = vmatprep.mubr.bf16.mxu0 %v3609_v28 }
 0x6d7   : > { %v4289_v2 = vpop.xlane.xlu1 %4288 }
 0x6d8   : > { %4324 = vadd.xlane.f32.xlu0 %v4323_v11 }
 0x6d9   : > { %v6571_v8 = vpop.eup %6570 }
 0x6da   : > { %v6573_v39 = vpop.eup %6572  ;;  %v3597_v47 = vmul.f32 %v6571_v8, %v9072_v54  ;;  %v3596_v53 = vmul.f32 %v6571_v8, %v10044_v0  ;;  %v10045_v54 = vld [vmem:[#allocation67_spill] sm:$0xff]  ;;  %v10049_v8 = vld [vmem:[#allocation70_spill] sm:$0xff] }
 0x6db   : > { %v4292_v14 = vpop.xlane.xlu0 %4291  ;;  %v3595_v48 = vmul.f32 %v6573_v39, %v10041_v26  ;;  %v3594_v63 = vmul.f32 %v6573_v39, %v10046_v6  ;;  %v10052_v26 = vld [vmem:[#allocation69_spill] sm:$0xff] }
 0x6dc   : > { %6578 = vrcp.f32 %v4292_v14 }
 0x6dd   : > { %3735 = vmatmul.mubr.bf16.gmra.mxu0 %v3608_v16  ;;  %v6575_v57 = vpop.eup %6574  ;;  %v3613_v13 = vpack.c.bf16 %v3597_v47, %v3595_v48  ;;  %v3612_v11 = vpack.c.bf16 %v3596_v53, %v3594_v63  ;;  %6580 = vrcp.f32 %v4289_v2  ;;  %v10054_v53 = vld [vmem:[#allocation93_spill] sm:$0xff]  ;;  %v10055_v63 = vld [vmem:[#allocation91_spill] sm:$0xff] }
 0x6de   : > { %3742 = vmatprep.mubr.bf16.mxu0 %v3611_v12  ;;  %v4345_v50 = vmul.f32 %v6575_v57, %v10042_v52  ;;  %v4346_v4 = vmul.f32 %v6575_v57, %v10047_v35 }
 0x6df   : > { %v4295_v15 = vpop.xlane.xlu1 %4294 }
 0x6e1   : > { %v6577_v62 = vpop.eup %6576 }
 0x6e2   : > { %v4347_v38 = vmul.f32 %v6577_v62, %v10043_v32  ;;  %v4348_v36 = vmul.f32 %v6577_v62, %v10045_v54  ;;  %v10051_v62 = vld [vmem:[#allocation94_spill] sm:$0xff] }
 0x6e3   : > { %v4298_v18 = vpop.xlane.xlu0 %4297  ;;  %v4414_v29 = vpop.permute.xlu1 %4413 }
 0x6e4   : > { %v4377_v42 = vpack.c.bf16 %v4347_v38, %v4345_v50  ;;  %v4378_v33 = vpack.c.bf16 %v4348_v36, %v4346_v4  ;;  %6582 = vrcp.f32 %v4298_v18  ;;  %v10053_v50 = vld [vmem:[#allocation92_spill] sm:$0xff] }
 0x6e5   : > { %3743 = vmatmul.mubr.bf16.gmra.mxu0 %v3610_v56  ;;  %6584 = vrcp.f32 %v4295_v15 }
 0x6e6   : > { %3750 = vmatprep.mubr.bf16.mxu0 %v3613_v13 }
 0x6e7   : > { %v4400_v20 = vpop.permute.xlu0 %4399  ;;  %v4398_v28 = vpop.permute.xlu1 %4397 }
 0x6e8   : > { %5786 = vmatpush3.bf16.msra.mxu0 %v4400_v20 }
 0x6e9   : > { %5787 = vmatprep.subr.bf16.mxu0 %v4414_v29  ;;  %v6579_v1 = vpop.eup %6578 }
 0x6ea   : > { %v6581_v37 = vpop.eup %6580  ;;  %v4352_v16 = vmul.f32 %v6579_v1, %v10048_v46  ;;  %v4351_v47 = vmul.f32 %v6579_v1, %v10050_v17 }
 0x6eb   : > { %v4412_v51 = vpop.permute.xlu0 %4411  ;;  %v4350_v39 = vmul.f32 %v6581_v37, %v10049_v8  ;;  %v4349_v48 = vmul.f32 %v6581_v37, %v10052_v26 }
 0x6ec   : > { %5788 = vmatpush3.bf16.msra.mxu0 %v4398_v28 }
 0x6ed   : > { %3751 = vmatmul.mubr.bf16.gmra.mxu0 %v3612_v11  ;;  %5789 = vmatprep.subr.bf16.mxu0 %v4412_v51  ;;  %v4380_v57 = vpack.c.bf16 %v4352_v16, %v4350_v39  ;;  %v4379_v18 = vpack.c.bf16 %v4351_v47, %v4349_v48 }
 0x6ee   : > { %4473 = vmatprep.mubr.bf16.mxu0 %v4378_v33 }
 0x6f1   : > { %v6583_v2 = vpop.eup %6582 }
 0x6f2   : > { %v6585_v14 = vpop.eup %6584  ;;  %v4356_v41 = vmul.f32 %v6583_v2, %v10051_v62  ;;  %v4355_v54 = vmul.f32 %v6583_v2, %v10054_v53 }
 0x6f3   : > { %v4354_v32 = vmul.f32 %v6585_v14, %v10053_v50  ;;  %v4353_v35 = vmul.f32 %v6585_v14, %v10055_v63 }
 0x6f5   : > { %v4382_v13 = vpack.c.bf16 %v4356_v41, %v4354_v32  ;;  %v4381_v51 = vpack.c.bf16 %v4355_v54, %v4353_v35 }
 0x718   : > { %v4301_v23 = vpop.xlane.xlu1 %4300 }
 0x71c   : > { %v4304_v43 = vpop.xlane.xlu0 %4303  ;;  %v4410_v7 = vpop.permute.xlu1 %4409 }
 0x71d   : > { %6586 = vrcp.f32 %v4304_v43 }
 0x71e   : > { %6588 = vrcp.f32 %v4301_v23 }
 0x720   : > { %v4396_v10 = vpop.permute.xlu0 %4395  ;;  %v4394_v12 = vpop.permute.xlu1 %4393 }
 0x721   : > { %5790 = vmatpush3.bf16.msra.mxu0 %v4396_v10 }
 0x722   : > { %5791 = vmatprep.subr.bf16.mxu0 %v4410_v7 }
 0x725   : > { %5792 = vmatpush3.bf16.msra.mxu0 %v4394_v12 }
 0x728   : > { %4474 = vmatmul.mubr.bf16.vlgmr.msra.gmra.mxu0 %v4377_v42  ;;  %v5601_v15 = vpop.f32.mrf.mxu0 }
 0x729   : > { %4481 = vmatprep.mubr.bf16.mxu0 %v4380_v57 }
 0x72a   : > { %v5602_v22 = vpop.f32.mrf.mxu0  ;;  %v6587_v29 = vpop.eup %6586 }
 0x72b   : > { %v5603_v52 = vadd.f32 %v5602_v22, %v5601_v15  ;;  %v6589_v0 = vpop.eup %6588  ;;  %v4360_v6 = vmul.f32 %v6587_v29, %v9184_v9  ;;  %v4359_v7 = vmul.f32 %v6587_v29, %v9182_v19 }
 0x72c   : > { %v5604_v38 = vpop.f32.mrf.mxu0  ;;  %v4358_v4 = vmul.f32 %v6589_v0, %v9179_v61  ;;  %v4357_v9 = vmul.f32 %v6589_v0, %v9176_v25 }
 0x72d   : > { %v5385_v56 = vpack.c.bf16 %v5603_v52, %v5603_v52 }
 0x72e   : > { %v5605_v20 = vpop.f32.mrf.mxu0  ;;  %v4384_v11 = vpack.c.bf16 %v4360_v6, %v4358_v4  ;;  %v4383_v46 = vpack.c.bf16 %v4359_v7, %v4357_v9 }
 0x72f   : > { %v5606_v42 = vadd.f32 %v5605_v20, %v5604_v38  ;;  %3028 = vrot.lane.b32.xlu0 %v5385_v56, %s6869_s29 }
 0x730   : > { %4482 = vmatmul.mubr.bf16.gmra.mxu0 %v4379_v18 }
 0x731   : > { %4489 = vmatprep.mubr.bf16.mxu0 %v4382_v13  ;;  %v5386_v36 = vpack.c.bf16 %v5606_v42, %v5606_v42 }
 0x733   : > { %3030 = vrot.lane.b32.xlu1 %v5386_v36, %s6869_s29 }
 0x734   : > { %v5607_v28 = vpop.f32.mrf.mxu0 }
 0x736   : > { %v5608_v33 = vpop.f32.mrf.mxu0 }
 0x737   : > { %v5609_v23 = vadd.f32 %v5608_v33, %v5607_v28 }
 0x738   : > { %4490 = vmatmul.mubr.bf16.gmra.mxu0 %v4381_v51  ;;  %v5610_v43 = vpop.f32.mrf.mxu0 }
 0x739   : > { %4497 = vmatprep.mubr.bf16.mxu0 %v4384_v11  ;;  %v5387_v1 = vpack.c.bf16 %v5609_v23, %v5609_v23 }
 0x73a   : > { %v5611_v10 = vpop.f32.mrf.mxu0 }
 0x73b   : > { %v5612_v37 = vadd.f32 %v5611_v10, %v5610_v43  ;;  %3032 = vrot.lane.b32.xlu1 %v5387_v1, %s6869_s29 }
 0x73d   : > { %v5388_v16 = vpack.c.bf16 %v5612_v37, %v5612_v37 }
 0x73f   : > { %3034 = vrot.lane.b32.xlu1 %v5388_v16, %s6869_s29 }
 0x740   : > { %4498 = vmatmul.mubr.bf16.gmra.mxu0 %v4383_v46  ;;  %v5613_v61 = vpop.f32.mrf.mxu0 }
 0x742   : > { %v5614_v12 = vpop.f32.mrf.mxu0 }
 0x743   : > { %v5615_v8 = vadd.f32 %v5614_v12, %v5613_v61 }
 0x744   : > { %v5616_v39 = vpop.f32.mrf.mxu0 }
 0x745   : > { %v5389_v57 = vpack.c.bf16 %v5615_v8, %v5615_v8 }
 0x746   : > { %v5617_v2 = vpop.f32.mrf.mxu0 }
 0x747   : > { %v5618_v14 = vadd.f32 %v5617_v2, %v5616_v39  ;;  %3036 = vrot.lane.b32.xlu0 %v5389_v57, %s6869_s29 }
 0x749   : > { %v5390_v19 = vpack.c.bf16 %v5618_v14, %v5618_v14 }
 0x74b   : > { %3038 = vrot.lane.b32.xlu1 %v5390_v19, %s6869_s29 }
 0x74c   : > { %v5619_v15 = vpop.f32.mrf.mxu0 }
 0x74e   : > { %v5620_v25 = vpop.f32.mrf.mxu0 }
 0x74f   : > { %v5621_v17 = vadd.f32 %v5620_v25, %v5619_v15 }
 0x750   : > { %v5622_v47 = vpop.f32.mrf.mxu0 }
 0x751   : > { %v5391_v62 = vpack.c.bf16 %v5621_v17, %v5621_v17  ;;  %v4307_v41 = vpop.xlane.xlu0 %4306  ;;  %v4310_v22 = vpop.xlane.xlu1 %4309 }
 0x752   : > { %6590 = vrcp.f32 %v4307_v41  ;;  %v5623_v26 = vpop.f32.mrf.mxu0 }
 0x753   : > { %6592 = vrcp.f32 %v4310_v22  ;;  %v5624_v48 = vadd.f32 %v5623_v26, %v5622_v47  ;;  %3040 = vrot.lane.b32.xlu0 %v5391_v62, %s6869_s29 }
 0x754   : > { %v5625_v52 = vpop.f32.mrf.mxu0 }
 0x755   : > { %v5392_v50 = vpack.c.bf16 %v5624_v48, %v5624_v48  ;;  %v4313_v32 = vpop.xlane.xlu0 %4312  ;;  %v4322_v13 = vpop.xlane.xlu1 %4321 }
 0x756   : > { %v5626_v38 = vpop.f32.mrf.mxu0  ;;  %6594 = vrcp.f32 %v4313_v32 }
 0x757   : > { %v5627_v18 = vadd.f32 %v5626_v38, %v5625_v52  ;;  %3042 = vrot.lane.b32.xlu1 %v5392_v50, %s6869_s29 }
 0x758   : > { %v5628_v56 = vpop.f32.mrf.mxu0 }
 0x759   : > { %v5393_v29 = vpack.c.bf16 %v5627_v18, %v5627_v18  ;;  %v4316_v20 = vpop.xlane.xlu0 %4315  ;;  %v4328_v28 = vpop.xlane.xlu1 %4327 }
 0x75a   : > { %6596 = vrcp.f32 %v4316_v20  ;;  %v5629_v42 = vpop.f32.mrf.mxu0 }
 0x75b   : > { %v5630_v0 = vadd.f32 %v5629_v42, %v5628_v56  ;;  %3044 = vrot.lane.b32.xlu0 %v5393_v29, %s6869_s29  ;;  %6598 = vrcp.f32 %v4322_v13 }
 0x75c   : > { %v5631_v53 = vpop.f32.mrf.mxu0 }
 0x75d   : > { %v5394_v54 = vpack.c.bf16 %v5630_v0, %v5630_v0  ;;  %v4319_v36 = vpop.xlane.xlu0 %4318 }
 0x75e   : > { %6600 = vrcp.f32 %v4319_v36  ;;  %v5632_v6 = vpop.f32.mrf.mxu0 }
 0x75f   : > { %v6591_v63 = vpop.eup %6590  ;;  %v5633_v35 = vadd.f32 %v5632_v6, %v5631_v53  ;;  %3046 = vrot.lane.b32.xlu1 %v5394_v54, %s6869_s29 }
 0x760   : > { %v6593_v4 = vpop.eup %6592  ;;  %v5634_v51 = vpop.f32.mrf.mxu0  ;;  %v4362_v11 = vmul.f32 %v6591_v63, %v9258_v30  ;;  %v4361_v33 = vmul.f32 %v6591_v63, %v9249_v60 }
 0x761   : > { %v5395_v23 = vpack.c.bf16 %v5633_v35, %v5633_v35  ;;  %v4325_v43 = vpop.xlane.xlu0 %4324  ;;  %v4364_v7 = vmul.f32 %v6593_v4, %v9271_v21  ;;  %v4363_v1 = vmul.f32 %v6593_v4, %v9268_v31 }
 0x762   : > { %6602 = vrcp.f32 %v4325_v43  ;;  %v5635_v10 = vpop.f32.mrf.mxu0 }
 0x763   : > { %6604 = vrcp.f32 %v4328_v28  ;;  %v5636_v9 = vadd.f32 %v5635_v10, %v5634_v51  ;;  %3048 = vrot.lane.b32.xlu0 %v5395_v23, %s6869_s29  ;;  %v4386_v37 = vpack.c.bf16 %v4364_v7, %v4362_v11  ;;  %v4385_v46 = vpack.c.bf16 %v4363_v1, %v4361_v33  ;;  %v6595_v61 = vpop.eup %6594 }
 0x764   : > { %v5637_v16 = vpop.f32.mrf.mxu0  ;;  %v4366_v31 = vmul.f32 %v6595_v61, %v9264_v45  ;;  %v4365_v57 = vmul.f32 %v6595_v61, %v9261_v40 }
 0x765   : > { %v5396_v12 = vpack.c.bf16 %v5636_v9, %v5636_v9  ;;  %4505 = vmatprep.mubr.bf16.mxu0 %v4386_v37 }
 0x766   : > { %4506 = vmatmul.mubr.bf16.gmra.mxu0 %v4385_v46  ;;  %v5638_v60 = vpop.f32.mrf.mxu0 }
 0x767   : > { %v6597_v30 = vpop.eup %6596  ;;  %v5639_v8 = vadd.f32 %v5638_v60, %v5637_v16  ;;  %3050 = vrot.lane.b32.xlu1 %v5396_v12, %s6869_s29 }
 0x768   : > { %v5640_v21 = vpop.f32.mrf.mxu0  ;;  %v4368_v39 = vmul.f32 %v6597_v30, %v9285_v24  ;;  %v4367_v2 = vmul.f32 %v6597_v30, %v9282_v3  ;;  %v6599_v14 = vpop.eup %6598 }
 0x769   : > { %v5397_v19 = vpack.c.bf16 %v5639_v8, %v5639_v8  ;;  %v4372_v45 = vmul.f32 %v6599_v14, %v9275_v34 }
 0x76a   : > { %v5641_v15 = vpop.f32.mrf.mxu0  ;;  %v4388_v25 = vpack.c.bf16 %v4368_v39, %v4366_v31  ;;  %v4387_v17 = vpack.c.bf16 %v4367_v2, %v4365_v57 }
 0x76b   : > { %v6601_v47 = vpop.eup %6600  ;;  %v5642_v62 = vadd.f32 %v5641_v15, %v5640_v21  ;;  %3052 = vrot.lane.b32.xlu0 %v5397_v19, %s6869_s29 }
 0x76c   : > { %4513 = vmatprep.mubr.bf16.mxu0 %v4388_v25  ;;  %v5643_v41 = vpop.f32.mrf.mxu0  ;;  %v4370_v22 = vmul.f32 %v6601_v47, %v9299_v5  ;;  %v4369_v32 = vmul.f32 %v6601_v47, %v9297_v49  ;;  %v4371_v5 = vmul.f32 %v6599_v14, %v9273_v27 }
 0x76d   : > { %v5398_v24 = vpack.c.bf16 %v5642_v62, %v5642_v62 }
 0x76e   : > { %4514 = vmatmul.mubr.bf16.gmra.mxu0 %v4387_v17  ;;  %v5644_v40 = vpop.f32.mrf.mxu0  ;;  %v4390_v26 = vpack.c.bf16 %v4372_v45, %v4370_v22  ;;  %v4389_v20 = vpack.c.bf16 %v4371_v5, %v4369_v32 }
 0x76f   : > { %v6603_v3 = vpop.eup %6602  ;;  %v5645_v48 = vadd.f32 %v5644_v40, %v5643_v41  ;;  %3054 = vrot.lane.b32.xlu1 %v5398_v24, %s6869_s29 }
 0x770   : > { %v6605_v52 = vpop.eup %6604  ;;  %4521 = vmatprep.mubr.bf16.mxu0 %v4390_v26  ;;  %v5646_v50 = vpop.f32.mrf.mxu0  ;;  %v4374_v18 = vmul.f32 %v6603_v3, %v9313_v58  ;;  %v4373_v58 = vmul.f32 %v6603_v3, %v9308_v55 }
 0x771   : > { %v5399_v38 = vpack.c.bf16 %v5645_v48, %v5645_v48  ;;  %v4376_v13 = vmul.f32 %v6605_v52, %v9295_v44  ;;  %v4375_v6 = vmul.f32 %v6605_v52, %v9288_v59 }
 0x772   : > { %v5647_v56 = vpop.f32.mrf.mxu0 }
 0x773   : > { %v5648_v34 = vadd.f32 %v5647_v56, %v5646_v50  ;;  %3056 = vrot.lane.b32.xlu0 %v5399_v38, %s6869_s29  ;;  %v4392_v0 = vpack.c.bf16 %v4376_v13, %v4374_v18  ;;  %v4391_v35 = vpack.c.bf16 %v4375_v6, %v4373_v58 }
 0x774   : > { %v5697_v29 = vpop.f32.mrf.mxu0 }
 0x775   : > { %v5400_v42 = vpack.c.bf16 %v5648_v34, %v5648_v34 }
 0x776   : > { %4522 = vmatmul.mubr.bf16.gmra.mxu0 %v4389_v20  ;;  %v5698_v53 = vpop.f32.mrf.mxu0 }
 0x777   : > { %4529 = vmatprep.mubr.bf16.mxu0 %v4392_v0  ;;  %v5699_v54 = vadd.f32 %v5698_v53, %v5697_v29  ;;  %3058 = vrot.lane.b32.xlu1 %v5400_v42, %s6869_s29 }
 0x778   : > { %v5700_v49 = vpop.f32.mrf.mxu0 }
 0x779   : > { %v5401_v36 = vpack.c.bf16 %v5699_v54, %v5699_v54 }
 0x77a   : > { %v5701_v27 = vpop.f32.mrf.mxu0 }
 0x77b   : > { %v5702_v63 = vadd.f32 %v5701_v27, %v5700_v49  ;;  %3807 = vrot.lane.b32.xlu0 %v5401_v36, %s6868_s1 }
 0x77c   : > { %v5703_v44 = vpop.f32.mrf.mxu0 }
 0x77d   : > { %v5402_v4 = vpack.c.bf16 %v5702_v63, %v5702_v63 }
 0x77e   : > { %4530 = vmatmul.mubr.bf16.gmra.mxu0 %v4391_v35  ;;  %v5704_v28 = vpop.f32.mrf.mxu0 }
 0x77f   : > { %v5705_v51 = vadd.f32 %v5704_v28, %v5703_v44  ;;  %3809 = vrot.lane.b32.xlu1 %v5402_v4, %s6868_s1  ;;  %v6206_v4 = vld [vmem:[#allocation9 + $0x38] sm:$0xff]   ;;  %v6207_v28 = vld [vmem:[#allocation9 + $0x30] sm:$0xff]  }
 0x780   : > { %v5706_v11 = vpop.f32.mrf.mxu0  ;;  %5905 = vmatprep.subr.bf16.mxu1 %v6206_v4 }
 0x781   : > { %v5403_v33 = vpack.c.bf16 %v5705_v51, %v5705_v51  ;;  %5906 = vmatpush3.bf16.msra.mxu1 %v6206_v4 }
 0x782   : > { %v5707_v23 = vpop.f32.mrf.mxu0  ;;  %5907 = vmatprep.subr.bf16.mxu1 %v6207_v28 }
 0x783   : > { %v5708_v43 = vadd.f32 %v5707_v23, %v5706_v11  ;;  %3811 = vrot.lane.b32.xlu0 %v5403_v33, %s6868_s1  ;;  %v6208_v11 = vld [vmem:[#allocation9 + $0x28] sm:$0xff]  }
 0x784   : > { %v5709_v55 = vpop.f32.mrf.mxu0 }
 0x785   : > { %v5404_v7 = vpack.c.bf16 %v5708_v43, %v5708_v43  ;;  %5908 = vmatpush3.bf16.msra.mxu1 %v6207_v28 }
 0x786   : > { %v5710_v59 = vpop.f32.mrf.mxu0  ;;  %5909 = vmatprep.subr.bf16.mxu1 %v6208_v11 }
 0x787   : > { %v5711_v1 = vadd.f32 %v5710_v59, %v5709_v55  ;;  %3813 = vrot.lane.b32.xlu1 %v5404_v7, %s6868_s1  ;;  %v6209_v59 = vld [vmem:[#allocation9 + $0x20] sm:$0xff]  }
 0x788   : > { %v5712_v10 = vpop.f32.mrf.mxu0 }
 0x789   : > { %v5405_v9 = vpack.c.bf16 %v5711_v1, %v5711_v1  ;;  %5910 = vmatpush3.bf16.msra.mxu1 %v6208_v11 }
 0x78a   : > { %v5713_v37 = vpop.f32.mrf.mxu0  ;;  %5911 = vmatprep.subr.bf16.mxu1 %v6209_v59 }
 0x78b   : > { %v5714_v46 = vadd.f32 %v5713_v37, %v5712_v10  ;;  %3815 = vrot.lane.b32.xlu0 %v5405_v9, %s6868_s1  ;;  %v6210_v10 = vld [vmem:[#allocation9 + $0x18] sm:$0xff]  }
 0x78d   : > { %v5406_v16 = vpack.c.bf16 %v5714_v46, %v5714_v46  ;;  %v5715_v61 = vpop.f32.mrf.mxu0  ;;  %5912 = vmatpush3.bf16.msra.mxu1 %v6209_v59 }
 0x78e   : > { %5913 = vmatprep.subr.bf16.mxu1 %v6210_v10 }
 0x78f   : > { %v5716_v12 = vpop.f32.mrf.mxu0  ;;  %3817 = vrot.lane.b32.xlu1 %v5406_v16, %s6868_s1  ;;  %v6211_v16 = vld [vmem:[#allocation9 + $0x10] sm:$0xff]  }
 0x790   : > { %v5717_v60 = vadd.f32 %v5716_v12, %v5715_v61 }
 0x791   : > { %v5718_v30 = vpop.f32.mrf.mxu0  ;;  %5914 = vmatpush3.bf16.msra.mxu1 %v6210_v10 }
 0x792   : > { %v5407_v8 = vpack.c.bf16 %v5717_v60, %v5717_v60  ;;  %5915 = vmatprep.subr.bf16.mxu1 %v6211_v16 }
 0x793   : > { %v5719_v21 = vpop.f32.mrf.mxu0 }
 0x794   : > { %v5720_v31 = vadd.f32 %v5719_v21, %v5718_v30  ;;  %3819 = vrot.lane.b32.xlu0 %v5407_v8, %s6868_s1  ;;  %v6212_v21 = vld [vmem:[#allocation9 + $0x8] sm:$0xff]  }
 0x795   : > { %v5721_v39 = vpop.f32.mrf.mxu0  ;;  %5916 = vmatpush3.bf16.msra.mxu1 %v6211_v16 }
 0x796   : > { %v5408_v57 = vpack.c.bf16 %v5720_v31, %v5720_v31  ;;  %5917 = vmatprep.subr.bf16.mxu1 %v6212_v21 }
 0x797   : > { %v5722_v2 = vpop.f32.mrf.mxu0 }
 0x798   : > { %v5723_v14 = vadd.f32 %v5722_v2, %v5721_v39  ;;  %3821 = vrot.lane.b32.xlu1 %v5408_v57, %s6868_s1 }
 0x799   : > { %v5724_v19 = vpop.f32.mrf.mxu0  ;;  %5918 = vmatpush3.bf16.msra.mxu1 %v6212_v21 }
 0x79a   : > { %v5409_v15 = vpack.c.bf16 %v5723_v14, %v5723_v14 }
 0x79b   : > { %v5725_v25 = vpop.f32.mrf.mxu0 }
 0x79c   : > { %v5726_v17 = vadd.f32 %v5725_v25, %v5724_v19  ;;  %3823 = vrot.lane.b32.xlu0 %v5409_v15, %s6868_s1  ;;  %v6214_v19 = vld [vmem:[#allocation9] sm:$0xff]  }
 0x79d   : > { %v5727_v47 = vpop.f32.mrf.mxu0  ;;  %5919 = vmatprep.subr.bf16.mxu1 %v6214_v19 }
 0x79e   : > { %v5410_v62 = vpack.c.bf16 %v5726_v17, %v5726_v17  ;;  %5920 = vmatpush3.bf16.msra.mxu1 %v6214_v19 }
 0x79f   : > { %v5728_v41 = vpop.f32.mrf.mxu0 }
 0x7a0   : > { %v5729_v22 = vadd.f32 %v5728_v41, %v5727_v47  ;;  %3825 = vrot.lane.b32.xlu1 %v5410_v62, %s6868_s1 }
 0x7a1   : > { %v5730_v45 = vpop.f32.mrf.mxu0  ;;  %v3029_v40 = vpop.permute.xlu0 %3028 }
 0x7a2   : > { %v5411_v24 = vpack.c.bf16 %v5729_v22, %v5729_v22  ;;  %3077 = vst.msk [vmem:[#allocation3] sm:$0xf] %vm3076_vm13, %v3029_v40 }
 0x7a3   : > { %v5731_v26 = vpop.f32.mrf.mxu0 }
 0x7a4   : > { %v5732_v3 = vadd.f32 %v5731_v26, %v5730_v45  ;;  %3827 = vrot.lane.b32.xlu0 %v5411_v24, %s6868_s1 }
 0x7a5   : > { %v5733_v48 = vpop.f32.mrf.mxu0  ;;  %v3031_v50 = vpop.permute.xlu1 %3030 }
 0x7a6   : > { %v5412_v52 = vpack.c.bf16 %v5732_v3, %v5732_v3  ;;  %3078 = vst.msk [vmem:[#allocation3 + $0x4] sm:$0xf] %vm3076_vm13, %v3031_v50 }
 0x7a7   : > { %v5734_v32 = vpop.f32.mrf.mxu0 }
 0x7a8   : > { %v5735_v38 = vadd.f32 %v5734_v32, %v5733_v48  ;;  %3829 = vrot.lane.b32.xlu1 %v5412_v52, %s6868_s1 }
 0x7a9   : > { %v5736_v18 = vpop.f32.mrf.mxu0 }
 0x7aa   : > { %v5413_v56 = vpack.c.bf16 %v5735_v38, %v5735_v38 }
 0x7ab   : > { %v5737_v5 = vpop.f32.mrf.mxu0 }
 0x7ac   : > { %v5738_v34 = vadd.f32 %v5737_v5, %v5736_v18  ;;  %3831 = vrot.lane.b32.xlu0 %v5413_v56, %s6868_s1 }
 0x7ad   : > { %v5739_v13 = vpop.f32.mrf.mxu0  ;;  %v3033_v20 = vpop.permute.xlu1 %3032 }
 0x7ae   : > { %v5414_v29 = vpack.c.bf16 %v5738_v34, %v5738_v34  ;;  %3079 = vst.msk [vmem:[#allocation3 + $0x8] sm:$0xf] %vm3076_vm13, %v3033_v20 }
 0x7af   : > { %v5740_v42 = vpop.f32.mrf.mxu0 }
 0x7b0   : > { %v5741_v0 = vadd.f32 %v5740_v42, %v5739_v13  ;;  %3833 = vrot.lane.b32.xlu1 %v5414_v29, %s6868_s1 }
 0x7b1   : > { %v5742_v53 = vpop.f32.mrf.mxu0  ;;  %v3035_v49 = vpop.permute.xlu1 %3034 }
 0x7b2   : > { %v5415_v54 = vpack.c.bf16 %v5741_v0, %v5741_v0  ;;  %3080 = vst.msk [vmem:[#allocation3 + $0xc] sm:$0xf] %vm3076_vm13, %v3035_v49 }
 0x7b3   : > { %v5743_v58 = vpop.f32.mrf.mxu0 }
 0x7b4   : > { %v5744_v36 = vadd.f32 %v5743_v58, %v5742_v53  ;;  %3835 = vrot.lane.b32.xlu0 %v5415_v54, %s6868_s1 }
 0x7b6   : > { %v5416_v27 = vpack.c.bf16 %v5744_v36, %v5744_v36 }
 0x7b8   : > { %3837 = vrot.lane.b32.xlu1 %v5416_v27, %s6868_s1  ;;  %s6737_s1 = sshll.u32 %s6870_s11, 4  ;;  %s6738_s1 = int_to_ptr.vmem [resolvable:$false] %s6737_s1 }
 0x7b9   : > { %v3037_v6 = vpop.permute.xlu0 %3036  ;;  %s6739_s29 = scalar_lea.vmem %s6738_s1, 4096  ;;  %p6740_p4 = scmp.lt.s32.totalorder %s9480_s13, %s6738_s1 }
 0x7ba   : > { %3081 = vst.msk [vmem:[#allocation3 + $0x10] sm:$0xf] %vm3076_vm13, %v3037_v6 }
 0x7bd   : > { %v3039_v63 = vpop.permute.xlu1 %3038 }
 0x7be   : > { %3082 = vst.msk [vmem:[#allocation3 + $0x14] sm:$0xf] %vm3076_vm13, %v3039_v63 }
 0x7c5   : > { %v3041_v44 = vpop.permute.xlu0 %3040 }
 0x7c6   : > { %3083 = vst.msk [vmem:[#allocation3 + $0x18] sm:$0xf] %vm3076_vm13, %v3041_v44 }
 0x7c9   : > { %v3043_v35 = vpop.permute.xlu1 %3042 }
 0x7ca   : > { %3084 = vst.msk [vmem:[#allocation3 + $0x1c] sm:$0xf] %vm3076_vm13, %v3043_v35 }
 0x7cd   : > { %v3045_v51 = vpop.permute.xlu0 %3044 }
 0x7ce   : > { %3085 = vst.msk [vmem:[#allocation3 + $0x20] sm:$0xf] %vm3076_vm13, %v3045_v51 }
 0x7d1   : > { %v3047_v33 = vpop.permute.xlu1 %3046 }
 0x7d2   : > { %3086 = vst.msk [vmem:[#allocation3 + $0x24] sm:$0xf] %vm3076_vm13, %v3047_v33 }
 0x7d5   : > { %v3049_v23 = vpop.permute.xlu0 %3048 }
 0x7d6   : > { %3087 = vst.msk [vmem:[#allocation3 + $0x28] sm:$0xf] %vm3076_vm13, %v3049_v23 }
 0x7d9   : > { %v3051_v43 = vpop.permute.xlu1 %3050 }
 0x7da   : > { %3088 = vst.msk [vmem:[#allocation3 + $0x2c] sm:$0xf] %vm3076_vm13, %v3051_v43 }
 0x7dd   : > { %v3053_v55 = vpop.permute.xlu0 %3052 }
 0x7de   : > { %3089 = vst.msk [vmem:[#allocation3 + $0x30] sm:$0xf] %vm3076_vm13, %v3053_v55 }
 0x7e1   : > { %v3055_v7 = vpop.permute.xlu1 %3054 }
 0x7e2   : > { %3090 = vst.msk [vmem:[#allocation3 + $0x34] sm:$0xf] %vm3076_vm13, %v3055_v7 }
 0x7e5   : > { %v3057_v1 = vpop.permute.xlu0 %3056 }
 0x7e6   : > { %3091 = vst.msk [vmem:[#allocation3 + $0x38] sm:$0xf] %vm3076_vm13, %v3057_v1 }
 0x7e8   : > { %v5793_v9 = vpop.f32.mrf.mxu0 }
 0x7e9   : > { %v3059_v37 = vpop.permute.xlu1 %3058 }
 0x7ea   : > { %v5794_v46 = vpop.f32.mrf.mxu0  ;;  %3092 = vst.msk [vmem:[#allocation3 + $0x3c] sm:$0xf] %vm3076_vm13, %v3059_v37 }
 0x7eb   : > { %v5795_v61 = vadd.f32 %v5794_v46, %v5793_v9 }
 0x7ec   : > { %v5796_v12 = vpop.f32.mrf.mxu0 }
 0x7ed   : > { %v5417_v60 = vpack.c.bf16 %v5795_v61, %v5795_v61  ;;  %v3808_v30 = vpop.permute.xlu0 %3807 }
 0x7ee   : > { %3856 = vst.msk [vmem:[#allocation3] sm:$0xf] %vm3855_vm15, %v3808_v30  ;;  %v5797_v8 = vpop.f32.mrf.mxu0 }
 0x7ef   : > { %v5798_v31 = vadd.f32 %v5797_v8, %v5796_v12  ;;  %4586 = vrot.lane.b32.xlu0 %v5417_v60, %s6867_s14 }
 0x7f0   : > { %v5799_v39 = vpop.f32.mrf.mxu0 }
 0x7f1   : > { %v5418_v57 = vpack.c.bf16 %v5798_v31, %v5798_v31  ;;  %v3810_v2 = vpop.permute.xlu1 %3809 }
 0x7f2   : > { %v5800_v14 = vpop.f32.mrf.mxu0  ;;  %3857 = vst.msk [vmem:[#allocation3 + $0x4] sm:$0xf] %vm3855_vm15, %v3810_v2 }
 0x7f3   : > { %v5801_v15 = vadd.f32 %v5800_v14, %v5799_v39  ;;  %4588 = vrot.lane.b32.xlu1 %v5418_v57, %s6867_s14 }
 0x7f4   : > { %v5802_v25 = vpop.f32.mrf.mxu0 }
 0x7f5   : > { %v5419_v17 = vpack.c.bf16 %v5801_v15, %v5801_v15  ;;  %v3812_v47 = vpop.permute.xlu0 %3811 }
 0x7f6   : > { %3858 = vst.msk [vmem:[#allocation3 + $0x8] sm:$0xf] %vm3855_vm15, %v3812_v47  ;;  %v5803_v62 = vpop.f32.mrf.mxu0 }
 0x7f7   : > { %v5804_v41 = vadd.f32 %v5803_v62, %v5802_v25  ;;  %4590 = vrot.lane.b32.xlu0 %v5419_v17, %s6867_s14 }
 0x7f8   : > { %v5805_v22 = vpop.f32.mrf.mxu0 }
 0x7f9   : > { %v5420_v45 = vpack.c.bf16 %v5804_v41, %v5804_v41  ;;  %v3814_v24 = vpop.permute.xlu1 %3813 }
 0x7fa   : > { %v5806_v40 = vpop.f32.mrf.mxu0  ;;  %3859 = vst.msk [vmem:[#allocation3 + $0xc] sm:$0xf] %vm3855_vm15, %v3814_v24 }
 0x7fb   : > { %v5807_v26 = vadd.f32 %v5806_v40, %v5805_v22  ;;  %4592 = vrot.lane.b32.xlu1 %v5420_v45, %s6867_s14 }
 0x7fc   : > { %v5808_v3 = vpop.f32.mrf.mxu0 }
 0x7fd   : > { %v5421_v48 = vpack.c.bf16 %v5807_v26, %v5807_v26  ;;  %v3816_v52 = vpop.permute.xlu0 %3815 }
 0x7fe   : > { %3860 = vst.msk [vmem:[#allocation3 + $0x10] sm:$0xf] %vm3855_vm15, %v3816_v52  ;;  %v5809_v50 = vpop.f32.mrf.mxu0 }
 0x7ff   : > { %v5810_v32 = vadd.f32 %v5809_v50, %v5808_v3  ;;  %4594 = vrot.lane.b32.xlu0 %v5421_v48, %s6867_s14 }
 0x800   : > { %v5811_v38 = vpop.f32.mrf.mxu0 }
 0x801   : > { %v5422_v18 = vpack.c.bf16 %v5810_v32, %v5810_v32  ;;  %v3818_v56 = vpop.permute.xlu1 %3817 }
 0x802   : > { %v5812_v5 = vpop.f32.mrf.mxu0  ;;  %3861 = vst.msk [vmem:[#allocation3 + $0x14] sm:$0xf] %vm3855_vm15, %v3818_v56 }
 0x803   : > { %v5813_v34 = vadd.f32 %v5812_v5, %v5811_v38  ;;  %4596 = vrot.lane.b32.xlu1 %v5422_v18, %s6867_s14 }
 0x804   : > { %v5814_v13 = vpop.f32.mrf.mxu0 }
 0x805   : > { %v5423_v29 = vpack.c.bf16 %v5813_v34, %v5813_v34 }
 0x806   : > { %v3820_v20 = vpop.permute.xlu0 %3819  ;;  %v5815_v42 = vpop.f32.mrf.mxu0 }
 0x807   : > { %3862 = vst.msk [vmem:[#allocation3 + $0x18] sm:$0xf] %vm3855_vm15, %v3820_v20  ;;  %v5816_v0 = vadd.f32 %v5815_v42, %v5814_v13  ;;  %4598 = vrot.lane.b32.xlu0 %v5423_v29, %s6867_s14 }
 0x809   : > { %v5424_v53 = vpack.c.bf16 %v5816_v0, %v5816_v0 }
 0x80a   : > { %v3822_v54 = vpop.permute.xlu1 %3821 }
 0x80b   : > { %3863 = vst.msk [vmem:[#allocation3 + $0x1c] sm:$0xf] %vm3855_vm15, %v3822_v54  ;;  %4600 = vrot.lane.b32.xlu1 %v5424_v53, %s6867_s14 }
 0x80e   : > { %v3824_v49 = vpop.permute.xlu0 %3823 }
 0x80f   : > { %3864 = vst.msk [vmem:[#allocation3 + $0x20] sm:$0xf] %vm3855_vm15, %v3824_v49  ;;  %v5280_v49 = vld [vmem:[%s9549_s3] ss:$0 sm:$0xff] }
 0x812   : > { %v3826_v58 = vpop.permute.xlu1 %3825 }
 0x813   : > { %3865 = vst.msk [vmem:[#allocation3 + $0x24] sm:$0xf] %vm3855_vm15, %v3826_v58 }
 0x816   : > { %v3828_v36 = vpop.permute.xlu0 %3827 }
 0x817   : > { %3866 = vst.msk [vmem:[#allocation3 + $0x28] sm:$0xf] %vm3855_vm15, %v3828_v36 }
 0x81a   : > { %v3830_v27 = vpop.permute.xlu1 %3829 }
 0x81b   : > { %3867 = vst.msk [vmem:[#allocation3 + $0x2c] sm:$0xf] %vm3855_vm15, %v3830_v27 }
 0x81e   : > { %v3832_v6 = vpop.permute.xlu0 %3831 }
 0x81f   : > { %3868 = vst.msk [vmem:[#allocation3 + $0x30] sm:$0xf] %vm3855_vm15, %v3832_v6 }
 0x822   : > { %v3834_v63 = vpop.permute.xlu1 %3833 }
 0x823   : > { %3869 = vst.msk [vmem:[#allocation3 + $0x34] sm:$0xf] %vm3855_vm15, %v3834_v63 }
 0x826   : > { %v5817_v44 = vpop.f32.mrf.mxu0  ;;  %v3836_v35 = vpop.permute.xlu0 %3835 }
 0x827   : > { %3870 = vst.msk [vmem:[#allocation3 + $0x38] sm:$0xf] %vm3855_vm15, %v3836_v35 }
 0x828   : > { %v5818_v4 = vpop.f32.mrf.mxu0 }
 0x829   : > { %v5819_v28 = vadd.f32 %v5818_v4, %v5817_v44 }
 0x82a   : > { %v5820_v51 = vpop.f32.mrf.mxu0  ;;  %v3838_v11 = vpop.permute.xlu1 %3837 }
 0x82b   : > { %v5425_v33 = vpack.c.bf16 %v5819_v28, %v5819_v28  ;;  %3871 = vst.msk [vmem:[#allocation3 + $0x3c] sm:$0xf] %vm3855_vm15, %v3838_v11 }
 0x82c   : > { %v5821_v23 = vpop.f32.mrf.mxu0 }
 0x82d   : > { %v5822_v43 = vadd.f32 %v5821_v23, %v5820_v51  ;;  %4602 = vrot.lane.b32.xlu0 %v5425_v33, %s6867_s14 }
 0x82e   : > { %v5823_v55 = vpop.f32.mrf.mxu0 }
 0x82f   : > { %v5426_v7 = vpack.c.bf16 %v5822_v43, %v5822_v43 }
 0x830   : > { %v5824_v59 = vpop.f32.mrf.mxu0 }
 0x831   : > { %v5825_v1 = vadd.f32 %v5824_v59, %v5823_v55  ;;  %4604 = vrot.lane.b32.xlu1 %v5426_v7, %s6867_s14 }
 0x832   : > { %v5826_v10 = vpop.f32.mrf.mxu0 }
 0x833   : > { %v5427_v9 = vpack.c.bf16 %v5825_v1, %v5825_v1 }
 0x834   : > { %v5827_v37 = vpop.f32.mrf.mxu0 }
 0x835   : > { %v5828_v46 = vadd.f32 %v5827_v37, %v5826_v10  ;;  %4606 = vrot.lane.b32.xlu0 %v5427_v9, %s6867_s14 }
 0x836   : > { %v5829_v16 = vpop.f32.mrf.mxu0 }
 0x837   : > { %v5428_v61 = vpack.c.bf16 %v5828_v46, %v5828_v46 }
 0x838   : > { %v5830_v12 = vpop.f32.mrf.mxu0 }
 0x839   : > { %v5831_v60 = vadd.f32 %v5830_v12, %v5829_v16  ;;  %4608 = vrot.lane.b32.xlu1 %v5428_v61, %s6867_s14 }
 0x83a   : > { %v5832_v30 = vpop.f32.mrf.mxu0 }
 0x83b   : > { %v5429_v8 = vpack.c.bf16 %v5831_v60, %v5831_v60 }
 0x83c   : > { %v5833_v21 = vpop.f32.mrf.mxu0 }
 0x83d   : > { %v5834_v31 = vadd.f32 %v5833_v21, %v5832_v30  ;;  %4610 = vrot.lane.b32.xlu0 %v5429_v8, %s6867_s14 }
 0x83e   : > { %v5835_v39 = vpop.f32.mrf.mxu0 }
 0x83f   : > { %v5430_v57 = vpack.c.bf16 %v5834_v31, %v5834_v31 }
 0x840   : > { %v5836_v2 = vpop.f32.mrf.mxu0 }
 0x841   : > { %v5837_v14 = vadd.f32 %v5836_v2, %v5835_v39  ;;  %4612 = vrot.lane.b32.xlu1 %v5430_v57, %s6867_s14 }
 0x842   : > { %v5838_v19 = vpop.f32.mrf.mxu0 }
 0x843   : > { %v5431_v15 = vpack.c.bf16 %v5837_v14, %v5837_v14 }
 0x844   : > { %v5839_v25 = vpop.f32.mrf.mxu0 }
 0x845   : > { %v5840_v17 = vadd.f32 %v5839_v25, %v5838_v19  ;;  %4614 = vrot.lane.b32.xlu0 %v5431_v15, %s6867_s14 }
 0x847   : > { %v5432_v47 = vpack.c.bf16 %v5840_v17, %v5840_v17 }
 0x849   : > { %4616 = vrot.lane.b32.xlu1 %v5432_v47, %s6867_s14  ;;  %s6733_s14 = scalar_lea.vmem %s9480_s13, 2048 }
 0x84a   : > { %p6734_p3 = scmp.ne.s32.totalorder %s9480_s13, %s6733_s14  ;;  %p6741_p6 = scmp.lt.s32.totalorder %s6739_s29, %s6733_s14 }
 0x84c   : > { %p6735_p12 = pnand %p6734_p3, %p10059_p10  ;;  %p6742_p5 = por %p6741_p6, %p6740_p4 }
 0x84e   : > { %p6736_p2 = pneg %p6735_p12 }
 0x850   : > { %p6743_p1 = pnand %p6742_p5, %p6736_p2 }
 0x861   : > { %v4587_v62 = vpop.permute.xlu0 %4586 }
 0x862   : > { %4635 = vst.msk [vmem:[#allocation3] sm:$0xf] %vm4634_vm6, %v4587_v62 }
 0x865   : > { %v4589_v41 = vpop.permute.xlu1 %4588 }
 0x866   : > { %4636 = vst.msk [vmem:[#allocation3 + $0x4] sm:$0xf] %vm4634_vm6, %v4589_v41 }
 0x869   : > { %v4591_v22 = vpop.permute.xlu0 %4590 }
 0x86a   : > { %4637 = vst.msk [vmem:[#allocation3 + $0x8] sm:$0xf] %vm4634_vm6, %v4591_v22 }
 0x86d   : > { %v4593_v45 = vpop.permute.xlu1 %4592  ;;  %v6213_v24 = vld [vmem:[#allocation3] sm:$0xff]  }
 0x86e   : > { %4638 = vst.msk [vmem:[#allocation3 + $0xc] sm:$0xf] %vm4634_vm6, %v4593_v45  ;;  %5921 = vmatprep.mubr.bf16.mxu1 %v6213_v24 }
 0x871   : > { %v4595_v40 = vpop.permute.xlu0 %4594 }
 0x872   : > { %4639 = vst.msk [vmem:[#allocation3 + $0x10] sm:$0xf] %vm4634_vm6, %v4595_v40 }
 0x875   : > { %v4597_v26 = vpop.permute.xlu1 %4596  ;;  %v6215_v3 = vld [vmem:[#allocation3 + $0x8] sm:$0xff]  }
 0x876   : > { %4640 = vst.msk [vmem:[#allocation3 + $0x14] sm:$0xf] %vm4634_vm6, %v4597_v26  ;;  %5922 = vmatmul.mubr.bf16.vlgmr.msra.gmra.mxu1 %v6215_v3 }
 0x879   : > { %v4599_v48 = vpop.permute.xlu0 %4598 }
 0x87a   : > { %4641 = vst.msk [vmem:[#allocation3 + $0x18] sm:$0xf] %vm4634_vm6, %v4599_v48 }
 0x87d   : > { %v4601_v52 = vpop.permute.xlu1 %4600  ;;  %v6216_v50 = vld [vmem:[#allocation3 + $0x10] sm:$0xff]  }
 0x87e   : > { %4642 = vst.msk [vmem:[#allocation3 + $0x1c] sm:$0xf] %vm4634_vm6, %v4601_v52  ;;  %5925 = vmatprep.mubr.bf16.mxu1 %v6216_v50 }
 0x885   : > { %v6217_v32 = vld [vmem:[#allocation3 + $0x18] sm:$0xff]  }
 0x886   : > { %5926 = vmatmul.mubr.bf16.gmra.mxu1 %v6217_v32 }
 0x89f   : > { %v4603_v38 = vpop.permute.xlu0 %4602 }
 0x8a0   : > { %4643 = vst.msk [vmem:[#allocation3 + $0x20] sm:$0xf] %vm4634_vm6, %v4603_v38 }
 0x8a3   : > { %v4605_v18 = vpop.permute.xlu1 %4604 }
 0x8a4   : > { %4644 = vst.msk [vmem:[#allocation3 + $0x24] sm:$0xf] %vm4634_vm6, %v4605_v18 }
 0x8a7   : > { %v4607_v56 = vpop.permute.xlu0 %4606 }
 0x8a8   : > { %4645 = vst.msk [vmem:[#allocation3 + $0x28] sm:$0xf] %vm4634_vm6, %v4607_v56 }
 0x8ab   : > { %v4609_v5 = vpop.permute.xlu1 %4608  ;;  %v6218_v34 = vld [vmem:[#allocation3 + $0x20] sm:$0xff]  }
 0x8ac   : > { %4646 = vst.msk [vmem:[#allocation3 + $0x2c] sm:$0xf] %vm4634_vm6, %v4609_v5  ;;  %5929 = vmatprep.mubr.bf16.mxu1 %v6218_v34 }
 0x8af   : > { %v4611_v13 = vpop.permute.xlu0 %4610 }
 0x8b0   : > { %4647 = vst.msk [vmem:[#allocation3 + $0x30] sm:$0xf] %vm4634_vm6, %v4611_v13 }
 0x8b3   : > { %v4613_v29 = vpop.permute.xlu1 %4612  ;;  %v6219_v20 = vld [vmem:[#allocation3 + $0x28] sm:$0xff]  }
 0x8b4   : > { %4648 = vst.msk [vmem:[#allocation3 + $0x34] sm:$0xf] %vm4634_vm6, %v4613_v29  ;;  %5930 = vmatmul.mubr.bf16.gmra.mxu1 %v6219_v20 }
 0x8b7   : > { %v4615_v42 = vpop.permute.xlu0 %4614 }
 0x8b8   : > { %4649 = vst.msk [vmem:[#allocation3 + $0x38] sm:$0xf] %vm4634_vm6, %v4615_v42 }
 0x8bb   : > { %v4617_v0 = vpop.permute.xlu1 %4616  ;;  %v6220_v53 = vld [vmem:[#allocation3 + $0x30] sm:$0xff]  }
 0x8bc   : > { %4650 = vst.msk [vmem:[#allocation3 + $0x3c] sm:$0xf] %vm4634_vm6, %v4617_v0  ;;  %5933 = vmatprep.mubr.bf16.mxu1 %v6220_v53 }
 0x8c3   : > { %v6221_v54 = vld [vmem:[#allocation3 + $0x38] sm:$0xff]  }
 0x8c4   : > { %5934 = vmatmul.mubr.bf16.gmra.mxu1 %v6221_v54 }
 0x936   : > { %v5923_v58 = vpop.f32.mrf.mxu1 }
 0x937   : > { %v4829_v36 = vadd.f32 %v5923_v58, %v5280_v49 }
 0x938   : > { %v4820_v27 = vpop.f32.mrf.mxu1 }
 0x939   : > { %4885 = vst [vmem:[%s7076_s5 + $0x10] sm:$0xff] %v4829_v36  ;;  %v4821_v6 = vadd.f32 %v5280_v49, %v4820_v27 }
 0x93a   : > { %v5924_v63 = vpop.f32.mrf.mxu1 }
 0x93b   : > { %4883 = vst [vmem:[%s7076_s5] sm:$0xff] %v4821_v6  ;;  %v4832_v44 = vadd.f32 %v5924_v63, %v5280_v49 }
 0x93c   : > { %v4823_v35 = vpop.f32.mrf.mxu1 }
 0x93d   : > { %4886 = vst [vmem:[%s7076_s5 + $0x18] sm:$0xff] %v4832_v44  ;;  %v4824_v4 = vadd.f32 %v5280_v49, %v4823_v35 }
 0x93f   : > { %4884 = vst [vmem:[%s7076_s5 + $0x8] sm:$0xff] %v4824_v4 }
 0x946   : > { %v5927_v28 = vpop.f32.mrf.mxu1 }
 0x947   : > { %v4845_v51 = vadd.f32 %v5927_v28, %v5280_v49 }
 0x948   : > { %v4836_v11 = vpop.f32.mrf.mxu1 }
 0x949   : > { %4889 = vst [vmem:[%s7076_s5 + $0x30] sm:$0xff] %v4845_v51  ;;  %v4837_v33 = vadd.f32 %v5280_v49, %v4836_v11 }
 0x94a   : > { %v5928_v23 = vpop.f32.mrf.mxu1 }
 0x94b   : > { %4887 = vst [vmem:[%s7076_s5 + $0x20] sm:$0xff] %v4837_v33  ;;  %v4848_v43 = vadd.f32 %v5928_v23, %v5280_v49 }
 0x94c   : > { %v4839_v55 = vpop.f32.mrf.mxu1 }
 0x94d   : > { %4890 = vst [vmem:[%s7076_s5 + $0x38] sm:$0xff] %v4848_v43  ;;  %v4840_v7 = vadd.f32 %v5280_v49, %v4839_v55 }
 0x94f   : > { %4888 = vst [vmem:[%s7076_s5 + $0x28] sm:$0xff] %v4840_v7 }
 0x974   : > { %v5931_v59 = vpop.f32.mrf.mxu1 }
 0x975   : > { %v4861_v1 = vadd.f32 %v5931_v59, %v5280_v49 }
 0x976   : > { %v4852_v10 = vpop.f32.mrf.mxu1 }
 0x977   : > { %4893 = vst [vmem:[%s7076_s5 + $0x50] sm:$0xff] %v4861_v1  ;;  %v4853_v9 = vadd.f32 %v5280_v49, %v4852_v10 }
 0x978   : > { %v5932_v37 = vpop.f32.mrf.mxu1 }
 0x979   : > { %4891 = vst [vmem:[%s7076_s5 + $0x40] sm:$0xff] %v4853_v9  ;;  %v4864_v46 = vadd.f32 %v5932_v37, %v5280_v49 }
 0x97a   : > { %v4855_v16 = vpop.f32.mrf.mxu1 }
 0x97b   : > { %4894 = vst [vmem:[%s7076_s5 + $0x58] sm:$0xff] %v4864_v46  ;;  %v4856_v61 = vadd.f32 %v5280_v49, %v4855_v16 }
 0x97d   : > { %4892 = vst [vmem:[%s7076_s5 + $0x48] sm:$0xff] %v4856_v61 }
 0x984   : > { %v5935_v12 = vpop.f32.mrf.mxu1 }
 0x985   : > { %v4877_v60 = vadd.f32 %v5935_v12, %v5280_v49 }
 0x986   : > { %v4868_v30 = vpop.f32.mrf.mxu1 }
 0x987   : > { %4897 = vst [vmem:[%s7076_s5 + $0x70] sm:$0xff] %v4877_v60  ;;  %v4869_v8 = vadd.f32 %v5280_v49, %v4868_v30 }
 0x988   : > { %v5936_v21 = vpop.f32.mrf.mxu1 }
 0x989   : > { %4895 = vst [vmem:[%s7076_s5 + $0x60] sm:$0xff] %v4869_v8  ;;  %v4880_v31 = vadd.f32 %v5936_v21, %v5280_v49 }
 0x98a   : > { %v4871_v39 = vpop.f32.mrf.mxu1 }
 0x98b   : > { %4898 = vst [vmem:[%s7076_s5 + $0x78] sm:$0xff] %v4880_v31  ;;  %v4872_v57 = vadd.f32 %v5280_v49, %v4871_v39 }
 0x98d   : > { %4896 = vst [vmem:[%s7076_s5 + $0x68] sm:$0xff] %v4872_v57 }
 0x98e   : > { %6746 = shalt.err (!%p6743_p1)
}
 0x98f   : > { %s6747_s2 = scalar_lea.hbm %s9478_s7, 2048  ;;  %s6751_s18 = scalar_lea.hbm %s10058_s30, 8192 }
 0x990   : > { %p6748_p7 = scmp.ne.s32.totalorder %s9478_s7, %s6747_s2  ;;  %p6752_p0 = scmp.lt.s32.totalorder %s9478_s7, %s10058_s30 }
 0x991   : > { %p6753_p8 = scmp.lt.s32.totalorder %s6751_s18, %s6747_s2 }
 0x992   : > { %p6749_p9 = pnand %p6748_p7, %p10059_p10 }
 0x993   : > { %p6754_p11 = por %p6753_p8, %p6752_p0 }
 0x994   : > { %p6750_p13 = pneg %p6749_p9 }
 0x996   : > { %p6755_p3 = pnand %p6754_p11, %p6750_p13 }
 0x998   : > { %6758 = shalt.err (!%p6755_p3)
}
 0x999   : > { %s6871_s10 = smov 128   ;;  %s6872_s12 = smov 8  }
 0x99a   : > { %5995 = dma.vmem_to_hbm [thread:$0]  (%p10059_p10), %s9480_s13, 2048, %s9478_s7, %s9486_s22, %s6871_s10, %s6871_s10, %s6872_s12  }
 0x99b PF: > { %s10060_s4 = sld [smem:[#allocation14_spill]]  ;;  %p6017_p12 = scmp.ge.s32.totalorder %s6857_s25, 2 }
 0x99c   : > { %s10061_s28 = sld [smem:[#allocation17_spill]] }
 0x9a1   : > { %s4930_s21 = sand.u32 1, %s10060_s4  }
 0x9a2   : > { %p10062_p2 = scmp.ne.s32.totalorder %s10061_s28, 0  ;;  %s4931_s14 = scalar_lea.sflag [#allocation6], %s4930_s21 }
 0x9a4   : > { %p6009_p4 = pnand %p6017_p12, %p10062_p2 }
 0x9a6   : > { %p6010_p6 = pneg %p6009_p4 }
 0x9a8   : > { %6812 = dma.done.wait (%p6010_p6), %s4931_s14, 2048  }
 0x9a9   : > { %6814 = vsyncadd (%p6010_p6), %s4931_s14, 4294965248  ;;  %s21_s25 = sadd.s32 1, %s6857_s25   ;;  %s10063_s21 = sld [smem:[#allocation15_spill]] }
 0x9aa   : > { %p18_p5 = scmp.ge.s32.totalorder %s21_s25, 6   ;;  %s10064_s8 = sld [smem:[#allocation18_spill]] }
 0x9ab   : > { %s10065_s15 = smov %s6821_s16  ;;  %s10066_s16 = smov %s6825_s17 }
 0x9ac   : > { %s10067_s17 = smov %s7043_s23  ;;  %s10068_s18 = smov %s6833_s19 }
 0x9ad   : > { %s10069_s19 = smov %s6837_s20  ;;  %s10070_s20 = smov %s7038_s6 }
 0x9ae   : > { %s10071_s22 = smov %s6853_s24  ;;  %s10073_s24 = smov %s10079_s26 }
 0x9af   :  { %20 = sbr.rel (!%p18_p5) target bundleno = 14 (0xe), region = 94 }
 0x9b0   : > { %s10072_s23 = smov %s10064_s8 }
 0x9b4   :  { %4936 = vsyncpa [#allocation5], 1 }
 0x9b5   :  { %4938 = vsyncpa [#allocation5 + $0x1], 1 }
 0x9b6   :  { %4939 = vsyncpa [#allocation8], 1 }
 0x9b7   :  { %4940 = vsyncpa [#allocation6], 1 }
 0x9b8   :  { %4942 = vsyncpa [#allocation6 + $0x1], 1 }

</bundles_post_ra>
